<compile_context>
chip_gen: v7x
topology: tpu7x:2x2x1
jax: 0.10.0
libtpu: 0.0.40
codegen_flags: <defaults>
</compile_context>

<pallas_src>
import functools

import jax
import jax.numpy as jnp
from jax import lax
from jax.experimental import pallas as pl
from jax.experimental.pallas import tpu as pltpu

_BN_EPS = 1e-5          # PyTorch BatchNorm1d default
_DROP_P = 0.1           # Dropout(0.1)


def _bn_train(x, gamma, beta):
    # BatchNorm1d, training mode: normalize with (biased) batch statistics.
    mu = jnp.mean(x, axis=0, keepdims=True)
    var = jnp.mean((x - mu) ** 2, axis=0, keepdims=True)
    return (x - mu) * lax.rsqrt(var + _BN_EPS) * gamma + beta


def _obj_classifier_kernel(
    dist_ref, feat_ref, boxes_ref, drop_ref,          # data (dist/feat in bf16)
    weff_ref, csm_ref, cso_ref, bn4g_ref, bn4b_ref,   # folded embed W, center_size xform, BN4
    l1w_ref, l1b_ref,                                  # pos Linear(4->128)
    d1wf_ref, d1wp_ref, d1b_ref,                       # decoder Linear#1 (split, bf16 weights)
    bng_ref, bnb_ref, d2w_ref, d2b_ref,                # decoder BN(1024) + Linear#2 (padded)
    out_ref,                                           # [N, 128] padded logits
    acc_ref,                                           # VMEM f32 [N, 1024] accumulator
):
    k = pl.program_id(0)

    @pl.when(k == 0)
    def _():
        # Initialize acc with everything that does NOT need the 2048-dim feature
        # contraction, so this VPU/MXU work overlaps the DMA of the next W1_feat tile
        # instead of sitting serially after it (and the zero-fill of acc is deleted).
        #   h0 = dist @ W_eff + b1   (embedding path pre-folded into W_eff)
        h0 = jnp.dot(dist_ref[...], weff_ref[...],
                     preferred_element_type=jnp.float32) + d1b_ref[...]

        # pos_embed branch: center_size as a single [4,4] linear map (cx, cy, w, h),
        # one fused 4-wide BatchNorm (training mode), Linear(4->128), ReLU,
        # inverted dropout, then its slice of decoder Linear#1.
        cs = jnp.dot(boxes_ref[...], csm_ref[...],
                     preferred_element_type=jnp.float32) + cso_ref[...]
        cs = _bn_train(cs, bn4g_ref[...], bn4b_ref[...])
        pos = jnp.dot(cs, l1w_ref[...],
                      preferred_element_type=jnp.float32) + l1b_ref[...]
        pos = jnp.maximum(pos, 0.0)
        pos = pos * drop_ref[...]            # mask values are {0, 1/(1-p)} (or 1.0 in eval)

        acc_ref[...] = h0 + jnp.dot(pos.astype(jnp.bfloat16), d1wp_ref[...],
                                    preferred_element_type=jnp.float32)

    # Dominant matmul: features[N, 2048] @ W1_feat[2048, 1024], tiled over the 2048 axis,
    # bf16 x bf16 on the MXU with f32 accumulation.
    acc_ref[...] += jnp.dot(feat_ref[...], d1wf_ref[...],
                            preferred_element_type=jnp.float32)

    @pl.when(k == pl.num_programs(0) - 1)
    def _():
        # Only the parts that need the complete h stay in the tail:
        # BatchNorm1d(1024) (training mode), ReLU, decoder Linear#2 (padded to 128 lanes).
        h = _bn_train(acc_ref[...], bng_ref[...], bnb_ref[...])
        h = jnp.maximum(h, 0.0)
        out_ref[...] = jnp.dot(h.astype(jnp.bfloat16), d2w_ref[...],
                               preferred_element_type=jnp.float32) + d2b_ref[...]


def init_params(key, num_obj_classes=36, obj_dim=2048, embed_dim=200,
                pos_dim=128, hidden=1024):
    """Deterministic synthetic parameters (weights stored as [in, out] = torch W.T)."""
    ks = list(jax.random.split(key, 4))
    nf = num_obj_classes - 1

    def lin(k, fan_in, fan_out):
        bound = 1.0 / jnp.sqrt(fan_in)
        kw, kb = jax.random.split(k)
        w = jax.random.uniform(kw, (fan_in, fan_out), jnp.float32, -bound, bound)
        b = jax.random.uniform(kb, (1, fan_out), jnp.float32, -bound, bound)
        return w, b

    emb_w = jax.random.normal(ks[0], (nf, embed_dim), jnp.float32)   # GloVe stand-in
    bn4_g = jnp.ones((1, 4), jnp.float32)
    bn4_b = jnp.zeros((1, 4), jnp.float32)
    l1_w, l1_b = lin(ks[1], 4, pos_dim)
    d1_w, d1_b = lin(ks[2], obj_dim + embed_dim + pos_dim, hidden)
    bn_g = jnp.ones((1, hidden), jnp.float32)
    bn_b = jnp.zeros((1, hidden), jnp.float32)
    d2_w, d2_b = lin(ks[3], hidden, num_obj_classes)

    # Split decoder Linear#1 weight along its input axis (features | obj_embed | pos);
    # this folds the concat into the matmul.
    d1_wf = d1_w[:obj_dim]
    d1_we = d1_w[obj_dim:obj_dim + embed_dim]
    d1_wp = d1_w[obj_dim + embed_dim:]

    # Pre-fold the embedding path (both operands are static weights):
    # dist @ emb_w @ W1_embed == dist @ W_eff, removing ~0.78 MiB of weight DMA.
    w_eff = emb_w @ d1_we                                             # (nf, hidden)

    # Lane-dense output: zero-pad the final Linear to a multiple of 128 columns.
    pad_out = ((num_obj_classes + 127) // 128) * 128
    d2_w_pad = jnp.zeros((hidden, pad_out), jnp.float32).at[:, :num_obj_classes].set(d2_w)
    d2_b_pad = jnp.zeros((1, pad_out), jnp.float32).at[:, :num_obj_classes].set(d2_b)

    # TODO(synk): optional int8 (v5e/v6e) / fp8-e4m3 (v7x) weight-only quantization of
    #             d1_wf would halve the dominant weight DMA again at some accuracy cost.
    return dict(
        w_eff=w_eff.astype(jnp.bfloat16),
        bn4_g=bn4_g, bn4_b=bn4_b,
        l1_w=l1_w, l1_b=l1_b,
        d1_wf=d1_wf.astype(jnp.bfloat16),
        d1_wp=d1_wp.astype(jnp.bfloat16),
        d1_b=d1_b,
        bn_g=bn_g, bn_b=bn_b,
        d2_w_pad=d2_w_pad.astype(jnp.bfloat16),
        d2_b_pad=d2_b_pad,
    )


@functools.partial(jax.jit, static_argnames=("num_obj_classes", "training"))
def object_classifier_mlp(distribution, features, boxes, labels, params,
                          dropout_key, *, num_obj_classes=36, training=True):
    """Training-path forward of ObjectClassifierMLP (SGDET/SGCLS).

    Returns (new_distribution_logits, pred_labels) where pred_labels = labels
    (the training-mode passthrough in the reference module). `dropout_key` must
    vary per training step / per shard.

    Note: the 4.6 MiB of decoder weights are re-streamed from HBM on every call and
    dominate the runtime at small N; batch the boxes of several images/steps into one
    call (N in the hundreds) to amortize the weight DMA.
    """
    n = distribution.shape[0]
    nf = distribution.shape[1]
    obj_dim = features.shape[1]
    pos_dim = params["l1_b"].shape[1]
    hidden = params["d1_b"].shape[1]
    pad_out = params["d2_b_pad"].shape[1]

    # Untiled-N guard: VMEM grows ~9 KiB/row (f32 acc + double-buffered bf16 feature
    # tiles + padded output) on top of ~5 MiB of weights; stay well under the 32 MiB
    # cap (v7x has only 64 MiB physical VMEM).
    if n > 2048:
        # TODO(synk): row tiling with two-pass / partial-sum BatchNorm(1024) statistics
        #             is required to scale N beyond this ceiling.
        raise ValueError(f"object_classifier_mlp: N={n} exceeds the untiled-row ceiling (2048)")

    boxes4 = boxes[:, 1:].astype(jnp.float32)          # glue: drop batch-index column
    dist_bf = distribution.astype(jnp.bfloat16)
    feat_bf = features.astype(jnp.bfloat16)

    # Inverted-dropout mask (values {0, 1/(1-p)}), or all-ones in eval mode so eval
    # numerics match the reference. Generated with jax.random (no TPU-only PRNG in-kernel).
    if training:
        keep = jax.random.bernoulli(dropout_key, 1.0 - _DROP_P, (n, pos_dim))
        drop_mask = keep.astype(jnp.float32) * (1.0 / (1.0 - _DROP_P))
    else:
        drop_mask = jnp.ones((n, pos_dim), jnp.float32)

    # center_size as a linear map on [x1, y1, x2, y2] -> [cx, cy, w, h].
    cs_mat = jnp.array([[0.5, 0.0, -1.0, 0.0],
                        [0.0, 0.5, 0.0, -1.0],
                        [0.5, 0.0, 1.0, 0.0],
                        [0.0, 0.5, 0.0, 1.0]], jnp.float32)
    cs_off = jnp.array([[0.5, 0.5, 1.0, 1.0]], jnp.float32)

    # Reduction tile over the 2048-dim feature axis: tk=1024 (nk=2) halves the per-step
    # Pallas overhead vs tk=512 while keeping one tile of weight DMA pipelined behind
    # the k==0 compute. ~2 MiB weight tile x 2 buffers fits easily under the VMEM cap.
    tk = 1024 if obj_dim % 1024 == 0 else obj_dim
    nk = obj_dim // tk

    def const(shape):
        return pl.BlockSpec(shape, lambda k: (0, 0))

    grid_spec = pltpu.PrefetchScalarGridSpec(
        num_scalar_prefetch=0,
        grid=(nk,),
        in_specs=[
            const((n, nf)),                                   # distribution (bf16)
            pl.BlockSpec((n, tk), lambda k: (0, k)),          # features tile (bf16)
            const((n, 4)),                                    # boxes[:, 1:]
            const((n, pos_dim)),                              # dropout mask
            const((nf, hidden)),                              # W_eff (bf16)
            const((4, 4)), const((1, 4)),                     # center_size transform
            const((1, 4)), const((1, 4)),                     # BN4 gamma/beta
            const((4, pos_dim)), const((1, pos_dim)),         # pos Linear W/b
            pl.BlockSpec((tk, hidden), lambda k: (k, 0)),     # W1_feat tile (bf16)
            const((pos_dim, hidden)), const((1, hidden)),     # W1_pos (bf16), b1
            const((1, hidden)), const((1, hidden)),           # BN(1024) gamma/beta
            const((hidden, pad_out)), const((1, pad_out)),    # W2 (padded, bf16), b2
        ],
        out_specs=pl.BlockSpec((n, pad_out), lambda k: (0, 0)),
        scratch_shapes=[pltpu.VMEM((n, hidden), jnp.float32)],
    )

    logits_pad = pl.pallas_call(
        _obj_classifier_kernel,
        out_shape=jax.ShapeDtypeStruct((n, pad_out), jnp.float32),
        grid_spec=grid_spec,
        compiler_params=pltpu.CompilerParams(
            dimension_semantics=("arbitrary",),               # reduction axis
            vmem_limit_bytes=32 * 1024 * 1024),
    )(dist_bf, feat_bf, boxes4, drop_mask,
      params["w_eff"], cs_mat, cs_off, params["bn4_g"], params["bn4_b"],
      params["l1_w"], params["l1_b"],
      params["d1_wf"], params["d1_wp"], params["d1_b"],
      params["bn_g"], params["bn_b"], params["d2_w_pad"], params["d2_b_pad"])

    return logits_pad[:, :num_obj_classes], labels


if __name__ == "__main__":
    key = jax.random.PRNGKey(0)
    k_dist, k_feat, k_xy, k_wh, k_lab, k_par, k_drop = jax.random.split(key, 7)

    N = 16                      # number of boxes
    NUM_CLASSES = 36            # len(obj_classes)
    OBJ_DIM = 2048              # module's self.obj_dim

    distribution = jax.nn.softmax(
        jax.random.normal(k_dist, (N, NUM_CLASSES - 1), jnp.float32), axis=-1)
    features = jax.random.normal(k_feat, (N, OBJ_DIM), jnp.float32) * 0.1
    xy1 = jax.random.uniform(k_xy, (N, 2), jnp.float32, 0.0, 200.0)
    wh = jax.random.uniform(k_wh, (N, 2), jnp.float32, 10.0, 110.0)
    batch_idx = jnp.concatenate(
        [jnp.zeros((N // 2, 1), jnp.float32), jnp.ones((N - N // 2, 1), jnp.float32)], 0)
    boxes = jnp.concatenate([batch_idx, xy1, xy1 + wh], axis=1)        # [N, 5]
    labels = jax.random.randint(k_lab, (N,), 1, NUM_CLASSES, jnp.int32)

    params = init_params(k_par, num_obj_classes=NUM_CLASSES, obj_dim=OBJ_DIM)

    logits, pred_labels = object_classifier_mlp(
        distribution, features, boxes, labels, params, k_drop,
        num_obj_classes=NUM_CLASSES, training=True)
    jax.block_until_ready((logits, pred_labels))

    assert logits.shape == (N, NUM_CLASSES) and pred_labels.shape == (N,)
    assert bool(jnp.all(jnp.isfinite(logits)))
    print("KERNEL_OK")
</pallas_src>

<mosaic_0001>
module attributes {stable_mosaic.version = 11 : i64} {
  func.func @_obj_classifier_kernel(%arg0: i32, %arg1: memref<16x35xbf16, #tpu.memory_space<vmem>>, %arg2: memref<16x1024xbf16, #tpu.memory_space<vmem>>, %arg3: memref<16x4xf32, #tpu.memory_space<vmem>>, %arg4: memref<16x128xf32, #tpu.memory_space<vmem>>, %arg5: memref<35x1024xbf16, #tpu.memory_space<vmem>>, %arg6: memref<4x4xf32, #tpu.memory_space<vmem>>, %arg7: memref<1x4xf32, #tpu.memory_space<vmem>>, %arg8: memref<1x4xf32, #tpu.memory_space<vmem>>, %arg9: memref<1x4xf32, #tpu.memory_space<vmem>>, %arg10: memref<4x128xf32, #tpu.memory_space<vmem>>, %arg11: memref<1x128xf32, #tpu.memory_space<vmem>>, %arg12: memref<1024x1024xbf16, #tpu.memory_space<vmem>>, %arg13: memref<128x1024xbf16, #tpu.memory_space<vmem>>, %arg14: memref<1x1024xf32, #tpu.memory_space<vmem>>, %arg15: memref<1x1024xf32, #tpu.memory_space<vmem>>, %arg16: memref<1x1024xf32, #tpu.memory_space<vmem>>, %arg17: memref<1024x128xbf16, #tpu.memory_space<vmem>>, %arg18: memref<1x128xf32, #tpu.memory_space<vmem>>, %arg19: memref<16x128xf32, #tpu.memory_space<vmem>>, %arg20: memref<16x1024xf32, #tpu.memory_space<vmem>>) attributes {dimension_semantics = [#tpu.dimension_semantics<arbitrary>], iteration_bounds = array<i64: 2>, scalar_prefetch = 0 : i64, scratch_operands = 1 : i64, tpu.core_type = #tpu.core_type<tc>, window_params = [{pipeline_mode = #tpu.pipeline_mode<synchronous>, transform_indices = @transform_0, window_bounds = array<i64: 16, 35>}, {transform_indices = @transform_1, window_bounds = array<i64: 16, 1024>}, {pipeline_mode = #tpu.pipeline_mode<synchronous>, transform_indices = @transform_2, window_bounds = array<i64: 16, 4>}, {pipeline_mode = #tpu.pipeline_mode<synchronous>, transform_indices = @transform_3, window_bounds = array<i64: 16, 128>}, {pipeline_mode = #tpu.pipeline_mode<synchronous>, transform_indices = @transform_4, window_bounds = array<i64: 35, 1024>}, {pipeline_mode = #tpu.pipeline_mode<synchronous>, transform_indices = @transform_5, window_bounds = array<i64: 4, 4>}, {pipeline_mode = #tpu.pipeline_mode<synchronous>, transform_indices = @transform_6, window_bounds = array<i64: 1, 4>}, {pipeline_mode = #tpu.pipeline_mode<synchronous>, transform_indices = @transform_7, window_bounds = array<i64: 1, 4>}, {pipeline_mode = #tpu.pipeline_mode<synchronous>, transform_indices = @transform_8, window_bounds = array<i64: 1, 4>}, {pipeline_mode = #tpu.pipeline_mode<synchronous>, transform_indices = @transform_9, window_bounds = array<i64: 4, 128>}, {pipeline_mode = #tpu.pipeline_mode<synchronous>, transform_indices = @transform_10, window_bounds = array<i64: 1, 128>}, {transform_indices = @transform_11, window_bounds = array<i64: 1024, 1024>}, {pipeline_mode = #tpu.pipeline_mode<synchronous>, transform_indices = @transform_12, window_bounds = array<i64: 128, 1024>}, {pipeline_mode = #tpu.pipeline_mode<synchronous>, transform_indices = @transform_13, window_bounds = array<i64: 1, 1024>}, {pipeline_mode = #tpu.pipeline_mode<synchronous>, transform_indices = @transform_14, window_bounds = array<i64: 1, 1024>}, {pipeline_mode = #tpu.pipeline_mode<synchronous>, transform_indices = @transform_15, window_bounds = array<i64: 1, 1024>}, {pipeline_mode = #tpu.pipeline_mode<synchronous>, transform_indices = @transform_16, window_bounds = array<i64: 1024, 128>}, {pipeline_mode = #tpu.pipeline_mode<synchronous>, transform_indices = @transform_17, window_bounds = array<i64: 1, 128>}, {pipeline_mode = #tpu.pipeline_mode<synchronous>, transform_indices = @transform_18, window_bounds = array<i64: 16, 128>}]} {
    %c0_i32 = arith.constant 0 : i32
    %0 = arith.cmpi eq, %arg0, %c0_i32 : i32
    %1 = arith.extui %0 : i1 to i32
    %c0_i32_0 = arith.constant 0 : i32
    %2 = arith.cmpi ne, %1, %c0_i32_0 : i32
    scf.if %2 {
      %c0_9 = arith.constant 0 : index
      %c0_10 = arith.constant 0 : index
      %12 = vector.load %arg1[%c0_9, %c0_10] : memref<16x35xbf16, #tpu.memory_space<vmem>>, vector<16x35xbf16>
      %c0_11 = arith.constant 0 : index
      %c0_12 = arith.constant 0 : index
      %13 = vector.load %arg5[%c0_11, %c0_12] : memref<35x1024xbf16, #tpu.memory_space<vmem>>, vector<35x1024xbf16>
      %cst_13 = arith.constant dense<0.000000e+00> : vector<16x1024xf32>
      %14 = tpu.matmul %12, %13, %cst_13 {dimension_numbers = #tpu.dot_dimension_numbers<[1], [0], [0], [1], [0, 0, 1, 1], [], []>} : vector<16x35xbf16>, vector<35x1024xbf16>, vector<16x1024xf32> -> vector<16x1024xf32>
      %c0_14 = arith.constant 0 : index
      %c0_15 = arith.constant 0 : index
      %15 = vector.load %arg14[%c0_14, %c0_15] : memref<1x1024xf32, #tpu.memory_space<vmem>>, vector<1x1024xf32>
      %16 = vector.broadcast %15 : vector<1x1024xf32> to vector<16x1024xf32>
      %17 = arith.addf %14, %16 : vector<16x1024xf32>
      %c0_16 = arith.constant 0 : index
      %c0_17 = arith.constant 0 : index
      %18 = vector.load %arg3[%c0_16, %c0_17] : memref<16x4xf32, #tpu.memory_space<vmem>>, vector<16x4xf32>
      %c0_18 = arith.constant 0 : index
      %c0_19 = arith.constant 0 : index
      %19 = vector.load %arg6[%c0_18, %c0_19] : memref<4x4xf32, #tpu.memory_space<vmem>>, vector<4x4xf32>
      %cst_20 = arith.constant dense<0.000000e+00> : vector<16x4xf32>
      %20 = tpu.matmul %18, %19, %cst_20 {dimension_numbers = #tpu.dot_dimension_numbers<[1], [0], [0], [1], [0, 0, 1, 1], [], []>} : vector<16x4xf32>, vector<4x4xf32>, vector<16x4xf32> -> vector<16x4xf32>
      %c0_21 = arith.constant 0 : index
      %c0_22 = arith.constant 0 : index
      %21 = vector.load %arg7[%c0_21, %c0_22] : memref<1x4xf32, #tpu.memory_space<vmem>>, vector<1x4xf32>
      %22 = vector.broadcast %21 : vector<1x4xf32> to vector<16x4xf32>
      %23 = arith.addf %20, %22 : vector<16x4xf32>
      %c0_23 = arith.constant 0 : index
      %c0_24 = arith.constant 0 : index
      %24 = vector.load %arg8[%c0_23, %c0_24] : memref<1x4xf32, #tpu.memory_space<vmem>>, vector<1x4xf32>
      %c0_25 = arith.constant 0 : index
      %c0_26 = arith.constant 0 : index
      %25 = vector.load %arg9[%c0_25, %c0_26] : memref<1x4xf32, #tpu.memory_space<vmem>>, vector<1x4xf32>
      %cst_27 = arith.constant dense<0.000000e+00> : vector<4xf32>
      %26 = vector.multi_reduction <add>, %23, %cst_27 [0] : vector<16x4xf32> to vector<4xf32>
      %27 = vector.shape_cast %26 : vector<4xf32> to vector<1x4xf32>
      %cst_28 = arith.constant 1.600000e+01 : f32
      %28 = vector.broadcast %cst_28 : f32 to vector<1x4xf32>
      %29 = arith.divf %27, %28 : vector<1x4xf32>
      %30 = vector.broadcast %29 : vector<1x4xf32> to vector<16x4xf32>
      %31 = arith.subf %23, %30 : vector<16x4xf32>
      %32 = arith.mulf %31, %31 : vector<16x4xf32>
      %cst_29 = arith.constant dense<0.000000e+00> : vector<4xf32>
      %33 = vector.multi_reduction <add>, %32, %cst_29 [0] : vector<16x4xf32> to vector<4xf32>
      %34 = vector.shape_cast %33 : vector<4xf32> to vector<1x4xf32>
      %cst_30 = arith.constant 1.600000e+01 : f32
      %35 = vector.broadcast %cst_30 : f32 to vector<1x4xf32>
      %36 = arith.divf %34, %35 : vector<1x4xf32>
      %37 = vector.broadcast %29 : vector<1x4xf32> to vector<16x4xf32>
      %38 = arith.subf %23, %37 : vector<16x4xf32>
      %cst_31 = arith.constant 9.99999974E-6 : f32
      %39 = vector.broadcast %cst_31 : f32 to vector<1x4xf32>
      %40 = arith.addf %36, %39 : vector<1x4xf32>
      %41 = math.rsqrt %40 : vector<1x4xf32>
      %42 = vector.broadcast %41 : vector<1x4xf32> to vector<16x4xf32>
      %43 = arith.mulf %38, %42 : vector<16x4xf32>
      %44 = vector.broadcast %24 : vector<1x4xf32> to vector<16x4xf32>
      %45 = arith.mulf %43, %44 : vector<16x4xf32>
      %46 = vector.broadcast %25 : vector<1x4xf32> to vector<16x4xf32>
      %47 = arith.addf %45, %46 : vector<16x4xf32>
      %c0_32 = arith.constant 0 : index
      %c0_33 = arith.constant 0 : index
      %48 = vector.load %arg10[%c0_32, %c0_33] : memref<4x128xf32, #tpu.memory_space<vmem>>, vector<4x128xf32>
      %cst_34 = arith.constant dense<0.000000e+00> : vector<16x128xf32>
      %49 = tpu.matmul %47, %48, %cst_34 {dimension_numbers = #tpu.dot_dimension_numbers<[1], [0], [0], [1], [0, 0, 1, 1], [], []>} : vector<16x4xf32>, vector<4x128xf32>, vector<16x128xf32> -> vector<16x128xf32>
      %c0_35 = arith.constant 0 : index
      %c0_36 = arith.constant 0 : index
      %50 = vector.load %arg11[%c0_35, %c0_36] : memref<1x128xf32, #tpu.memory_space<vmem>>, vector<1x128xf32>
      %51 = vector.broadcast %50 : vector<1x128xf32> to vector<16x128xf32>
      %52 = arith.addf %49, %51 : vector<16x128xf32>
      %cst_37 = arith.constant 0.000000e+00 : f32
      %53 = vector.broadcast %cst_37 : f32 to vector<16x128xf32>
      %54 = arith.maximumf %52, %53 : vector<16x128xf32>
      %c0_38 = arith.constant 0 : index
      %c0_39 = arith.constant 0 : index
      %55 = vector.load %arg4[%c0_38, %c0_39] : memref<16x128xf32, #tpu.memory_space<vmem>>, vector<16x128xf32>
      %56 = arith.mulf %54, %55 : vector<16x128xf32>
      %57 = arith.truncf %56 : vector<16x128xf32> to vector<16x128xbf16>
      %c0_40 = arith.constant 0 : index
      %c0_41 = arith.constant 0 : index
      %58 = vector.load %arg13[%c0_40, %c0_41] : memref<128x1024xbf16, #tpu.memory_space<vmem>>, vector<128x1024xbf16>
      %cst_42 = arith.constant dense<0.000000e+00> : vector<16x1024xf32>
      %59 = tpu.matmul %57, %58, %cst_42 {dimension_numbers = #tpu.dot_dimension_numbers<[1], [0], [0], [1], [0, 0, 1, 1], [], []>} : vector<16x128xbf16>, vector<128x1024xbf16>, vector<16x1024xf32> -> vector<16x1024xf32>
      %60 = arith.addf %17, %59 : vector<16x1024xf32>
      %c0_43 = arith.constant 0 : index
      %c0_44 = arith.constant 0 : index
      %61 = vector.load %arg20[%c0_43, %c0_44] : memref<16x1024xf32, #tpu.memory_space<vmem>>, vector<16x1024xf32>
      tpu.vector_store %arg20[%c0_43, %c0_44], %60 {strides = array<i32>} : memref<16x1024xf32, #tpu.memory_space<vmem>>, vector<16x1024xf32>,
    } else {
    }
    %c0 = arith.constant 0 : index
    %c0_1 = arith.constant 0 : index
    %3 = vector.load %arg20[%c0, %c0_1] : memref<16x1024xf32, #tpu.memory_space<vmem>>, vector<16x1024xf32>
    %c0_2 = arith.constant 0 : index
    %c0_3 = arith.constant 0 : index
    %4 = vector.load %arg2[%c0_2, %c0_3] : memref<16x1024xbf16, #tpu.memory_space<vmem>>, vector<16x1024xbf16>
    %c0_4 = arith.constant 0 : index
    %c0_5 = arith.constant 0 : index
    %5 = vector.load %arg12[%c0_4, %c0_5] : memref<1024x1024xbf16, #tpu.memory_space<vmem>>, vector<1024x1024xbf16>
    %cst = arith.constant dense<0.000000e+00> : vector<16x1024xf32>
    %6 = tpu.matmul %4, %5, %cst {dimension_numbers = #tpu.dot_dimension_numbers<[1], [0], [0], [1], [0, 0, 1, 1], [], []>} : vector<16x1024xbf16>, vector<1024x1024xbf16>, vector<16x1024xf32> -> vector<16x1024xf32>
    %7 = arith.addf %3, %6 : vector<16x1024xf32>
    %c0_6 = arith.constant 0 : index
    %c0_7 = arith.constant 0 : index
    %8 = vector.load %arg20[%c0_6, %c0_7] : memref<16x1024xf32, #tpu.memory_space<vmem>>, vector<16x1024xf32>
    tpu.vector_store %arg20[%c0_6, %c0_7], %7 {strides = array<i32>} : memref<16x1024xf32, #tpu.memory_space<vmem>>, vector<16x1024xf32>,
    %c1_i32 = arith.constant 1 : i32
    %9 = arith.cmpi eq, %arg0, %c1_i32 : i32
    %10 = arith.extui %9 : i1 to i32
    %c0_i32_8 = arith.constant 0 : i32
    %11 = arith.cmpi ne, %10, %c0_i32_8 : i32
    scf.if %11 {
      %c0_9 = arith.constant 0 : index
      %c0_10 = arith.constant 0 : index
      %12 = vector.load %arg20[%c0_9, %c0_10] : memref<16x1024xf32, #tpu.memory_space<vmem>>, vector<16x1024xf32>
      %c0_11 = arith.constant 0 : index
      %c0_12 = arith.constant 0 : index
      %13 = vector.load %arg15[%c0_11, %c0_12] : memref<1x1024xf32, #tpu.memory_space<vmem>>, vector<1x1024xf32>
      %c0_13 = arith.constant 0 : index
      %c0_14 = arith.constant 0 : index
      %14 = vector.load %arg16[%c0_13, %c0_14] : memref<1x1024xf32, #tpu.memory_space<vmem>>, vector<1x1024xf32>
      %cst_15 = arith.constant dense<0.000000e+00> : vector<1024xf32>
      %15 = vector.multi_reduction <add>, %12, %cst_15 [0] : vector<16x1024xf32> to vector<1024xf32>
      %16 = vector.shape_cast %15 : vector<1024xf32> to vector<1x1024xf32>
      %cst_16 = arith.constant 1.600000e+01 : f32
      %17 = vector.broadcast %cst_16 : f32 to vector<1x1024xf32>
      %18 = arith.divf %16, %17 : vector<1x1024xf32>
      %19 = vector.broadcast %18 : vector<1x1024xf32> to vector<16x1024xf32>
      %20 = arith.subf %12, %19 : vector<16x1024xf32>
      %21 = arith.mulf %20, %20 : vector<16x1024xf32>
      %cst_17 = arith.constant dense<0.000000e+00> : vector<1024xf32>
      %22 = vector.multi_reduction <add>, %21, %cst_17 [0] : vector<16x1024xf32> to vector<1024xf32>
      %23 = vector.shape_cast %22 : vector<1024xf32> to vector<1x1024xf32>
      %cst_18 = arith.constant 1.600000e+01 : f32
      %24 = vector.broadcast %cst_18 : f32 to vector<1x1024xf32>
      %25 = arith.divf %23, %24 : vector<1x1024xf32>
      %26 = vector.broadcast %18 : vector<1x1024xf32> to vector<16x1024xf32>
      %27 = arith.subf %12, %26 : vector<16x1024xf32>
      %cst_19 = arith.constant 9.99999974E-6 : f32
      %28 = vector.broadcast %cst_19 : f32 to vector<1x1024xf32>
      %29 = arith.addf %25, %28 : vector<1x1024xf32>
      %30 = math.rsqrt %29 : vector<1x1024xf32>
      %31 = vector.broadcast %30 : vector<1x1024xf32> to vector<16x1024xf32>
      %32 = arith.mulf %27, %31 : vector<16x1024xf32>
      %33 = vector.broadcast %13 : vector<1x1024xf32> to vector<16x1024xf32>
      %34 = arith.mulf %32, %33 : vector<16x1024xf32>
      %35 = vector.broadcast %14 : vector<1x1024xf32> to vector<16x1024xf32>
      %36 = arith.addf %34, %35 : vector<16x1024xf32>
      %cst_20 = arith.constant 0.000000e+00 : f32
      %37 = vector.broadcast %cst_20 : f32 to vector<16x1024xf32>
      %38 = arith.maximumf %36, %37 : vector<16x1024xf32>
      %39 = arith.truncf %38 : vector<16x1024xf32> to vector<16x1024xbf16>
      %c0_21 = arith.constant 0 : index
      %c0_22 = arith.constant 0 : index
      %40 = vector.load %arg17[%c0_21, %c0_22] : memref<1024x128xbf16, #tpu.memory_space<vmem>>, vector<1024x128xbf16>
      %cst_23 = arith.constant dense<0.000000e+00> : vector<16x128xf32>
      %41 = tpu.matmul %39, %40, %cst_23 {dimension_numbers = #tpu.dot_dimension_numbers<[1], [0], [0], [1], [0, 0, 1, 1], [], []>} : vector<16x1024xbf16>, vector<1024x128xbf16>, vector<16x128xf32> -> vector<16x128xf32>
      %c0_24 = arith.constant 0 : index
      %c0_25 = arith.constant 0 : index
      %42 = vector.load %arg18[%c0_24, %c0_25] : memref<1x128xf32, #tpu.memory_space<vmem>>, vector<1x128xf32>
      %43 = vector.broadcast %42 : vector<1x128xf32> to vector<16x128xf32>
      %44 = arith.addf %41, %43 : vector<16x128xf32>
      %c0_26 = arith.constant 0 : index
      %c0_27 = arith.constant 0 : index
      %45 = vector.load %arg19[%c0_26, %c0_27] : memref<16x128xf32, #tpu.memory_space<vmem>>, vector<16x128xf32>
      tpu.vector_store %arg19[%c0_26, %c0_27], %44 {strides = array<i32>} : memref<16x128xf32, #tpu.memory_space<vmem>>, vector<16x128xf32>,
    } else {
    }
    return
  }
  func.func @transform_0(%arg0: i32) -> (i32, i32) {
    %c0_i32 = arith.constant 0 : i32
    %c0_i32_0 = arith.constant 0 : i32
    %c0_i32_1 = arith.constant 0 : i32
    return %c0_i32, %c0_i32_0 : i32, i32
  }
  func.func @transform_1(%arg0: i32) -> (i32, i32) {
    %c0_i32 = arith.constant 0 : i32
    %c0_i32_0 = arith.constant 0 : i32
    return %c0_i32, %arg0 : i32, i32
  }
  func.func @transform_2(%arg0: i32) -> (i32, i32) {
    %c0_i32 = arith.constant 0 : i32
    %c0_i32_0 = arith.constant 0 : i32
    %c0_i32_1 = arith.constant 0 : i32
    return %c0_i32, %c0_i32_0 : i32, i32
  }
  func.func @transform_3(%arg0: i32) -> (i32, i32) {
    %c0_i32 = arith.constant 0 : i32
    %c0_i32_0 = arith.constant 0 : i32
    %c0_i32_1 = arith.constant 0 : i32
    return %c0_i32, %c0_i32_0 : i32, i32
  }
  func.func @transform_4(%arg0: i32) -> (i32, i32) {
    %c0_i32 = arith.constant 0 : i32
    %c0_i32_0 = arith.constant 0 : i32
    %c0_i32_1 = arith.constant 0 : i32
    return %c0_i32, %c0_i32_0 : i32, i32
  }
  func.func @transform_5(%arg0: i32) -> (i32, i32) {
    %c0_i32 = arith.constant 0 : i32
    %c0_i32_0 = arith.constant 0 : i32
    %c0_i32_1 = arith.constant 0 : i32
    return %c0_i32, %c0_i32_0 : i32, i32
  }
  func.func @transform_6(%arg0: i32) -> (i32, i32) {
    %c0_i32 = arith.constant 0 : i32
    %c0_i32_0 = arith.constant 0 : i32
    %c0_i32_1 = arith.constant 0 : i32
    return %c0_i32, %c0_i32_0 : i32, i32
  }
  func.func @transform_7(%arg0: i32) -> (i32, i32) {
    %c0_i32 = arith.constant 0 : i32
    %c0_i32_0 = arith.constant 0 : i32
    %c0_i32_1 = arith.constant 0 : i32
    return %c0_i32, %c0_i32_0 : i32, i32
  }
  func.func @transform_8(%arg0: i32) -> (i32, i32) {
    %c0_i32 = arith.constant 0 : i32
    %c0_i32_0 = arith.constant 0 : i32
    %c0_i32_1 = arith.constant 0 : i32
    return %c0_i32, %c0_i32_0 : i32, i32
  }
  func.func @transform_9(%arg0: i32) -> (i32, i32) {
    %c0_i32 = arith.constant 0 : i32
    %c0_i32_0 = arith.constant 0 : i32
    %c0_i32_1 = arith.constant 0 : i32
    return %c0_i32, %c0_i32_0 : i32, i32
  }
  func.func @transform_10(%arg0: i32) -> (i32, i32) {
    %c0_i32 = arith.constant 0 : i32
    %c0_i32_0 = arith.constant 0 : i32
    %c0_i32_1 = arith.constant 0 : i32
    return %c0_i32, %c0_i32_0 : i32, i32
  }
  func.func @transform_11(%arg0: i32) -> (i32, i32) {
    %c0_i32 = arith.constant 0 : i32
    %c0_i32_0 = arith.constant 0 : i32
    return %arg0, %c0_i32 : i32, i32
  }
  func.func @transform_12(%arg0: i32) -> (i32, i32) {
    %c0_i32 = arith.constant 0 : i32
    %c0_i32_0 = arith.constant 0 : i32
    %c0_i32_1 = arith.constant 0 : i32
    return %c0_i32, %c0_i32_0 : i32, i32
  }
  func.func @transform_13(%arg0: i32) -> (i32, i32) {
    %c0_i32 = arith.constant 0 : i32
    %c0_i32_0 = arith.constant 0 : i32
    %c0_i32_1 = arith.constant 0 : i32
    return %c0_i32, %c0_i32_0 : i32, i32
  }
  func.func @transform_14(%arg0: i32) -> (i32, i32) {
    %c0_i32 = arith.constant 0 : i32
    %c0_i32_0 = arith.constant 0 : i32
    %c0_i32_1 = arith.constant 0 : i32
    return %c0_i32, %c0_i32_0 : i32, i32
  }
  func.func @transform_15(%arg0: i32) -> (i32, i32) {
    %c0_i32 = arith.constant 0 : i32
    %c0_i32_0 = arith.constant 0 : i32
    %c0_i32_1 = arith.constant 0 : i32
    return %c0_i32, %c0_i32_0 : i32, i32
  }
  func.func @transform_16(%arg0: i32) -> (i32, i32) {
    %c0_i32 = arith.constant 0 : i32
    %c0_i32_0 = arith.constant 0 : i32
    %c0_i32_1 = arith.constant 0 : i32
    return %c0_i32, %c0_i32_0 : i32, i32
  }
  func.func @transform_17(%arg0: i32) -> (i32, i32) {
    %c0_i32 = arith.constant 0 : i32
    %c0_i32_0 = arith.constant 0 : i32
    %c0_i32_1 = arith.constant 0 : i32
    return %c0_i32, %c0_i32_0 : i32, i32
  }
  func.func @transform_18(%arg0: i32) -> (i32, i32) {
    %c0_i32 = arith.constant 0 : i32
    %c0_i32_0 = arith.constant 0 : i32
    %c0_i32_1 = arith.constant 0 : i32
    return %c0_i32, %c0_i32_0 : i32, i32
  }
}

</mosaic_0001>

<bundles_post_ra>
// kernel: object_classifier_mlp.1
= control target key start
LH: loop header
LB: loop body
LE: loop exit
PB: predicated region body
PF: predicated region fallthrough
CT: control target
= control target key end

     0   :  { %s10198_s0 = inlined_call_operand.vmem [shape: bf16[16,35], index: 0, kind: input, shape index: {}]   ;;  %s10199_s1 = inlined_call_operand.vmem [shape: bf16[16,2048], index: 1, kind: input, shape index: {}]   ;;  %s10200_s2 = inlined_call_operand.vmem [shape: f32[16,4], index: 2, kind: input, shape index: {}]   ;;  %s10201_s3 = inlined_call_operand.vmem [shape: f32[16,128], index: 3, kind: input, shape index: {}]   ;;  %s10202_s4 = inlined_call_operand.hbm [shape: bf16[35,1024], index: 4, kind: input, shape index: {}]   ;;  %s10203_s5 = inlined_call_operand.hbm [shape: f32[4,4], index: 5, kind: input, shape index: {}]   ;;  %s10204_s6 = inlined_call_operand.hbm [shape: f32[1,4], index: 6, kind: input, shape index: {}]   ;;  %s10205_s7 = inlined_call_operand.hbm [shape: f32[1,4], index: 7, kind: input, shape index: {}]   ;;  %s10206_s8 = inlined_call_operand.hbm [shape: f32[1,4], index: 8, kind: input, shape index: {}]   ;;  %s10207_s9 = inlined_call_operand.hbm [shape: f32[4,128], index: 9, kind: input, shape index: {}]   ;;  %s10208_s10 = inlined_call_operand.hbm [shape: f32[1,128], index: 10, kind: input, shape index: {}]   ;;  %s10209_s11 = inlined_call_operand.hbm [shape: bf16[2048,1024], index: 11, kind: input, shape index: {}]   ;;  %s10210_s12 = inlined_call_operand.hbm [shape: bf16[128,1024], index: 12, kind: input, shape index: {}]   ;;  %s10211_s13 = inlined_call_operand.hbm [shape: f32[1,1024], index: 13, kind: input, shape index: {}]   ;;  %s10212_s14 = inlined_call_operand.hbm [shape: f32[1,1024], index: 14, kind: input, shape index: {}]   ;;  %s10213_s15 = inlined_call_operand.hbm [shape: f32[1,1024], index: 15, kind: input, shape index: {}]   ;;  %s10214_s16 = inlined_call_operand.hbm [shape: bf16[1024,128], index: 16, kind: input, shape index: {}]   ;;  %s10215_s17 = inlined_call_operand.hbm [shape: f32[1,128], index: 17, kind: input, shape index: {}]   ;;  %s10216_s18 = inlined_call_operand.hbm [shape: f32[16,128], index: 18, kind: output, shape index: {}]  }
   0x1   :  { %10233 = sst [smem:[#allocation44_spill]] %s10198_s0 }
   0x2   :  { %10234 = sst [smem:[#allocation45_spill]] %s10199_s1 }
   0x3   :  { %10235 = sst [smem:[#allocation46_spill]] %s10200_s2 }
   0x4   :  { %10236 = sst [smem:[#allocation47_spill]] %s10201_s3 }
   0x5   :  { %10237 = sst [smem:[#allocation48_spill]] %s10203_s5 }
   0x6   :  { %10238 = sst [smem:[#allocation49_spill]] %s10205_s7 }
   0x7   :  { %10239 = sst [smem:[#allocation50_spill]] %s10216_s18 }
   0x8   :  { %23 = vsyncpa [#allocation5], 0 }
   0x9   :  { %24 = vsyncpa [#allocation8], 0 }
   0xa   :  { %25 = vsyncpa [#allocation11], 0 }
   0xb   :  { %26 = vsyncpa [#allocation14], 0 }
   0xc   :  { %27 = vsyncpa [#allocation17], 0 }
   0xd   :  { %29 = vsyncpa [#allocation17 + $0x1], 0 }
   0xe   :  { %30 = vsyncpa [#allocation20], 0 }
   0xf   :  { %31 = vsyncpa [#allocation23], 0 }
  0x10   :  { %32 = vsyncpa [#allocation26], 0 }
  0x11   :  { %33 = vsyncpa [#allocation6], 0  ;;  %s8916_s27 = smov 0   ;;  %s8918_s28 = smov 0  }
  0x12   :  { %s8920_s29 = smov 0   ;;  %s8922_s30 = smov 0  }
  0x13 LB: > { %10240 = sst [smem:[#allocation38_spill]] %s8786_s28  ;;  %s8935_s0 = sadd.s32 4294967295, %s8794_s30   ;;  %s8794_s30 = sphi %s8922_s30, %s10286_s30   ;;  %s8790_s29 = sphi %s8920_s29, %s10290_s29   ;;  %s8786_s28 = sphi %s8918_s28, %s10289_s28   ;;  %s8782_s27 = sphi %s8916_s27, %s10287_s27  }
  0x14   : > { %10241 = sst [smem:[#allocation39_spill]] %s8935_s0  ;;  %s8938_s19 = sadd.s32 1, %s8794_s30  }
  0x15   : > { %10242 = sst [smem:[#allocation40_spill]] %s8938_s19  ;;  %s64_s1 = ssub.s32 %s8794_s30, %s8938_s19 }
  0x16   : > { %s67_s20 = sadd.s32 1, %s8790_s29  ;;  %p65_p0 = scmp.eq.s32.totalorder %s64_s1, 0 }
  0x17   : > { %p74_p1 = scmp.ne.s32.totalorder %s8790_s29, %s8786_s28  ;;  %p75_p2 = scmp.eq.s32.totalorder %s8794_s30, 0 }
  0x18   : > { %p295_p3 = scmp.ne.s32.totalorder %s8786_s28, %s8782_s27  ;;  %p10227_p5 = scmp.eq.s32.totalorder %s8935_s0, 0 }
  0x19   : > { %s8948_s21 = scalar_select %p65_p0, %s8790_s29, %s67_s20  }
  0x1a   : > { %p8950_p4 = por %p75_p2, %p74_p1  ;;  %p7114_p6 = scmp.ge.s32.totalorder %s8794_s30, 1 }
  0x1b   : > { %10243 = sst [smem:[#allocation41_spill]] %s8948_s21  ;;  %p453_p7 = scmp.lt.s32.totalorder %s8794_s30, 3 }
  0x1c   : > { %s10244_s22 = scalar_select %p8950_p4, 1, 0 }
  0x1d   : > { %p8959_p8 = por %p10227_p5, %p295_p3  ;;  %p8964_p10 = pnand %p7114_p6, %p453_p7 }
  0x1e   : > { %s8796_s24 = smov [#allocation7]   ;;  %s8797_s26 = smov [#allocation10]  }
  0x1f   : > { %s10245_s2 = scalar_select %p8959_p8, 1, 0 }
  0x20   : > { %s10247_s23 = scalar_select %p8964_p10, 1, 0 }
  0x21   : > { %10246 = sst [smem:[#allocation42_spill]] %s10245_s2  ;;  %s488_s25 = sshll.u32 %s8796_s24, 4  ;;  %s489_s25 = int_to_ptr.vmem [resolvable:$true] %s488_s25 }
  0x22   : > { %10248 = sst [smem:[#allocation43_spill]] %s10247_s23  ;;  %p8091_p11 = pneg %p8964_p10 }
  0x23   : > { %s510_s27 = sshll.u32 %s8797_s26, 4  ;;  %s8798_s20 = smov [#allocation13]   ;;  %s8976_s27 = int_to_ptr.vmem [resolvable:$true] %s510_s27 }
  0x24   : > { %p8972_p12 = pnand %p8091_p11, %p10227_p5  ;;  %s532_s21 = sshll.u32 %s8798_s20, 4  ;;  %s8978_s21 = int_to_ptr.vmem [resolvable:$true] %s532_s21 }
  0x25   : > { %s10250_s5 = sld [smem:[#allocation48_spill]] }
  0x26   : > { %p8988_p0 = pneg %p8972_p12 }
  0x2b   : > { %s8306_s24 = scalar_lea.hbm %s10250_s5, 64 }
  0x2c   : > { %p8307_p13 = scmp.ne.s32.totalorder %s10250_s5, %s8306_s24  ;;  %p8313_p3 = scmp.lt.u32.totalorder %s8306_s24, %s10250_s5 }
  0x2e   : > { %p8309_p1 = pnand %p8988_p0, %p8307_p13 }
  0x30   : > { %p8310_p2 = pneg %p8309_p1 }
  0x32   : > { %p8315_p6 = pnand %p8313_p3, %p8310_p2 }
  0x34   : > { %8318 = shalt.err (!%p8315_p6)
}
  0x35   : > { %s8319_s18 = scalar_lea.vmem %s489_s25, 64  ;;  %p8327_p5 = scmp.lt.s32.totalorder %s489_s25, %s489_s25 }
  0x36   : > { %p8320_p7 = scmp.ne.s32.totalorder %s489_s25, %s8319_s18  ;;  %p8328_p8 = scmp.lt.s32.totalorder %s8319_s18, %s8319_s18 }
  0x38   : > { %p8322_p11 = pnand %p8320_p7, %p8988_p0  ;;  %p8329_p10 = por %p8328_p8, %p8327_p5 }
  0x3a   : > { %p8323_p9 = pneg %p8322_p11 }
  0x3c   : > { %p8330_p4 = pnand %p8329_p10, %p8323_p9 }
  0x3e   : > { %8333 = shalt.err (!%p8330_p4)
}
  0x3f   : > { %8097 = dma.hbm_to_vmem [thread:$0]  (!%p8972_p12), %s10250_s5, 64, %s489_s25, [#allocation8]  }
  0x40   : > { %s10252_s7 = sld [smem:[#allocation49_spill]] }
  0x46   : > { %s8334_s24 = scalar_lea.hbm %s10252_s7, 16 }
  0x47   : > { %p8335_p13 = scmp.ne.s32.totalorder %s10252_s7, %s8334_s24  ;;  %p8341_p4 = scmp.lt.u32.totalorder %s8334_s24, %s10252_s7 }
  0x49   : > { %p8337_p1 = pnand %p8335_p13, %p8988_p0 }
  0x4b   : > { %p8338_p5 = pneg %p8337_p1 }
  0x4d   : > { %p8343_p8 = pnand %p8341_p4, %p8338_p5 }
  0x4f   : > { %8346 = shalt.err (!%p8343_p8)
}
  0x50   : > { %s8347_s25 = scalar_lea.vmem %s8976_s27, 16  ;;  %s8354_s28 = scalar_lea.vmem %s8976_s27, 32 }
  0x51   : > { %p8348_p9 = scmp.ne.s32.totalorder %s8976_s27, %s8347_s25  ;;  %p8355_p3 = scmp.lt.s32.totalorder %s8976_s27, %s8976_s27 }
  0x52   : > { %p8356_p6 = scmp.lt.s32.totalorder %s8354_s28, %s8347_s25 }
  0x53   : > { %p8350_p10 = pnand %p8348_p9, %p8988_p0 }
  0x54   : > { %p8357_p7 = por %p8356_p6, %p8355_p3 }
  0x55   : > { %p8351_p2 = pneg %p8350_p10 }
  0x57   : > { %p8358_p11 = pnand %p8357_p7, %p8351_p2 }
  0x59   : > { %8361 = shalt.err (!%p8358_p11)
}
  0x5a   : > { %8103 = dma.hbm_to_vmem [thread:$0]  (!%p8972_p12), %s10252_s7, 16, %s8976_s27, [#allocation11]  }
  0x5b   : > { %s8362_s2 = scalar_lea.hbm %s10207_s9, 64 }
  0x5c   : > { %p8363_p13 = scmp.ne.s32.totalorder %s10207_s9, %s8362_s2  ;;  %p8369_p4 = scmp.lt.u32.totalorder %s8362_s2, %s10207_s9 }
  0x5e   : > { %p8365_p1 = pnand %p8363_p13, %p8988_p0 }
  0x60   : > { %p8366_p5 = pneg %p8365_p1 }
  0x62   : > { %p8371_p8 = pnand %p8369_p4, %p8366_p5 }
  0x64   : > { %8374 = shalt.err (!%p8371_p8)
}
  0x65   : > { %s8375_s27 = scalar_lea.vmem %s8978_s21, 64  ;;  %p8383_p3 = scmp.lt.s32.totalorder %s8978_s21, %s8978_s21 }
  0x66   : > { %p8376_p9 = scmp.ne.s32.totalorder %s8978_s21, %s8375_s27  ;;  %p8384_p6 = scmp.lt.s32.totalorder %s8375_s27, %s8375_s27 }
  0x68   : > { %p8378_p10 = pnand %p8376_p9, %p8988_p0  ;;  %p8385_p7 = por %p8384_p6, %p8383_p3 }
  0x6a   : > { %p8379_p2 = pneg %p8378_p10 }
  0x6c   : > { %p8386_p11 = pnand %p8385_p7, %p8379_p2 }
  0x6e   : > { %8389 = shalt.err (!%p8386_p11)
}
  0x6f   : > { %8109 = dma.hbm_to_vmem [thread:$0]  (!%p8972_p12), %s10207_s9, 64, %s8978_s21, [#allocation14]  }
  0x70   : > { %s8799_s3 = smov [#allocation19]   ;;  %s8800_s0 = smov [#allocation22]  }
  0x71   : > { %s567_s19 = sshll.u32 %s8799_s3, 4  ;;  %s589_s2 = sshll.u32 %s8800_s0, 4  ;;  %s568_s19 = int_to_ptr.vmem [resolvable:$true] %s567_s19  ;;  %s590_s2 = int_to_ptr.vmem [resolvable:$true] %s589_s2 }
  0x72   : > { %s8390_s18 = scalar_lea.hbm %s10211_s13, 128 }
  0x73   : > { %p8391_p13 = scmp.ne.s32.totalorder %s10211_s13, %s8390_s18  ;;  %p8397_p4 = scmp.lt.u32.totalorder %s8390_s18, %s10211_s13 }
  0x75   : > { %p8393_p1 = pnand %p8391_p13, %p8988_p0 }
  0x77   : > { %p8394_p5 = pneg %p8393_p1 }
  0x79   : > { %p8399_p8 = pnand %p8397_p4, %p8394_p5 }
  0x7b   : > { %8402 = shalt.err (!%p8399_p8)
}
  0x7c   : > { %s8403_s21 = scalar_lea.vmem %s568_s19, 128  ;;  %p8411_p3 = scmp.lt.s32.totalorder %s568_s19, %s568_s19 }
  0x7d   : > { %p8404_p9 = scmp.ne.s32.totalorder %s568_s19, %s8403_s21  ;;  %p8412_p6 = scmp.lt.s32.totalorder %s8403_s21, %s8403_s21 }
  0x7f   : > { %p8406_p10 = pnand %p8404_p9, %p8988_p0  ;;  %p8413_p7 = por %p8412_p6, %p8411_p3 }
  0x81   : > { %p8407_p2 = pneg %p8406_p10 }
  0x83   : > { %p8414_p11 = pnand %p8413_p7, %p8407_p2 }
  0x85   : > { %8417 = shalt.err (!%p8414_p11)
}
  0x86   : > { %8118 = dma.hbm_to_vmem [thread:$0]  (!%p8972_p12), %s10211_s13, 128, %s568_s19, [#allocation20]  }
  0x87   : > { %s8418_s24 = scalar_lea.hbm %s10213_s15, 128 }
  0x88   : > { %p8419_p13 = scmp.ne.s32.totalorder %s10213_s15, %s8418_s24  ;;  %p8425_p4 = scmp.lt.u32.totalorder %s8418_s24, %s10213_s15 }
  0x8a   : > { %p8421_p1 = pnand %p8419_p13, %p8988_p0 }
  0x8c   : > { %p8422_p5 = pneg %p8421_p1 }
  0x8e   : > { %p8427_p8 = pnand %p8425_p4, %p8422_p5 }
  0x90   : > { %8430 = shalt.err (!%p8427_p8)
}
  0x91   : > { %s8431_s28 = scalar_lea.vmem %s590_s2, 128  ;;  %p8439_p3 = scmp.lt.s32.totalorder %s590_s2, %s590_s2 }
  0x92   : > { %p8432_p9 = scmp.ne.s32.totalorder %s590_s2, %s8431_s28  ;;  %p8440_p6 = scmp.lt.s32.totalorder %s8431_s28, %s8431_s28 }
  0x94   : > { %p8434_p10 = pnand %p8432_p9, %p8988_p0  ;;  %p8441_p7 = por %p8440_p6, %p8439_p3 }
  0x96   : > { %p8435_p2 = pneg %p8434_p10 }
  0x98   : > { %p8442_p11 = pnand %p8441_p7, %p8435_p2 }
  0x9a   : > { %8445 = shalt.err (!%p8442_p11)
}
  0x9b   : > { %8124 = dma.hbm_to_vmem [thread:$0]  (!%p8972_p12), %s10213_s15, 128, %s590_s2, [#allocation23]  }
  0x9c   : > { %s8801_s23 = smov [#allocation4]   ;;  %s8446_s24 = scalar_lea.hbm %s10202_s4, 2560 }
  0x9d   : > { %s474_s3 = sshll.u32 %s8801_s23, 4  ;;  %p8447_p13 = scmp.ne.s32.totalorder %s10202_s4, %s8446_s24  ;;  %s475_s3 = int_to_ptr.vmem [resolvable:$true] %s474_s3 }
  0x9e   : > { %p8453_p4 = scmp.lt.u32.totalorder %s8446_s24, %s10202_s4 }
  0x9f   : > { %p8449_p1 = pnand %p8447_p13, %p8988_p0 }
  0xa1   : > { %p8450_p5 = pneg %p8449_p1 }
  0xa3   : > { %p8455_p8 = pnand %p8453_p4, %p8450_p5 }
  0xa5   : > { %8458 = shalt.err (!%p8455_p8)
}
  0xa6   : > { %s8459_s2 = scalar_lea.vmem %s475_s3, 2560  ;;  %p8467_p3 = scmp.lt.s32.totalorder %s475_s3, %s475_s3 }
  0xa7   : > { %p8460_p9 = scmp.ne.s32.totalorder %s475_s3, %s8459_s2  ;;  %p8468_p6 = scmp.lt.s32.totalorder %s8459_s2, %s8459_s2 }
  0xa9   : > { %p8462_p10 = pnand %p8460_p9, %p8988_p0  ;;  %p8469_p7 = por %p8468_p6, %p8467_p3 }
  0xab   : > { %p8463_p2 = pneg %p8462_p10 }
  0xad   : > { %p8470_p11 = pnand %p8469_p7, %p8463_p2 }
  0xaf   : > { %8473 = shalt.err (!%p8470_p11)
}
  0xb0   : > { %s8802_s28 = smov 512   ;;  %s8803_s19 = smov 32  }
  0xb1   : > { %8094 = dma.hbm_to_vmem [thread:$0]  (!%p8972_p12), %s10202_s4, 2560, %s475_s3, [#allocation5], %s8802_s28, %s8802_s28, %s8803_s19  }
  0xb2   : > { %s8804_s5 = smov [#allocation9]   ;;  %s8805_s24 = smov [#allocation12]  }
  0xb3   : > { %s499_s0 = sshll.u32 %s8804_s5, 4  ;;  %s521_s20 = sshll.u32 %s8805_s24, 4  ;;  %s500_s0 = int_to_ptr.vmem [resolvable:$true] %s499_s0  ;;  %s9108_s20 = int_to_ptr.vmem [resolvable:$true] %s521_s20 }
  0xb4   : > { %s8474_s27 = scalar_lea.hbm %s10204_s6, 16 }
  0xb5   : > { %p8475_p13 = scmp.ne.s32.totalorder %s10204_s6, %s8474_s27  ;;  %p8481_p4 = scmp.lt.u32.totalorder %s8474_s27, %s10204_s6 }
  0xb7   : > { %p8477_p1 = pnand %p8475_p13, %p8988_p0 }
  0xb9   : > { %p8478_p5 = pneg %p8477_p1 }
  0xbb   : > { %p8483_p8 = pnand %p8481_p4, %p8478_p5 }
  0xbd   : > { %8486 = shalt.err (!%p8483_p8)
}
  0xbe   : > { %s8487_s23 = scalar_lea.vmem %s500_s0, 16  ;;  %s8494_s5 = scalar_lea.vmem %s500_s0, 32 }
  0xbf   : > { %p8488_p9 = scmp.ne.s32.totalorder %s500_s0, %s8487_s23  ;;  %p8495_p3 = scmp.lt.s32.totalorder %s500_s0, %s500_s0 }
  0xc0   : > { %p8496_p6 = scmp.lt.s32.totalorder %s8494_s5, %s8487_s23 }
  0xc1   : > { %p8490_p10 = pnand %p8488_p9, %p8988_p0 }
  0xc2   : > { %p8497_p7 = por %p8496_p6, %p8495_p3 }
  0xc3   : > { %p8491_p2 = pneg %p8490_p10 }
  0xc5   : > { %p8498_p11 = pnand %p8497_p7, %p8491_p2 }
  0xc7   : > { %8501 = shalt.err (!%p8498_p11)
}
  0xc8   : > { %8100 = dma.hbm_to_vmem [thread:$0]  (!%p8972_p12), %s10204_s6, 16, %s500_s0, [#allocation8]  }
  0xc9   : > { %s8502_s27 = scalar_lea.hbm %s10206_s8, 16 }
  0xca   : > { %p8503_p13 = scmp.ne.s32.totalorder %s10206_s8, %s8502_s27  ;;  %p8509_p4 = scmp.lt.u32.totalorder %s8502_s27, %s10206_s8 }
  0xcc   : > { %p8505_p1 = pnand %p8503_p13, %p8988_p0 }
  0xce   : > { %p8506_p5 = pneg %p8505_p1 }
  0xd0   : > { %p8511_p8 = pnand %p8509_p4, %p8506_p5 }
  0xd2   : > { %8514 = shalt.err (!%p8511_p8)
}
  0xd3   : > { %s8515_s0 = scalar_lea.vmem %s9108_s20, 16  ;;  %s8522_s5 = scalar_lea.vmem %s9108_s20, 32 }
  0xd4   : > { %p8516_p9 = scmp.ne.s32.totalorder %s9108_s20, %s8515_s0  ;;  %p8523_p3 = scmp.lt.s32.totalorder %s9108_s20, %s9108_s20 }
  0xd5   : > { %p8524_p6 = scmp.lt.s32.totalorder %s8522_s5, %s8515_s0 }
  0xd6   : > { %p8518_p10 = pnand %p8516_p9, %p8988_p0 }
  0xd7   : > { %p8525_p7 = por %p8524_p6, %p8523_p3 }
  0xd8   : > { %p8519_p2 = pneg %p8518_p10 }
  0xda   : > { %p8526_p11 = pnand %p8525_p7, %p8519_p2 }
  0xdc   : > { %8529 = shalt.err (!%p8526_p11)
}
  0xdd   : > { %8106 = dma.hbm_to_vmem [thread:$0]  (!%p8972_p12), %s10206_s8, 16, %s9108_s20, [#allocation11]  }
  0xde   : > { %s8806_s18 = smov [#allocation15]   ;;  %s8807_s27 = smov [#allocation18]  }
  0xdf   : > { %s543_s25 = sshll.u32 %s8806_s18, 4  ;;  %s553_s2 = sshll.u32 %s8807_s27, 4  ;;  %s544_s25 = int_to_ptr.vmem [resolvable:$true] %s543_s25  ;;  %s9152_s2 = int_to_ptr.vmem [resolvable:$true] %s553_s2 }
  0xe0   : > { %s8530_s23 = scalar_lea.hbm %s10208_s10, 16 }
  0xe1   : > { %p8531_p13 = scmp.ne.s32.totalorder %s10208_s10, %s8530_s23  ;;  %p8537_p4 = scmp.lt.u32.totalorder %s8530_s23, %s10208_s10 }
  0xe3   : > { %p8533_p1 = pnand %p8531_p13, %p8988_p0 }
  0xe5   : > { %p8534_p5 = pneg %p8533_p1 }
  0xe7   : > { %p8539_p8 = pnand %p8537_p4, %p8534_p5 }
  0xe9   : > { %8542 = shalt.err (!%p8539_p8)
}
  0xea   : > { %s8543_s24 = scalar_lea.vmem %s544_s25, 16  ;;  %s8550_s18 = scalar_lea.vmem %s544_s25, 32 }
  0xeb   : > { %p8544_p9 = scmp.ne.s32.totalorder %s544_s25, %s8543_s24  ;;  %p8551_p3 = scmp.lt.s32.totalorder %s544_s25, %s544_s25 }
  0xec   : > { %p8552_p6 = scmp.lt.s32.totalorder %s8550_s18, %s8543_s24 }
  0xed   : > { %p8546_p10 = pnand %p8544_p9, %p8988_p0 }
  0xee   : > { %p8553_p7 = por %p8552_p6, %p8551_p3 }
  0xef   : > { %p8547_p2 = pneg %p8546_p10 }
  0xf1   : > { %p8554_p11 = pnand %p8553_p7, %p8547_p2 }
  0xf3   : > { %8557 = shalt.err (!%p8554_p11)
}
  0xf4   : > { %8112 = dma.hbm_to_vmem [thread:$0]  (!%p8972_p12), %s10208_s10, 16, %s544_s25, [#allocation14]  }
  0xf5   : > { %s8558_s0 = scalar_lea.hbm %s10210_s12, 8192 }
  0xf6   : > { %p8559_p13 = scmp.ne.s32.totalorder %s10210_s12, %s8558_s0  ;;  %p8565_p4 = scmp.lt.u32.totalorder %s8558_s0, %s10210_s12 }
  0xf8   : > { %p8561_p1 = pnand %p8559_p13, %p8988_p0 }
  0xfa   : > { %p8562_p5 = pneg %p8561_p1 }
  0xfc   : > { %p8567_p8 = pnand %p8565_p4, %p8562_p5 }
  0xfe   : > { %8570 = shalt.err (!%p8567_p8)
}
  0xff   : > { %s8571_s25 = scalar_lea.vmem %s9152_s2, 8192  ;;  %p8579_p3 = scmp.lt.s32.totalorder %s9152_s2, %s9152_s2 }
 0x100   : > { %p8572_p9 = scmp.ne.s32.totalorder %s9152_s2, %s8571_s25  ;;  %p8580_p6 = scmp.lt.s32.totalorder %s8571_s25, %s8571_s25 }
 0x102   : > { %p8574_p10 = pnand %p8572_p9, %p8988_p0  ;;  %p8581_p7 = por %p8580_p6, %p8579_p3 }
 0x104   : > { %p8575_p2 = pneg %p8574_p10 }
 0x106   : > { %p8582_p11 = pnand %p8581_p7, %p8575_p2 }
 0x108   : > { %8585 = shalt.err (!%p8582_p11)
}
 0x109   : > { %8115 = dma.hbm_to_vmem [thread:$0]  (!%p8972_p12), %s10210_s12, 8192, %s9152_s2, [#allocation17], %s8802_s28, %s8802_s28, %s8803_s19  }
 0x10a   : > { %s8808_s21 = smov [#allocation21]   ;;  %s8809_s23 = smov [#allocation24]  }
 0x10b   : > { %s578_s3 = sshll.u32 %s8808_s21, 4  ;;  %s599_s0 = sshll.u32 %s8809_s23, 4  ;;  %s579_s3 = int_to_ptr.vmem [resolvable:$true] %s578_s3  ;;  %s9198_s0 = int_to_ptr.vmem [resolvable:$true] %s599_s0 }
 0x10c   : > { %s8586_s20 = scalar_lea.hbm %s10212_s14, 128 }
 0x10d   : > { %p8587_p13 = scmp.ne.s32.totalorder %s10212_s14, %s8586_s20  ;;  %p8593_p4 = scmp.lt.u32.totalorder %s8586_s20, %s10212_s14 }
 0x10f   : > { %p8589_p1 = pnand %p8587_p13, %p8988_p0 }
 0x111   : > { %p8590_p5 = pneg %p8589_p1 }
 0x113   : > { %p8595_p8 = pnand %p8593_p4, %p8590_p5 }
 0x115   : > { %8598 = shalt.err (!%p8595_p8)
}
 0x116   : > { %s8599_s19 = scalar_lea.vmem %s579_s3, 128  ;;  %p8607_p3 = scmp.lt.s32.totalorder %s579_s3, %s579_s3 }
 0x117   : > { %p8600_p9 = scmp.ne.s32.totalorder %s579_s3, %s8599_s19  ;;  %p8608_p6 = scmp.lt.s32.totalorder %s8599_s19, %s8599_s19 }
 0x119   : > { %p8602_p10 = pnand %p8600_p9, %p8988_p0  ;;  %p8609_p7 = por %p8608_p6, %p8607_p3 }
 0x11b   : > { %p8603_p2 = pneg %p8602_p10 }
 0x11d   : > { %p8610_p11 = pnand %p8609_p7, %p8603_p2 }
 0x11f   : > { %8613 = shalt.err (!%p8610_p11)
}
 0x120   : > { %8121 = dma.hbm_to_vmem [thread:$0]  (!%p8972_p12), %s10212_s14, 128, %s579_s3, [#allocation20]  }
 0x121   : > { %s8614_s5 = scalar_lea.hbm %s10214_s16, 8192 }
 0x122   : > { %p8615_p13 = scmp.ne.s32.totalorder %s10214_s16, %s8614_s5  ;;  %p8621_p4 = scmp.lt.u32.totalorder %s8614_s5, %s10214_s16 }
 0x124   : > { %p8617_p1 = pnand %p8615_p13, %p8988_p0 }
 0x126   : > { %p8618_p5 = pneg %p8617_p1 }
 0x128   : > { %p8623_p8 = pnand %p8621_p4, %p8618_p5 }
 0x12a   : > { %8626 = shalt.err (!%p8623_p8)
}
 0x12b   : > { %s8627_s3 = scalar_lea.vmem %s9198_s0, 8192  ;;  %p8635_p3 = scmp.lt.s32.totalorder %s9198_s0, %s9198_s0 }
 0x12c   : > { %p8628_p9 = scmp.ne.s32.totalorder %s9198_s0, %s8627_s3  ;;  %p8636_p6 = scmp.lt.s32.totalorder %s8627_s3, %s8627_s3 }
 0x12e   : > { %p8630_p10 = pnand %p8628_p9, %p8988_p0  ;;  %p8637_p7 = por %p8636_p6, %p8635_p3 }
 0x130   : > { %p8631_p2 = pneg %p8630_p10 }
 0x132   : > { %p8638_p11 = pnand %p8637_p7, %p8631_p2 }
 0x134   : > { %8641 = shalt.err (!%p8638_p11)
}
 0x135   : > { %s8810_s18 = smov 64   ;;  %s8811_s28 = smov 4  }
 0x136   : > { %8127 = dma.hbm_to_vmem [thread:$0]  (!%p8972_p12), %s10214_s16, 8192, %s9198_s0, [#allocation23], %s8810_s18, %s8810_s18, %s8811_s28  }
 0x137   : > { %s8812_s27 = smov [#allocation25]   ;;  %s8642_s7 = scalar_lea.hbm %s10215_s17, 16 }
 0x138   : > { %s613_s21 = sshll.u32 %s8812_s27, 4  ;;  %p8643_p13 = scmp.ne.s32.totalorder %s10215_s17, %s8642_s7  ;;  %s614_s21 = int_to_ptr.vmem [resolvable:$true] %s613_s21 }
 0x139   : > { %p8649_p4 = scmp.lt.u32.totalorder %s8642_s7, %s10215_s17 }
 0x13a   : > { %p8645_p1 = pnand %p8643_p13, %p8988_p0 }
 0x13c   : > { %p8646_p5 = pneg %p8645_p1 }
 0x13e   : > { %p8651_p8 = pnand %p8649_p4, %p8646_p5 }
 0x140   : > { %8654 = shalt.err (!%p8651_p8)
}
 0x141   : > { %s8655_s0 = scalar_lea.vmem %s614_s21, 16  ;;  %s8662_s18 = scalar_lea.vmem %s614_s21, 32 }
 0x142   : > { %p8656_p9 = scmp.ne.s32.totalorder %s614_s21, %s8655_s0  ;;  %p8663_p3 = scmp.lt.s32.totalorder %s614_s21, %s614_s21 }
 0x143   : > { %p8664_p6 = scmp.lt.s32.totalorder %s8662_s18, %s8655_s0 }
 0x144   : > { %p8658_p10 = pnand %p8656_p9, %p8988_p0 }
 0x145   : > { %p8665_p7 = por %p8664_p6, %p8663_p3 }
 0x146   : > { %p8659_p2 = pneg %p8658_p10 }
 0x148   : > { %p8666_p11 = pnand %p8665_p7, %p8659_p2 }
 0x14a   : > { %8669 = shalt.err (!%p8666_p11)
}
 0x14b   : > { %8130 = dma.hbm_to_vmem [thread:$0]  (!%p8972_p12), %s10215_s17, 16, %s614_s21, [#allocation26]  }
 0x14c   : > { %p7128_p13 = scmp.ge.s32.totalorder %s8794_s30, 2 }
 0x14d   : > { %p10253_p1 = scmp.ne.s32.totalorder (!%p7128_p13), %s10244_s22, 0 }
 0x14e   : > { %620 = sbr.rel (%p7128_p13) target bundleno = 382 (0x17e), region = 80 }
 0x155   : > { %623 = sbr.rel (!%p10253_p1) target bundleno = 355 (0x163), region = 84  ;;  %s625_s26 = sand.u32 (%p10253_p1), 1, %s8790_s29  }
 0x156   : > { %s7846_s2 = sshll.u32 (%p10253_p1), %s8794_s30, 5  ;;  %s7129_s27 = sshll.u32 (%p10253_p1), %s625_s26, 6 }
 0x157   : > { %s10254_s7 = sld [smem:[#allocation45_spill]] (%p10253_p1)  ;;  %s627_s1 = scalar_lea.vmem (%p10253_p1), [#allocation3], %s7129_s27 }
 0x15d   : > { %s630_s20 = scalar_lea.vmem %s10254_s7, %s7846_s2 }
 0x15e   : > { %v643_v0 = vld [vmem:[%s630_s20] sm:$0xff]  ;;  %v645_v1 = vld [vmem:[%s630_s20 + $0x8] sm:$0xff]  ;;  %v647_v2 = vld [vmem:[%s630_s20 + $0x10] sm:$0xff] }
 0x15f   : > { %644 = vst [vmem:[%s627_s1] sm:$0xff] %v643_v0  ;;  %646 = vst [vmem:[%s627_s1 + $0x8] sm:$0xff] %v645_v1  ;;  %v649_v3 = vld [vmem:[%s630_s20 + $0x18] sm:$0xff]  ;;  %v651_v4 = vld [vmem:[%s630_s20 + $0x40] sm:$0xff] }
 0x160   : > { %648 = vst [vmem:[%s627_s1 + $0x10] sm:$0xff] %v647_v2  ;;  %v653_v5 = vld [vmem:[%s630_s20 + $0x48] sm:$0xff]  ;;  %650 = vst [vmem:[%s627_s1 + $0x18] sm:$0xff] %v649_v3  ;;  %v655_v6 = vld [vmem:[%s630_s20 + $0x50] sm:$0xff] }
 0x161   : > { %652 = vst [vmem:[%s627_s1 + $0x20] sm:$0xff] %v651_v4  ;;  %654 = vst [vmem:[%s627_s1 + $0x28] sm:$0xff] %v653_v5  ;;  %v657_v7 = vld [vmem:[%s630_s20 + $0x58] sm:$0xff] }
 0x162   : > { %656 = vst [vmem:[%s627_s1 + $0x30] sm:$0xff] %v655_v6  ;;  %658 = vst [vmem:[%s627_s1 + $0x38] sm:$0xff] %v657_v7 }
 0x163 PF: > { %s665_s21 = sand.u32 1, %s8794_s30   ;;  %s667_s24 = sand.u32 1, %s8790_s29  }
 0x164   : > { %s7132_s25 = sshll.u32 %s667_s24, 12  ;;  %s7848_s3 = sshll.u32 %s8794_s30, 16 }
 0x165   : > { %s9273_s28 = scalar_lea.hbm %s10209_s11, %s7848_s3  ;;  %s669_s19 = scalar_lea.vmem [#allocation16], %s7132_s25 }
 0x166   : > { %s677_s26 = sshll.u32 %s669_s19, 4  ;;  %s9277_s2 = scalar_lea.sflag [#allocation17], %s665_s21  ;;  %s9275_s26 = int_to_ptr.vmem [resolvable:$true] %s677_s26 }
 0x167   : > { %s8670_s27 = scalar_lea.hbm %s9273_s28, 65536  ;;  %p10255_p0 = scmp.ne.s32.totalorder %s10244_s22, 0 }
 0x168   : > { %p8671_p12 = scmp.ne.s32.totalorder %s9273_s28, %s8670_s27  ;;  %s8674_s5 = scalar_lea.hbm %s10209_s11, 131072 }
 0x169   : > { %p8675_p8 = scmp.lt.u32.totalorder %s9273_s28, %s10209_s11  ;;  %p8676_p9 = scmp.lt.u32.totalorder %s8674_s5, %s8670_s27 }
 0x16a   : > { %p8672_p5 = pnand %p8671_p12, %p10255_p0  ;;  %p8678_p2 = scmp.lt.u32.totalorder %s8670_s27, %s9273_s28 }
 0x16b   : > { %p8677_p10 = por %p8676_p9, %p8675_p8 }
 0x16c   : > { %p8673_p4 = pneg %p8672_p5 }
 0x16d   : > { %p8679_p3 = por %p8678_p2, %p8677_p10 }
 0x16f   : > { %p8680_p6 = pnand %p8679_p3, %p8673_p4 }
 0x171   : > { %8683 = shalt.err (!%p8680_p6)
}
 0x172   : > { %s8684_s1 = scalar_lea.vmem %s9275_s26, 65536  ;;  %s8813_s21 = smov [#allocation16]  }
 0x173   : > { %p8685_p7 = scmp.ne.s32.totalorder %s9275_s26, %s8684_s1  ;;  %s8688_s24 = sshll.u32 %s8813_s21, 4  ;;  %s8689_s24 = int_to_ptr.vmem [resolvable:$false] %s8688_s24 }
 0x174   : > { %s8690_s25 = scalar_lea.vmem %s8689_s24, 131072  ;;  %p8691_p1 = scmp.lt.s32.totalorder %s9275_s26, %s8689_s24 }
 0x175   : > { %p8686_p11 = pnand %p8685_p7, %p10255_p0  ;;  %p8692_p12 = scmp.lt.s32.totalorder %s8690_s25, %s8684_s1 }
 0x177   : > { %p8687_p13 = pneg %p8686_p11  ;;  %p8693_p5 = por %p8692_p12, %p8691_p1 }
 0x179   : > { %p8694_p8 = pnand %p8693_p5, %p8687_p13 }
 0x17b   : > { %8697 = shalt.err (!%p8694_p8)
}
 0x17c   : > { %s8814_s3 = smov 512   ;;  %s8815_s0 = smov 32  }
 0x17d   : > { %8059 = dma.hbm_to_vmem [thread:$0]  (%p10255_p0), %s9273_s28, 65536, %s9275_s26, %s9277_s2, %s8814_s3, %s8814_s3, %s8815_s0  }
 0x17e PF: > { %s10256_s18 = sld [smem:[#allocation43_spill]] }
 0x184   : > { %p10257_p4 = scmp.ne.s32.totalorder %s10256_s18, 0 }
 0x185   : > { %s10258_s19 = sld [smem:[#allocation38_spill]] (!%p10257_p4)  ;;  %s10259_s27 = sld [smem:[#allocation39_spill]] (!%p10257_p4) }
 0x186   : > { %689 = sbr.rel (%p10257_p4) target bundleno = 2299 (0x8fb), region = 111 }
 0x18b   : > { %s692_s30 = sand.u32 (!%p10257_p4), 1, %s10258_s19   ;;  %p10260_p9 = scmp.eq.s32.totalorder (!%p10257_p4), %s10259_s27, 0 }
 0x18c   : > { %s7137_s23 = sshll.u32 (!%p10257_p4), %s692_s30, 6 }
 0x18d   : > { %s9304_s5 = scalar_lea.vmem [#allocation3], %s7137_s23 }
 0x18e   : > { %8741 = dma.done.wait (%p10260_p9), [#allocation5], 2560   ;;  %p10261_p10 = pmov %p10260_p9 }
 0x18f   : > { %p10262_p2 = pmov %p10260_p9 }
 0x190   : > { %8743 = vsyncadd (%p10261_p10), [#allocation5], 4294964736 }
 0x191   : > { %8745 = dma.done.wait (%p10262_p2), [#allocation8], 80   ;;  %p10263_p0 = pmov %p10262_p2 }
 0x193   : > { %8747 = vsyncadd (%p10263_p0), [#allocation8], 4294967216  ;;  %p10264_p3 = pmov %p10263_p0 }
 0x194   : > { %p10265_p6 = pmov %p10263_p0 }
 0x195   : > { %8749 = dma.done.wait (%p10264_p3), [#allocation11], 32  }
 0x196   : > { %8751 = vsyncadd (%p10265_p6), [#allocation11], 4294967264  ;;  %p10266_p7 = pmov %p10263_p0 }
 0x197   : > { %p10267_p11 = pmov %p10263_p0 }
 0x198   : > { %8753 = dma.done.wait (%p10266_p7), [#allocation14], 80  }
 0x199   : > { %8755 = vsyncadd (%p10267_p11), [#allocation14], 4294967216  ;;  %s10268_s22 = sld [smem:[#allocation42_spill]]  ;;  %s726_s28 = sand.u32 1, %s10259_s27  }
 0x19a   : > { %s7145_s26 = sshll.u32 %s692_s30, 12  ;;  %s727_s2 = scalar_lea.sflag [#allocation17], %s726_s28 }
 0x19b   : > { %s9323_s7 = scalar_lea.vmem [#allocation16], %s7145_s26 }
 0x19f   : > { %p10269_p13 = scmp.ne.s32.totalorder %s10268_s22, 0 }
 0x1a1   : > { %8757 = dma.done.wait (%p10269_p13), %s727_s2, 65536  }
 0x1a2   : > { %8759 = vsyncadd (%p10269_p13), %s727_s2, 4294901760  ;;  %p10270_p1 = pmov %p10263_p0 }
 0x1a3   : > { %p10271_p12 = pmov %p10263_p0 }
 0x1a4   : > { %8761 = dma.done.wait (%p10270_p1), [#allocation17], 8192  }
 0x1a5   : > { %8763 = vsyncadd (%p10271_p12), [#allocation17], 4294959104  ;;  %p10272_p5 = pmov %p10263_p0 }
 0x1a6   : > { %p10273_p8 = pmov %p10263_p0 }
 0x1a7   : > { %8765 = dma.done.wait (%p10272_p5), [#allocation20], 256  }
 0x1a8   : > { %8767 = vsyncadd (%p10273_p8), [#allocation20], 4294967040  ;;  %p10274_p4 = pmov %p10263_p0 }
 0x1a9   : > { %p10275_p9 = pmov %p10263_p0 }
 0x1aa   : > { %8769 = dma.done.wait (%p10274_p4), [#allocation23], 8320  }
 0x1ab   : > { %8771 = vsyncadd (%p10275_p9), [#allocation23], 4294958976  ;;  %p10276_p10 = pmov %p10263_p0 }
 0x1ac   : > { %p10277_p2 = pmov %p10263_p0 }
 0x1ad   : > { %8773 = dma.done.wait (%p10276_p10), [#allocation26], 16  }
 0x1ae   : > { %8775 = vsyncadd (%p10277_p2), [#allocation26], 4294967280  ;;  %p10278_p0 = scmp.ne.s32.totalorder %s10259_s27, 0 }
 0x1af   : > { %v815_v8 = vld [vmem:[#allocation4] sm:$0xff] (!%p10278_p0)  ;;  %vm986_vm0 = vcmask (!%p10278_p0), 1040384   ;;  %vm987_vm1 = vcmask (!%p10278_p0), 1041408   ;;  %v8816_v15 = vmov (!%p10278_p0), 65535   ;;  %v8817_v20 = vmov (!%p10278_p0), 0   ;;  %v817_v24 = vld [vmem:[#allocation4 + $0x10] sm:$0xff] (!%p10278_p0) }
 0x1b0   : > { %812 = sbr.rel (%p10278_p0) target bundleno = 1211 (0x4bb), region = 175  ;;  %v819_v9 = vld [vmem:[#allocation4 + $0x20] sm:$0xff] (!%p10278_p0)  ;;  %v988_v16 = vsel (!%p10278_p0), %vm986_vm0, 4294967295, %v8816_v15  ;;  %1046 = vmatprep.mubr.bf16.mxu0 (!%p10278_p0), %v8817_v20  ;;  %1089 = vmatprep.mubr.bf16.mxu1 (!%p10278_p0), %v8817_v20  ;;  %v821_v25 = vld [vmem:[#allocation4 + $0x30] sm:$0xff] (!%p10278_p0)  ;;  %s10279_s21 = sld [smem:[#allocation44_spill]] (!%p10278_p0)  ;;  %vm982_vm2 = vcmask (!%p10278_p0), 285696  }
 0x1b1   : > { %v823_v10 = vld [vmem:[#allocation4 + $0x40] sm:$0xff] (!%p10278_p0)  ;;  %v7155_v11 = vcombine.high (!%p10278_p0), %v815_v8, %v819_v9  ;;  %v7154_v12 = vcombine.low (!%p10278_p0), %v815_v8, %v819_v9  ;;  %v9347_v19 = vsel (!%p10278_p0), %vm987_vm1, %v988_v16, 0  ;;  %v7159_v27 = vcombine.high (!%p10278_p0), %v817_v24, %v821_v25  ;;  %v825_v28 = vld [vmem:[#allocation4 + $0x50] sm:$0xff] (!%p10278_p0)  ;;  %s10280_s3 = sld [smem:[#allocation46_spill]] (!%p10278_p0)  ;;  %v816_v42 = vld [vmem:[#allocation4 + $0x8] sm:$0xff] (!%p10278_p0)  ;;  %s10281_s30 = sld [smem:[#allocation47_spill]] (!%p10278_p0) }
 0x1b2   : > { %v827_v13 = vld [vmem:[#allocation4 + $0x60] sm:$0xff] (!%p10278_p0)  ;;  %v829_v29 = vld [vmem:[#allocation4 + $0x70] sm:$0xff] (!%p10278_p0)  ;;  %v7158_v32 = vcombine.low (!%p10278_p0), %v817_v24, %v821_v25  ;;  %vm1203_vm3 = vcmask (!%p10278_p0), 1043456   ;;  %vm1196_vm4 = vcmask (!%p10278_p0), 31744   ;;  %v820_v43 = vld [vmem:[#allocation4 + $0x28] sm:$0xff] (!%p10278_p0) }
 0x1b3   : > { %v831_v14 = vld [vmem:[#allocation4 + $0x80] sm:$0x33] (!%p10278_p0)  ;;  %v7163_v17 = vcombine.high (!%p10278_p0), %v823_v10, %v827_v13  ;;  %1014 = vmatprep.subr.bf16.mxu0 (!%p10278_p0), %v7155_v11  ;;  %v7162_v21 = vcombine.low (!%p10278_p0), %v823_v10, %v827_v13  ;;  %v833_v30 = vld [vmem:[#allocation4 + $0x90] sm:$0x33] (!%p10278_p0)  ;;  %v7167_v33 = vcombine.high (!%p10278_p0), %v825_v28, %v829_v29  ;;  %v7166_v35 = vcombine.low (!%p10278_p0), %v825_v28, %v829_v29  ;;  %v824_v46 = vld [vmem:[#allocation4 + $0x48] sm:$0xff] (!%p10278_p0) }
 0x1b4   : > { %v7171_v18 = vcombine.high (!%p10278_p0), %v831_v14, %v831_v14  ;;  %1015 = vmatpush1.bf16.msra.mxu0 (!%p10278_p0), %v7154_v12  ;;  %v7170_v22 = vcombine.low (!%p10278_p0), %v831_v14, %v831_v14  ;;  %v7175_v34 = vcombine.high (!%p10278_p0), %v833_v30, %v833_v30  ;;  %v7174_v36 = vcombine.low (!%p10278_p0), %v833_v30, %v833_v30  ;;  %v1188_v39 = vld [vmem:[#allocation7] sm:$0xf] (!%p10278_p0)  ;;  %v828_v47 = vld [vmem:[#allocation4 + $0x68] sm:$0xff] (!%p10278_p0)  ;;  %v818_v55 = vld [vmem:[#allocation4 + $0x18] sm:$0xff] (!%p10278_p0) }
 0x1b5   : > { %1016 = vmatprep.subr.bf16.mxu0 (!%p10278_p0), %v7163_v17  ;;  %v7157_v44 = vcombine.high (!%p10278_p0), %v816_v42, %v820_v43  ;;  %v7156_v45 = vcombine.low (!%p10278_p0), %v816_v42, %v820_v43  ;;  %v7165_v48 = vcombine.high (!%p10278_p0), %v824_v46, %v828_v47  ;;  %v7164_v49 = vcombine.low (!%p10278_p0), %v824_v46, %v828_v47  ;;  %v832_v50 = vld [vmem:[#allocation4 + $0x88] sm:$0x33] (!%p10278_p0)  ;;  %v822_v56 = vld [vmem:[#allocation4 + $0x38] sm:$0xff] (!%p10278_p0)  ;;  %v1428_v5 = vld [vmem:[#allocation18] sm:$0xff] (!%p10278_p0) }
 0x1b6   : > { %v994_v23 = vand.u32 (!%p10278_p0), %v7171_v18, %v9347_v19  ;;  %v991_v26 = vand.u32 (!%p10278_p0), %v7170_v22, %v9347_v19  ;;  %v9356_v31 = vld [vmem:[%s10279_s21] sm:$0xff] (!%p10278_p0)   ;;  %v1006_v37 = vand.u32 (!%p10278_p0), %v7175_v34, %v9347_v19  ;;  %v1003_v38 = vand.u32 (!%p10278_p0), %v7174_v36, %v9347_v19  ;;  %v826_v59 = vld [vmem:[#allocation4 + $0x58] sm:$0xff] (!%p10278_p0)  ;;  %v1329_v4 = vld [vmem:[#allocation13] sm:$0xf] (!%p10278_p0) }
 0x1b7   : > { %v1186_v40 = vld [vmem:[%s10280_s3] sm:$0xff]  ;;  %v1187_v41 = vld [vmem:[%s10280_s3 + $0x8] sm:$0xff]  ;;  %1057 = vmatprep.subr.bf16.mxu1 %v7157_v44  ;;  %v7173_v51 = vcombine.high %v832_v50, %v832_v50  ;;  %v7172_v52 = vcombine.low %v832_v50, %v832_v50  ;;  %v7161_v57 = vcombine.high %v818_v55, %v822_v56  ;;  %v7160_v58 = vcombine.low %v818_v55, %v822_v56  ;;  %v830_v60 = vld [vmem:[#allocation4 + $0x78] sm:$0xff]  ;;  %s10282_s23 = smov %s10281_s30 }
 0x1b8   : > { %1017 = vmatpush1.bf16.msra.mxu0 %v7162_v21  ;;  %1058 = vmatpush1.bf16.msra.mxu1 %v7156_v45  ;;  %v7169_v61 = vcombine.high %v826_v59, %v830_v60  ;;  %v7168_v62 = vcombine.low %v826_v59, %v830_v60  ;;  %v834_v63 = vld [vmem:[#allocation4 + $0x98] sm:$0x33]  ;;  %v1432_v6 = vld [vmem:[#allocation18 + $0x20] sm:$0xff]  ;;  %v7182_v34 = vld [vmem:[#allocation9] ss:$0 sm:$0xff] }
 0x1b9   : > { %1018 = vmatprep.subr.bf16.mxu0 %v994_v23  ;;  %1059 = vmatprep.subr.bf16.mxu1 %v7165_v48  ;;  %v1000_v53 = vand.u32 %v7173_v51, %v9347_v19  ;;  %v997_v54 = vand.u32 %v7172_v52, %v9347_v19  ;;  %v7177_v0 = vcombine.high %v834_v63, %v834_v63  ;;  %v9387_v7 = vld [vmem:[#allocation18 + $0x8] sm:$0xff]  ;;  %v1436_v11 = vld [vmem:[#allocation18 + $0x40] sm:$0xff] }
 0x1ba   : > { %v7176_v1 = vcombine.low %v834_v63, %v834_v63  ;;  %v7192_v8 = vcombine.low %v1428_v5, %v1432_v6  ;;  %v7193_v9 = vcombine.high %v1428_v5, %v1432_v6  ;;  %v9389_v10 = vld [vmem:[#allocation18 + $0x28] sm:$0xff]  ;;  %v1440_v12 = vld [vmem:[#allocation18 + $0x60] sm:$0xff] }
 0x1bb   : > { %v1012_v2 = vand.u32 %v7177_v0, %v9347_v19  ;;  %v7194_v13 = vcombine.low %v9387_v7, %v9389_v10  ;;  %v7195_v14 = vcombine.high %v9387_v7, %v9389_v10  ;;  %v7201_v15 = vcombine.high %v1436_v11, %v1440_v12  ;;  %v1444_v17 = vld [vmem:[#allocation18 + $0x80] sm:$0xff]  ;;  %v1473_v7 = vld [vmem:[#allocation18 + $0x168] sm:$0xff] }
 0x1bc   : > { %1019 = vmatpush1.bf16.msra.mxu0 %v991_v26  ;;  %1060 = vmatpush1.bf16.msra.mxu1 %v7164_v49  ;;  %v1009_v3 = vand.u32 %v7176_v1, %v9347_v19  ;;  %v7200_v16 = vcombine.low %v1436_v11, %v1440_v12  ;;  %v1448_v18 = vld [vmem:[#allocation18 + $0xa0] sm:$0xff]  ;;  %v7186_v1 = vld [vmem:[#allocation10] ss:$0 sm:$0xff] }
 0x1bd   : > { %1100 = vmatprep.subr.bf16.mxu0 %v7159_v27  ;;  %1061 = vmatprep.subr.bf16.mxu1 %v1000_v53  ;;  %v7209_v19 = vcombine.high %v1444_v17, %v1448_v18  ;;  %v7208_v21 = vcombine.low %v1444_v17, %v1448_v18  ;;  %v1452_v22 = vld [vmem:[#allocation18 + $0xc0] sm:$0xff] }
 0x1be   : > { %v1456_v23 = vld [vmem:[#allocation18 + $0xe0] sm:$0xff] }
 0x1bf   : > { %7178 = vmatmul.mubr.msk.bf16.vlgmr.msra.gmra.mrb[0].mxu0 %vm982_vm2, %v9356_v31  ;;  %v7217_v24 = vcombine.high %v1452_v22, %v1456_v23  ;;  %v7216_v25 = vcombine.low %v1452_v22, %v1456_v23  ;;  %v1460_v26 = vld [vmem:[#allocation18 + $0x100] sm:$0xff] }
 0x1c0   : > { %1101 = vmatpush1.bf16.msra.mxu0 %v7158_v32  ;;  %1132 = vmatprep.mubr.bf16.mxu0 %v8817_v20  ;;  %v1464_v27 = vld [vmem:[#allocation18 + $0x120] sm:$0xff] }
 0x1c1   : > { %1102 = vmatprep.subr.bf16.mxu0 %v7167_v33  ;;  %1062 = vmatpush1.bf16.msra.mxu1 %v997_v54  ;;  %v7225_v28 = vcombine.high %v1460_v26, %v1464_v27  ;;  %v7224_v29 = vcombine.low %v1460_v26, %v1464_v27  ;;  %v1468_v30 = vld [vmem:[#allocation18 + $0x140] sm:$0xff] }
 0x1c2   : > { %1143 = vmatprep.subr.bf16.mxu1 %v7161_v57 }
 0x1c4   : > { %1103 = vmatpush1.bf16.msra.mxu0 %v7166_v35  ;;  %7179 = vmatmul.mubr.msk.bf16.vlgmr.msra.gmra.mrb[0].mxu1 %vm982_vm2, %v9356_v31 }
 0x1c5   : > { %1104 = vmatprep.subr.bf16.mxu0 %v1006_v37  ;;  %1144 = vmatpush1.bf16.msra.mxu1 %v7160_v58 }
 0x1c6   : > { %1175 = vmatprep.mubr.bf16.mxu1 %v8817_v20  ;;  %1145 = vmatprep.subr.bf16.mxu1 %v7169_v61 }
 0x1c8   : > { %1105 = vmatpush1.bf16.msra.mxu0 %v1003_v38 }
 0x1c9   : > { %7943 = vmatprep.subr.msk.mxu0 %vm1203_vm3, %v1188_v39  ;;  %1146 = vmatpush1.bf16.msra.mxu1 %v7168_v62 }
 0x1ca   : > { %1147 = vmatprep.subr.bf16.mxu1 %v1012_v2 }
 0x1cb   : > { %7180 = vmatmul.mubr.msk.bf16.vlgmr.msra.gmra.mrb[4].mxu0 %vm982_vm2, %v9356_v31 }
 0x1cc   : > { %7944 = vmatpush3.msk.msra.mxu0 %vm1203_vm3, %v1188_v39  ;;  %7945 = vmatprep.mubr.msk.f32.mxu0 %vm1196_vm4, %v1186_v40 }
 0x1cd   : > { %1148 = vmatpush1.bf16.msra.mxu1 %v1009_v3  ;;  %1812 = vmatprep.subr.bf16.mxu0 %v7193_v9  ;;  %v1441_v9 = vld [vmem:[#allocation18 + $0x68] sm:$0xff] }
 0x1ce   : > { %7948 = vmatprep.subr.msk.mxu1 %vm1203_vm3, %v1329_v4 }
 0x1d0   : > { %7181 = vmatmul.mubr.msk.bf16.vlgmr.msra.gmra.mrb[4].mxu1 %vm982_vm2, %v9356_v31  ;;  %v1472_v31 = vld [vmem:[#allocation18 + $0x160] sm:$0xff] }
 0x1d1   : > { %7949 = vmatpush3.msk.msra.mxu1 %vm1203_vm3, %v1329_v4  ;;  %v7233_v32 = vcombine.high %v1468_v30, %v1472_v31  ;;  %v7232_v33 = vcombine.low %v1468_v30, %v1472_v31  ;;  %v7187_v4 = vld [vmem:[#allocation12] ss:$0 sm:$0xff]  ;;  %v1476_v30 = vld [vmem:[#allocation18 + $0x180] sm:$0xff] }
 0x1d2   : > { %1855 = vmatprep.subr.bf16.mxu1 %v7195_v14  ;;  %v1480_v31 = vld [vmem:[#allocation18 + $0x1a0] sm:$0xff] }
 0x1d3   : > { %7946 = vmatmul.mubr.msk.f32.vlgmr.msra.gmra.mrb[8].mxu0 %vm1196_vm4, %v1187_v41 }
 0x1d4   : > { %1844 = vmatprep.mubr.bf16.mxu0 %v8817_v20  ;;  %1813 = vmatpush1.bf16.msra.mxu0 %v7192_v8  ;;  %v1437_v8 = vld [vmem:[#allocation18 + $0x48] sm:$0xff] }
 0x1d5   : > { %1814 = vmatprep.subr.bf16.mxu0 %v7201_v15  ;;  %v7203_v14 = vcombine.high %v1437_v8, %v1441_v9  ;;  %v1445_v15 = vld [vmem:[#allocation18 + $0x88] sm:$0xff]  ;;  %v7202_v17 = vcombine.low %v1437_v8, %v1441_v9  ;;  %v1446_v9 = vld [vmem:[#allocation18 + $0x90] sm:$0xff] }
 0x1d8   : > { %1815 = vmatpush1.bf16.msra.mxu0 %v7200_v16  ;;  %v1449_v16 = vld [vmem:[#allocation18 + $0xa8] sm:$0xff] }
 0x1d9   : > { %1816 = vmatprep.subr.bf16.mxu0 %v7209_v19  ;;  %v7211_v18 = vcombine.high %v1445_v15, %v1449_v16  ;;  %v1453_v19 = vld [vmem:[#allocation18 + $0xc8] sm:$0xff]  ;;  %v7210_v22 = vcombine.low %v1445_v15, %v1449_v16 }
 0x1dc   : > { %1817 = vmatpush1.bf16.msra.mxu0 %v7208_v21  ;;  %v1457_v21 = vld [vmem:[#allocation18 + $0xe8] sm:$0xff] }
 0x1dd   : > { %1818 = vmatprep.subr.bf16.mxu0 %v7217_v24  ;;  %v7219_v23 = vcombine.high %v1453_v19, %v1457_v21  ;;  %v1461_v24 = vld [vmem:[#allocation18 + $0x108] sm:$0xff]  ;;  %v7218_v26 = vcombine.low %v1453_v19, %v1457_v21  ;;  %v1454_v19 = vld [vmem:[#allocation18 + $0xd0] sm:$0xff] }
 0x1de   : > { %v1458_v21 = vld [vmem:[#allocation18 + $0xf0] sm:$0xff] }
 0x1e0   : > { %1819 = vmatpush1.bf16.msra.mxu0 %v7216_v25  ;;  %v1465_v25 = vld [vmem:[#allocation18 + $0x128] sm:$0xff] }
 0x1e1   : > { %1820 = vmatprep.subr.bf16.mxu0 %v7225_v28  ;;  %v7227_v27 = vcombine.high %v1461_v24, %v1465_v25  ;;  %v1469_v28 = vld [vmem:[#allocation18 + $0x148] sm:$0xff]  ;;  %v7226_v10 = vcombine.low %v1461_v24, %v1465_v25 }
 0x1e4   : > { %1821 = vmatpush1.bf16.msra.mxu0 %v7224_v29  ;;  %v7234_v29 = vcombine.low %v1469_v28, %v1473_v7 }
 0x1e5   : > { %1822 = vmatprep.subr.bf16.mxu0 %v7233_v32  ;;  %v1477_v32 = vld [vmem:[#allocation18 + $0x188] sm:$0xff] }
 0x1e8   : > { %1823 = vmatpush1.bf16.msra.mxu0 %v7232_v33  ;;  %v7241_v33 = vcombine.high %v1476_v30, %v1480_v31 }
 0x1ea   : > { %1824 = vmatprep.subr.bf16.mxu0 %v7241_v33  ;;  %v1474_v33 = vld [vmem:[#allocation18 + $0x170] sm:$0xff] }
 0x2a6   : > { %v7947_v35 = vpop.f32.mrb[8].mxu0 }
 0x2a7   : > { %v1279_v36 = vadd.f32 %v7947_v35, %v7182_v34  ;;  %v1273_v37 = vpop.f32.mrb[9].mxu0  ;;  %v7240_v35 = vcombine.low %v1476_v30, %v1480_v31 }
 0x2a8   : > { %v1274_v38 = vadd.f32 %v7182_v34, %v1273_v37  ;;  %v1481_v34 = vld [vmem:[#allocation18 + $0x1a8] sm:$0xff] }
 0x2a9   : > { %v1285_v39 = vsel %vm1196_vm4, %v1279_v36, 0.0  ;;  %v7243_v37 = vcombine.high %v1477_v32, %v1481_v34  ;;  %1825 = vmatpush1.bf16.msra.mxu0 %v7240_v35  ;;  %v1475_v35 = vld [vmem:[#allocation18 + $0x178] sm:$0xff] }
 0x2aa   : > { %v1284_v40 = vsel %vm1196_vm4, %v1274_v38, 0.0 }
 0x2ab   : > { %v1286_v41 = vadd.f32 %v1285_v39, %v1284_v40  ;;  %v1488_v39 = vld [vmem:[#allocation18 + $0x1e0] sm:$0xff]  ;;  %v1485_v40 = vld [vmem:[#allocation18 + $0x1c8] sm:$0xff] }
 0x2ad   : > { %v1287_v42 = vrot.slane %v1286_v41, 4 }
 0x2af   : > { %v1288_v43 = vadd.f32 %v1287_v42, %v1286_v41  ;;  %v1489_v42 = vld [vmem:[#allocation18 + $0x1e8] sm:$0xff] }
 0x2b1   : > { %v1289_v44 = vrot.slane %v1288_v43, 2 }
 0x2b3   : > { %v1290_v45 = vadd.f32 %v1289_v44, %v1288_v43  ;;  %v7250_v44 = vcombine.low %v1485_v40, %v1489_v42 }
 0x2b5   : > { %v1291_v46 = vrot.slane %v1290_v45, 1 }
 0x2b7   : > { %v1292_v47 = vadd.f32 %v1291_v46, %v1290_v45  ;;  %v7251_v45 = vcombine.high %v1485_v40, %v1489_v42  ;;  %v1430_v46 = vld [vmem:[#allocation18 + $0x10] sm:$0xff]  ;;  %v1479_v42 = vld [vmem:[#allocation18 + $0x198] sm:$0xff] }
 0x2b8   : > { %v1478_v40 = vld [vmem:[#allocation18 + $0x190] sm:$0xff] }
 0x2b9   : > { %v1294_v48 = vmul.f32 0.0625, %v1292_v47  ;;  %v1434_v47 = vld [vmem:[#allocation18 + $0x30] sm:$0xff] }
 0x2bb   : > { %v1295_v49 = vsub.f32 %v1274_v38, %v1294_v48  ;;  %v1296_v50 = vsub.f32 %v1279_v36, %v1294_v48  ;;  %v7242_v36 = vcombine.low %v1477_v32, %v1481_v34  ;;  %v1484_v38 = vld [vmem:[#allocation18 + $0x1c0] sm:$0xff]  ;;  %v1431_v48 = vld [vmem:[#allocation18 + $0x18] sm:$0xff]  ;;  %v1470_v32 = vld [vmem:[#allocation18 + $0x150] sm:$0xff] }
 0x2bc   : > { %v7249_v41 = vcombine.high %v1484_v38, %v1488_v39  ;;  %v7248_v43 = vcombine.low %v1484_v38, %v1488_v39  ;;  %v1471_v34 = vld [vmem:[#allocation18 + $0x158] sm:$0xff]  ;;  %v7237_v38 = vcombine.high %v1470_v32, %v1474_v33 }
 0x2bd   : > { %v1297_v51 = vmul.f32 %v1295_v49, %v1295_v49  ;;  %v1298_v52 = vmul.f32 %v1296_v50, %v1296_v50  ;;  %v7239_v39 = vcombine.high %v1471_v34, %v1475_v35 }
 0x2be   : > { %1826 = vmatprep.subr.bf16.mxu0 %v7249_v41  ;;  %v1482_v41 = vld [vmem:[#allocation18 + $0x1b0] sm:$0xff] }
 0x2bf   : > { %v1299_v53 = vsel %vm1196_vm4, %v1297_v51, 0.0  ;;  %v1300_v54 = vsel %vm1196_vm4, %v1298_v52, 0.0  ;;  %1827 = vmatpush1.bf16.msra.mxu0 %v7248_v43  ;;  %v7196_v51 = vcombine.low %v1430_v46, %v1434_v47  ;;  %v1483_v43 = vld [vmem:[#allocation18 + $0x1b8] sm:$0xff] }
 0x2c0   : > { %v1301_v55 = vadd.f32 %v1300_v54, %v1299_v53  ;;  %v7188_v54 = vld [vmem:[#allocation15] ss:$0 sm:$0xff] }
 0x2c2   : > { %v1302_v56 = vrot.slane %v1301_v55, 4 }
 0x2c4   : > { %v1303_v57 = vadd.f32 %v1302_v56, %v1301_v55 }
 0x2c6   : > { %v1304_v58 = vrot.slane %v1303_v57, 2 }
 0x2c8   : > { %v1305_v59 = vadd.f32 %v1304_v58, %v1303_v57  ;;  %v1424_v58 = vld [vmem:[%s10281_s30 + $0x8] sm:$0xff] }
 0x2ca   : > { %v1306_v60 = vrot.slane %v1305_v59, 1 }
 0x2cc   : > { %v1307_v61 = vadd.f32 %v1306_v60, %v1305_v59 }
 0x2ce   : > { %v1308_v62 = vmul.f32 0.0625, %v1307_v61  ;;  %v1423_v61 = vld [vmem:[%s10282_s23] sm:$0xff] }
 0x2d0   : > { %v1309_v63 = vadd.f32 1e-05, %v1308_v62 }
 0x2d2   : > { %8224 = vrsqrt.f32 %v1309_v63  ;;  %v1438_v63 = vld [vmem:[#allocation18 + $0x50] sm:$0xff] }
 0x2dc   : > { %v8225_v0 = vpop.eup %8224 }
 0x2dd   : > { %v1311_v2 = vmul.f32 %v8225_v0, %v1295_v49  ;;  %v1312_v3 = vmul.f32 %v8225_v0, %v1296_v50  ;;  %v7197_v49 = vcombine.high %v1430_v46, %v1434_v47  ;;  %v1435_v50 = vld [vmem:[#allocation18 + $0x38] sm:$0xff]  ;;  %v7245_v46 = vcombine.high %v1478_v40, %v1482_v41 }
 0x2de   : > { %v7198_v52 = vcombine.low %v1431_v48, %v1435_v50  ;;  %v7199_v53 = vcombine.high %v1431_v48, %v1435_v50  ;;  %v7247_v47 = vcombine.high %v1479_v42, %v1483_v43  ;;  %v1486_v48 = vld [vmem:[#allocation18 + $0x1d0] sm:$0xff]  ;;  %v1487_v50 = vld [vmem:[#allocation18 + $0x1d8] sm:$0xff] }
 0x2df   : > { %v1319_v5 = vmul.f32 %v7186_v1, %v1311_v2  ;;  %v1320_v6 = vmul.f32 %v7186_v1, %v1312_v3  ;;  %1898 = vmatprep.subr.bf16.mxu0 %v7197_v49  ;;  %v1442_v1 = vld [vmem:[#allocation18 + $0x70] sm:$0xff]  ;;  %v1439_v2 = vld [vmem:[#allocation18 + $0x58] sm:$0xff] }
 0x2e0   : > { %v1443_v3 = vld [vmem:[#allocation18 + $0x78] sm:$0xff]  ;;  %v7204_v15 = vcombine.low %v1438_v63, %v1442_v1  ;;  %v1490_v49 = vld [vmem:[#allocation18 + $0x1f0] sm:$0xff] }
 0x2e1   : > { %v1327_v11 = vadd.f32 %v7187_v4, %v1319_v5  ;;  %v1328_v12 = vadd.f32 %v7187_v4, %v1320_v6  ;;  %v7205_v6 = vcombine.high %v1438_v63, %v1442_v1  ;;  %v7207_v8 = vcombine.high %v1439_v2, %v1443_v3 }
 0x2e2   : > { %v7206_v16 = vcombine.low %v1439_v2, %v1443_v3 }
 0x2e3   : > { %7950 = vmatprep.mubr.msk.f32.mxu1 %vm1196_vm4, %v1327_v11  ;;  %v1450_v11 = vld [vmem:[#allocation18 + $0xb0] sm:$0xff] }
 0x2e4   : > { %7951 = vmatmul.mubr.msk.f32.vlgmr.msra.gmra.mrb[8].mxu1 %vm1196_vm4, %v1328_v12  ;;  %v1447_v12 = vld [vmem:[#allocation18 + $0x98] sm:$0xff]  ;;  %v7212_v24 = vcombine.low %v1446_v9, %v1450_v11 }
 0x2e5   : > { %1856 = vmatpush1.bf16.msra.mxu1 %v7194_v13  ;;  %1887 = vmatprep.mubr.bf16.mxu1 %v8817_v20  ;;  %v7235_v13 = vcombine.high %v1469_v28, %v1473_v7  ;;  %v1462_v28 = vld [vmem:[#allocation18 + $0x110] sm:$0xff] }
 0x2e6   : > { %1857 = vmatprep.subr.bf16.mxu1 %v7203_v14  ;;  %v1451_v14 = vld [vmem:[#allocation18 + $0xb8] sm:$0xff]  ;;  %v1466_v7 = vld [vmem:[#allocation18 + $0x130] sm:$0xff] }
 0x2e7   : > { %v7214_v25 = vcombine.low %v1447_v12, %v1451_v14  ;;  %v7229_v31 = vcombine.high %v1462_v28, %v1466_v7 }
 0x2e9   : > { %1858 = vmatpush1.bf16.msra.mxu1 %v7202_v17  ;;  %v7213_v17 = vcombine.high %v1446_v9, %v1450_v11 }
 0x2ea   : > { %1859 = vmatprep.subr.bf16.mxu1 %v7211_v18  ;;  %v7215_v18 = vcombine.high %v1447_v12, %v1451_v14 }
 0x2ed   : > { %1860 = vmatpush1.bf16.msra.mxu1 %v7210_v22  ;;  %v1455_v22 = vld [vmem:[#allocation18 + $0xd8] sm:$0xff] }
 0x2ee   : > { %1861 = vmatprep.subr.bf16.mxu1 %v7219_v23  ;;  %v1459_v23 = vld [vmem:[#allocation18 + $0xf8] sm:$0xff] }
 0x2ef   : > { %v7222_v30 = vcombine.low %v1455_v22, %v1459_v23 }
 0x2f1   : > { %1862 = vmatpush1.bf16.msra.mxu1 %v7218_v26  ;;  %v7221_v26 = vcombine.high %v1454_v19, %v1458_v21 }
 0x2f2   : > { %1863 = vmatprep.subr.bf16.mxu1 %v7227_v27  ;;  %v7223_v27 = vcombine.high %v1455_v22, %v1459_v23 }
 0x2f5   : > { %1864 = vmatpush1.bf16.msra.mxu1 %v7226_v10  ;;  %v1463_v10 = vld [vmem:[#allocation18 + $0x118] sm:$0xff] }
 0x2f6   : > { %1865 = vmatprep.subr.bf16.mxu1 %v7235_v13  ;;  %v1467_v13 = vld [vmem:[#allocation18 + $0x138] sm:$0xff] }
 0x2f9   : > { %1866 = vmatpush1.bf16.msra.mxu1 %v7234_v29  ;;  %v7220_v29 = vcombine.low %v1454_v19, %v1458_v21 }
 0x2fa   : > { %1867 = vmatprep.subr.bf16.mxu1 %v7243_v37  ;;  %v7230_v37 = vcombine.low %v1463_v10, %v1467_v13 }
 0x2fd   : > { %1868 = vmatpush1.bf16.msra.mxu1 %v7242_v36  ;;  %v7228_v36 = vcombine.low %v1462_v28, %v1466_v7 }
 0x2fe   : > { %1869 = vmatprep.subr.bf16.mxu1 %v7251_v45  ;;  %v7238_v45 = vcombine.low %v1471_v34, %v1475_v35 }
 0x301   : > { %1870 = vmatpush1.bf16.msra.mxu1 %v7250_v44  ;;  %v7236_v44 = vcombine.low %v1470_v32, %v1474_v33 }
 0x302   : > { %1941 = vmatprep.subr.bf16.mxu1 %v7199_v53  ;;  %v7246_v53 = vcombine.low %v1479_v42, %v1483_v43 }
 0x3b7   : > { %v7952_v55 = vpop.f32.mrb[8].mxu1 }
 0x3b8   : > { %v1418_v56 = vadd.f32 %v7952_v55, %v7188_v54  ;;  %v1412_v57 = vpop.f32.mrb[9].mxu1 }
 0x3b9   : > { %v1413_v59 = vadd.f32 %v7188_v54, %v1412_v57  ;;  %v7253_v54 = vcombine.high %v1486_v48, %v1490_v49 }
 0x3ba   : > { %v1422_v60 = vmax.f32 %v1418_v56, 0.0  ;;  %v7252_v56 = vcombine.low %v1486_v48, %v1490_v49 }
 0x3bb   : > { %v1421_v62 = vmax.f32 %v1413_v59, 0.0 }
 0x3bc   : > { %v1426_v0 = vmul.f32 %v1424_v58, %v1422_v60  ;;  %v837_v58 = vlaneseq }
 0x3bd   : > { %v1425_v4 = vmul.f32 %v1423_v61, %v1421_v62  ;;  %v835_v62 = vld [vmem:[#allocation19] sm:$0xff] }
 0x3be   : > { %v838_v59 = vshrl.u32 %v837_v58, 7 }
 0x3bf   : > { %v9411_v5 = vpack.c.bf16 %v1426_v0, %v1425_v4 }
 0x3c0   : > { %v839_v60 = vsub.s32 0, %v838_v59  ;;  %v847_v61 = vsub.s32 2, %v838_v59  ;;  %v843_v63 = vsub.s32 1, %v838_v59  ;;  %v851_v0 = vsub.s32 3, %v838_v59 }
 0x3c1   : > { %1845 = vmatmul.mubr.bf16.vlgmr.msra.gmra.mrb[0].mxu0 %v9411_v5  ;;  %1888 = vmatmul.mubr.bf16.vlgmr.msra.gmra.mrb[0].mxu1 %v9411_v5  ;;  %v867_v28 = vsub.s32 7, %v838_v59 }
 0x3c2   : > { %1899 = vmatpush1.bf16.msra.mxu0 %v7196_v51  ;;  %1942 = vmatpush1.bf16.msra.mxu1 %v7198_v52  ;;  %v1491_v51 = vld [vmem:[#allocation18 + $0x1f8] sm:$0xff]  ;;  %v7244_v52 = vcombine.low %v1478_v40, %v1482_v41  ;;  %v840_v1 = vrot.slane %v835_v62, %v839_v60  ;;  %v848_v2 = vrot.slane %v835_v62, %v847_v61 }
 0x3c3   : > { %1900 = vmatprep.subr.bf16.mxu0 %v7205_v6  ;;  %1943 = vmatprep.subr.bf16.mxu1 %v7207_v8  ;;  %v7255_v55 = vcombine.high %v1487_v50, %v1491_v51  ;;  %v7254_v57 = vcombine.low %v1487_v50, %v1491_v51  ;;  %v844_v3 = vrot.slane %v835_v62, %v843_v63 }
 0x3c4   : > { %1930 = vmatprep.mubr.bf16.mxu0 %v8817_v20  ;;  %1973 = vmatprep.mubr.bf16.mxu1 %v8817_v20  ;;  %v7231_v20 = vcombine.high %v1463_v10, %v1467_v13  ;;  %v852_v4 = vrot.slane %v835_v62, %v851_v0 }
 0x3c6   : > { %1901 = vmatpush1.bf16.msra.mxu0 %v7204_v15  ;;  %1944 = vmatpush1.bf16.msra.mxu1 %v7206_v16 }
 0x3c7   : > { %1902 = vmatprep.subr.bf16.mxu0 %v7213_v17  ;;  %1945 = vmatprep.subr.bf16.mxu1 %v7215_v18 }
 0x3ca   : > { %1903 = vmatpush1.bf16.msra.mxu0 %v7212_v24  ;;  %1946 = vmatpush1.bf16.msra.mxu1 %v7214_v25  ;;  %v855_v25 = vsub.s32 4, %v838_v59 }
 0x3cb   : > { %1904 = vmatprep.subr.bf16.mxu0 %v7221_v26  ;;  %1947 = vmatprep.subr.bf16.mxu1 %v7223_v27  ;;  %v863_v26 = vsub.s32 6, %v838_v59  ;;  %v859_v27 = vsub.s32 5, %v838_v59 }
 0x3cc   : > { %v856_v7 = vrot.slane %v835_v62, %v855_v25 }
 0x3cd   : > { %v864_v10 = vrot.slane %v835_v62, %v863_v26  ;;  %v860_v13 = vrot.slane %v835_v62, %v859_v27 }
 0x3ce   : > { %1905 = vmatpush1.bf16.msra.mxu0 %v7220_v29  ;;  %1948 = vmatpush1.bf16.msra.mxu1 %v7222_v30  ;;  %v868_v29 = vrot.slane %v835_v62, %v867_v28 }
 0x3cf   : > { %1906 = vmatprep.subr.bf16.mxu0 %v7229_v31  ;;  %1949 = vmatprep.subr.bf16.mxu1 %v7231_v20 }
 0x3d2   : > { %1907 = vmatpush1.bf16.msra.mxu0 %v7228_v36  ;;  %1950 = vmatpush1.bf16.msra.mxu1 %v7230_v37 }
 0x3d3   : > { %1908 = vmatprep.subr.bf16.mxu0 %v7237_v38  ;;  %1951 = vmatprep.subr.bf16.mxu1 %v7239_v39 }
 0x3d6   : > { %1909 = vmatpush1.bf16.msra.mxu0 %v7236_v44  ;;  %1952 = vmatpush1.bf16.msra.mxu1 %v7238_v45 }
 0x3d7   : > { %1910 = vmatprep.subr.bf16.mxu0 %v7245_v46  ;;  %1953 = vmatprep.subr.bf16.mxu1 %v7247_v47 }
 0x3da   : > { %1911 = vmatpush1.bf16.msra.mxu0 %v7244_v52  ;;  %1954 = vmatpush1.bf16.msra.mxu1 %v7246_v53 }
 0x3db   : > { %1912 = vmatprep.subr.bf16.mxu0 %v7253_v54  ;;  %1955 = vmatprep.subr.bf16.mxu1 %v7255_v55 }
 0x3de   : > { %1913 = vmatpush1.bf16.msra.mxu0 %v7252_v56  ;;  %1956 = vmatpush1.bf16.msra.mxu1 %v7254_v57 }
 0x3e1   : > { %1931 = vmatmul.mubr.bf16.vlgmr.msra.gmra.mrb[4].mxu0 %v9411_v5  ;;  %1974 = vmatmul.mubr.bf16.vlgmr.msra.gmra.mrb[4].mxu1 %v9411_v5 }
 0x494   : > { %v1846_v6 = vpop.f32.mrb[0].mxu0  ;;  %v1889_v8 = vpop.f32.mrb[0].mxu1 }
 0x495   : > { %v7953_v9 = vadd.f32 %v1846_v6, %v840_v1  ;;  %v7957_v11 = vadd.f32 %v1889_v8, %v848_v2  ;;  %v1848_v12 = vpop.f32.mrb[1].mxu0  ;;  %v1891_v14 = vpop.f32.mrb[1].mxu1 }
 0x496   : > { %v7954_v15 = vadd.f32 %v1848_v12, %v844_v3  ;;  %v7958_v16 = vadd.f32 %v1891_v14, %v852_v4  ;;  %v1850_v5 = vpop.f32.mrb[2].mxu0  ;;  %v1893_v17 = vpop.f32.mrb[2].mxu1 }
 0x497   : > { %2000 = vst [vmem:[#allocation2] sm:$0xff] %v7953_v9  ;;  %2002 = vst [vmem:[#allocation2 + $0x10] sm:$0xff] %v7957_v11  ;;  %v7955_v18 = vadd.f32 %v1850_v5, %v840_v1  ;;  %v7959_v19 = vadd.f32 %v1893_v17, %v848_v2  ;;  %v1852_v21 = vpop.f32.mrb[3].mxu0  ;;  %v1895_v22 = vpop.f32.mrb[3].mxu1 }
 0x498   : > { %2001 = vst [vmem:[#allocation2 + $0x8] sm:$0xff] %v7954_v15  ;;  %2003 = vst [vmem:[#allocation2 + $0x18] sm:$0xff] %v7958_v16  ;;  %v7956_v23 = vadd.f32 %v1852_v21, %v844_v3  ;;  %v7960_v24 = vadd.f32 %v1895_v22, %v852_v4 }
 0x499   : > { %2008 = vst [vmem:[#allocation2 + $0x40] sm:$0xff] %v7955_v18  ;;  %2010 = vst [vmem:[#allocation2 + $0x50] sm:$0xff] %v7959_v19 }
 0x49a   : > { %2009 = vst [vmem:[#allocation2 + $0x48] sm:$0xff] %v7956_v23  ;;  %2011 = vst [vmem:[#allocation2 + $0x58] sm:$0xff] %v7960_v24 }
 0x4b4   : > { %v1932_v30 = vpop.f32.mrb[4].mxu0  ;;  %v1975_v31 = vpop.f32.mrb[4].mxu1 }
 0x4b5   : > { %v7961_v20 = vadd.f32 %v1932_v30, %v856_v7  ;;  %v7965_v32 = vadd.f32 %v1975_v31, %v864_v10  ;;  %v1934_v33 = vpop.f32.mrb[5].mxu0  ;;  %v1977_v34 = vpop.f32.mrb[5].mxu1 }
 0x4b6   : > { %v7962_v35 = vadd.f32 %v1934_v33, %v860_v13  ;;  %v7966_v36 = vadd.f32 %v1977_v34, %v868_v29  ;;  %v1936_v37 = vpop.f32.mrb[6].mxu0  ;;  %v1979_v38 = vpop.f32.mrb[6].mxu1 }
 0x4b7   : > { %2004 = vst [vmem:[#allocation2 + $0x20] sm:$0xff] %v7961_v20  ;;  %2006 = vst [vmem:[#allocation2 + $0x30] sm:$0xff] %v7965_v32  ;;  %v7963_v39 = vadd.f32 %v1936_v37, %v856_v7  ;;  %v7967_v40 = vadd.f32 %v1979_v38, %v864_v10  ;;  %v1938_v41 = vpop.f32.mrb[7].mxu0  ;;  %v1981_v42 = vpop.f32.mrb[7].mxu1 }
 0x4b8   : > { %2005 = vst [vmem:[#allocation2 + $0x28] sm:$0xff] %v7962_v35  ;;  %2007 = vst [vmem:[#allocation2 + $0x38] sm:$0xff] %v7966_v36  ;;  %v7964_v43 = vadd.f32 %v1938_v41, %v860_v13  ;;  %v7968_v44 = vadd.f32 %v1981_v42, %v868_v29 }
 0x4b9   : > { %2012 = vst [vmem:[#allocation2 + $0x60] sm:$0xff] %v7963_v39  ;;  %2014 = vst [vmem:[#allocation2 + $0x70] sm:$0xff] %v7967_v40 }
 0x4ba   : > { %2013 = vst [vmem:[#allocation2 + $0x68] sm:$0xff] %v7964_v43  ;;  %2015 = vst [vmem:[#allocation2 + $0x78] sm:$0xff] %v7968_v44 }
 0x4bb PF: > { %v2040_v45 = vld [vmem:[%s9323_s7] sm:$0xff]  ;;  %v2041_v47 = vld [vmem:[%s9323_s7 + $0x8] sm:$0xff]  ;;  %v9448_v34 = vld [vmem:[%s9304_s5] sm:$0xff] }
 0x4bc   : > { %v2044_v46 = vld [vmem:[%s9323_s7 + $0x20] sm:$0xff]  ;;  %v2045_v49 = vld [vmem:[%s9323_s7 + $0x28] sm:$0xff]  ;;  %v9451_v35 = vld [vmem:[%s9304_s5 + $0x20] sm:$0xff] }
 0x4bd   : > { %v7265_v48 = vcombine.high %v2040_v45, %v2044_v46  ;;  %v7264_v50 = vcombine.low %v2040_v45, %v2044_v46  ;;  %v2048_v51 = vld [vmem:[%s9323_s7 + $0x40] sm:$0xff]  ;;  %v7267_v53 = vcombine.high %v2041_v47, %v2045_v49  ;;  %v7266_v54 = vcombine.low %v2041_v47, %v2045_v49  ;;  %v2049_v56 = vld [vmem:[%s9323_s7 + $0x48] sm:$0xff] }
 0x4be   : > { %v2052_v52 = vld [vmem:[%s9323_s7 + $0x60] sm:$0xff]  ;;  %v2053_v57 = vld [vmem:[%s9323_s7 + $0x68] sm:$0xff]  ;;  %v9457_v39 = vcombine.high %v9448_v34, %v9451_v35 }
 0x4bf   : > { %v7273_v55 = vcombine.high %v2048_v51, %v2052_v52  ;;  %v2056_v58 = vld [vmem:[%s9323_s7 + $0x80] sm:$0xff]  ;;  %5152 = vmatprep.subr.bf16.mxu0 %v7265_v48  ;;  %v7275_v59 = vcombine.high %v2049_v56, %v2053_v57  ;;  %v2057_v61 = vld [vmem:[%s9323_s7 + $0x88] sm:$0xff]  ;;  %5324 = vmatprep.subr.bf16.mxu1 %v7267_v53  ;;  %v7272_v63 = vcombine.low %v2048_v51, %v2052_v52 }
 0x4c0   : > { %v2060_v60 = vld [vmem:[%s9323_s7 + $0xa0] sm:$0xff]  ;;  %v2061_v62 = vld [vmem:[%s9323_s7 + $0xa8] sm:$0xff]  ;;  %5153 = vmatpush1.bf16.msra.mxu0 %v7264_v50  ;;  %5325 = vmatpush1.bf16.msra.mxu1 %v7266_v54  ;;  %v7274_v0 = vcombine.low %v2049_v56, %v2053_v57 }
 0x4c1   : > { %5154 = vmatprep.subr.bf16.mxu0 %v7273_v55  ;;  %v7281_v1 = vcombine.high %v2056_v58, %v2060_v60  ;;  %5326 = vmatprep.subr.bf16.mxu1 %v7275_v59  ;;  %v7283_v2 = vcombine.high %v2057_v61, %v2061_v62  ;;  %v2064_v3 = vld [vmem:[%s9323_s7 + $0xc0] sm:$0xff]  ;;  %v2065_v6 = vld [vmem:[%s9323_s7 + $0xc8] sm:$0xff]  ;;  %v7280_v9 = vcombine.low %v2056_v58, %v2060_v60 }
 0x4c2   : > { %v2068_v4 = vld [vmem:[%s9323_s7 + $0xe0] sm:$0xff]  ;;  %v2069_v8 = vld [vmem:[%s9323_s7 + $0xe8] sm:$0xff]  ;;  %v7282_v11 = vcombine.low %v2057_v61, %v2061_v62  ;;  %5184 = vmatprep.mubr.bf16.mxu0 %v9457_v39  ;;  %5356 = vmatprep.mubr.bf16.mxu1 %v9457_v39 }
 0x4c3   : > { %v7289_v12 = vcombine.high %v2064_v3, %v2068_v4  ;;  %v7291_v14 = vcombine.high %v2065_v6, %v2069_v8  ;;  %v2072_v15 = vld [vmem:[%s9323_s7 + $0x100] sm:$0xff]  ;;  %v2073_v5 = vld [vmem:[%s9323_s7 + $0x108] sm:$0xff]  ;;  %v7288_v18 = vcombine.low %v2064_v3, %v2068_v4  ;;  %v7290_v19 = vcombine.low %v2065_v6, %v2069_v8 }
 0x4c4   : > { %5155 = vmatpush1.bf16.msra.mxu0 %v7272_v63  ;;  %5327 = vmatpush1.bf16.msra.mxu1 %v7274_v0  ;;  %v2076_v16 = vld [vmem:[%s9323_s7 + $0x120] sm:$0xff]  ;;  %v2077_v17 = vld [vmem:[%s9323_s7 + $0x128] sm:$0xff] }
 0x4c5   : > { %5156 = vmatprep.subr.bf16.mxu0 %v7281_v1  ;;  %5328 = vmatprep.subr.bf16.mxu1 %v7283_v2  ;;  %v7297_v21 = vcombine.high %v2072_v15, %v2076_v16  ;;  %v7299_v22 = vcombine.high %v2073_v5, %v2077_v17  ;;  %v2080_v23 = vld [vmem:[%s9323_s7 + $0x140] sm:$0xff]  ;;  %v2081_v25 = vld [vmem:[%s9323_s7 + $0x148] sm:$0xff]  ;;  %v7296_v27 = vcombine.low %v2072_v15, %v2076_v16 }
 0x4c6   : > { %v2084_v24 = vld [vmem:[%s9323_s7 + $0x160] sm:$0xff]  ;;  %v2085_v26 = vld [vmem:[%s9323_s7 + $0x168] sm:$0xff]  ;;  %v7298_v28 = vcombine.low %v2073_v5, %v2077_v17 }
 0x4c7   : > { %v7305_v7 = vcombine.high %v2080_v23, %v2084_v24  ;;  %v7307_v10 = vcombine.high %v2081_v25, %v2085_v26  ;;  %v2088_v13 = vld [vmem:[%s9323_s7 + $0x180] sm:$0xff]  ;;  %v2089_v30 = vld [vmem:[%s9323_s7 + $0x188] sm:$0xff]  ;;  %v7304_v20 = vcombine.low %v2080_v23, %v2084_v24  ;;  %v7306_v32 = vcombine.low %v2081_v25, %v2085_v26 }
 0x4c8   : > { %5157 = vmatpush1.bf16.msra.mxu0 %v7280_v9  ;;  %5329 = vmatpush1.bf16.msra.mxu1 %v7282_v11  ;;  %v2092_v29 = vld [vmem:[%s9323_s7 + $0x1a0] sm:$0xff]  ;;  %v2093_v31 = vld [vmem:[%s9323_s7 + $0x1a8] sm:$0xff] }
 0x4c9   : > { %5158 = vmatprep.subr.bf16.mxu0 %v7289_v12  ;;  %5330 = vmatprep.subr.bf16.mxu1 %v7291_v14  ;;  %v7313_v33 = vcombine.high %v2088_v13, %v2092_v29  ;;  %v7315_v36 = vcombine.high %v2089_v30, %v2093_v31  ;;  %v2096_v37 = vld [vmem:[%s9323_s7 + $0x1c0] sm:$0xff]  ;;  %v2097_v40 = vld [vmem:[%s9323_s7 + $0x1c8] sm:$0xff]  ;;  %v7312_v42 = vcombine.low %v2088_v13, %v2092_v29 }
 0x4ca   : > { %v2100_v38 = vld [vmem:[%s9323_s7 + $0x1e0] sm:$0xff]  ;;  %v2101_v41 = vld [vmem:[%s9323_s7 + $0x1e8] sm:$0xff]  ;;  %v7314_v43 = vcombine.low %v2089_v30, %v2093_v31 }
 0x4cb   : > { %v7321_v44 = vcombine.high %v2096_v37, %v2100_v38  ;;  %v7323_v45 = vcombine.high %v2097_v40, %v2101_v41  ;;  %v2104_v46 = vld [vmem:[%s9323_s7 + $0x200] sm:$0xff]  ;;  %v2105_v48 = vld [vmem:[%s9323_s7 + $0x208] sm:$0xff]  ;;  %v7320_v50 = vcombine.low %v2096_v37, %v2100_v38  ;;  %v7322_v51 = vcombine.low %v2097_v40, %v2101_v41 }
 0x4cc   : > { %5159 = vmatpush1.bf16.msra.mxu0 %v7288_v18  ;;  %5331 = vmatpush1.bf16.msra.mxu1 %v7290_v19  ;;  %v2108_v47 = vld [vmem:[%s9323_s7 + $0x220] sm:$0xff]  ;;  %v2109_v49 = vld [vmem:[%s9323_s7 + $0x228] sm:$0xff] }
 0x4cd   : > { %5160 = vmatprep.subr.bf16.mxu0 %v7297_v21  ;;  %5332 = vmatprep.subr.bf16.mxu1 %v7299_v22  ;;  %v7329_v52 = vcombine.high %v2104_v46, %v2108_v47  ;;  %v7331_v53 = vcombine.high %v2105_v48, %v2109_v49  ;;  %v2112_v54 = vld [vmem:[%s9323_s7 + $0x240] sm:$0xff]  ;;  %v2113_v56 = vld [vmem:[%s9323_s7 + $0x248] sm:$0xff]  ;;  %v7328_v58 = vcombine.low %v2104_v46, %v2108_v47 }
 0x4ce   : > { %v2116_v55 = vld [vmem:[%s9323_s7 + $0x260] sm:$0xff]  ;;  %v2117_v57 = vld [vmem:[%s9323_s7 + $0x268] sm:$0xff]  ;;  %v7330_v59 = vcombine.low %v2105_v48, %v2109_v49 }
 0x4cf   : > { %v7337_v60 = vcombine.high %v2112_v54, %v2116_v55  ;;  %v7339_v61 = vcombine.high %v2113_v56, %v2117_v57  ;;  %v2120_v62 = vld [vmem:[%s9323_s7 + $0x280] sm:$0xff]  ;;  %v2121_v0 = vld [vmem:[%s9323_s7 + $0x288] sm:$0xff]  ;;  %v7336_v2 = vcombine.low %v2112_v54, %v2116_v55  ;;  %v7338_v3 = vcombine.low %v2113_v56, %v2117_v57 }
 0x4d0   : > { %5161 = vmatpush1.bf16.msra.mxu0 %v7296_v27  ;;  %5333 = vmatpush1.bf16.msra.mxu1 %v7298_v28  ;;  %v2124_v63 = vld [vmem:[%s9323_s7 + $0x2a0] sm:$0xff]  ;;  %v2125_v1 = vld [vmem:[%s9323_s7 + $0x2a8] sm:$0xff] }
 0x4d1   : > { %5162 = vmatprep.subr.bf16.mxu0 %v7305_v7  ;;  %5334 = vmatprep.subr.bf16.mxu1 %v7307_v10  ;;  %v7345_v4 = vcombine.high %v2120_v62, %v2124_v63  ;;  %v7347_v6 = vcombine.high %v2121_v0, %v2125_v1  ;;  %v2128_v8 = vld [vmem:[%s9323_s7 + $0x2c0] sm:$0xff]  ;;  %v2129_v11 = vld [vmem:[%s9323_s7 + $0x2c8] sm:$0xff]  ;;  %v7344_v14 = vcombine.low %v2120_v62, %v2124_v63  ;;  %v9508_v62 = vld [vmem:[%s9304_s5 + $0x8] sm:$0xff] }
 0x4d2   : > { %v2132_v9 = vld [vmem:[%s9323_s7 + $0x2e0] sm:$0xff]  ;;  %v2133_v12 = vld [vmem:[%s9323_s7 + $0x2e8] sm:$0xff]  ;;  %v7346_v15 = vcombine.low %v2121_v0, %v2125_v1  ;;  %v9511_v63 = vld [vmem:[%s9304_s5 + $0x28] sm:$0xff] }
 0x4d3   : > { %v7353_v16 = vcombine.high %v2128_v8, %v2132_v9  ;;  %v7355_v5 = vcombine.high %v2129_v11, %v2133_v12  ;;  %v2136_v17 = vld [vmem:[%s9323_s7 + $0x300] sm:$0xff]  ;;  %v2137_v19 = vld [vmem:[%s9323_s7 + $0x308] sm:$0xff]  ;;  %v7352_v22 = vcombine.low %v2128_v8, %v2132_v9  ;;  %v7354_v23 = vcombine.low %v2129_v11, %v2133_v12 }
 0x4d4   : > { %5163 = vmatpush1.bf16.msra.mxu0 %v7304_v20  ;;  %5335 = vmatpush1.bf16.msra.mxu1 %v7306_v32  ;;  %v2140_v18 = vld [vmem:[%s9323_s7 + $0x320] sm:$0xff]  ;;  %v2141_v21 = vld [vmem:[%s9323_s7 + $0x328] sm:$0xff] }
 0x4d5   : > { %5164 = vmatprep.subr.bf16.mxu0 %v7313_v33  ;;  %5336 = vmatprep.subr.bf16.mxu1 %v7315_v36  ;;  %v7361_v24 = vcombine.high %v2136_v17, %v2140_v18  ;;  %v7363_v25 = vcombine.high %v2137_v19, %v2141_v21  ;;  %v2144_v26 = vld [vmem:[%s9323_s7 + $0x340] sm:$0xff]  ;;  %v2145_v28 = vld [vmem:[%s9323_s7 + $0x348] sm:$0xff]  ;;  %v7360_v10 = vcombine.low %v2136_v17, %v2140_v18 }
 0x4d6   : > { %v2148_v27 = vld [vmem:[%s9323_s7 + $0x360] sm:$0xff]  ;;  %v2149_v7 = vld [vmem:[%s9323_s7 + $0x368] sm:$0xff]  ;;  %v7362_v13 = vcombine.low %v2137_v19, %v2141_v21 }
 0x4d7   : > { %v7369_v29 = vcombine.high %v2144_v26, %v2148_v27  ;;  %v7371_v30 = vcombine.high %v2145_v28, %v2149_v7  ;;  %v2152_v31 = vld [vmem:[%s9323_s7 + $0x380] sm:$0xff]  ;;  %v2153_v32 = vld [vmem:[%s9323_s7 + $0x388] sm:$0xff]  ;;  %v7368_v36 = vcombine.low %v2144_v26, %v2148_v27  ;;  %v7370_v37 = vcombine.low %v2145_v28, %v2149_v7 }
 0x4d8   : > { %5165 = vmatpush1.bf16.msra.mxu0 %v7312_v42  ;;  %5337 = vmatpush1.bf16.msra.mxu1 %v7314_v43  ;;  %v2156_v20 = vld [vmem:[%s9323_s7 + $0x3a0] sm:$0xff]  ;;  %v2157_v33 = vld [vmem:[%s9323_s7 + $0x3a8] sm:$0xff] }
 0x4d9   : > { %5166 = vmatprep.subr.bf16.mxu0 %v7321_v44  ;;  %5338 = vmatprep.subr.bf16.mxu1 %v7323_v45  ;;  %v7377_v38 = vcombine.high %v2152_v31, %v2156_v20  ;;  %v7379_v40 = vcombine.high %v2153_v32, %v2157_v33  ;;  %v2160_v41 = vld [vmem:[%s9323_s7 + $0x3c0] sm:$0xff]  ;;  %v2161_v43 = vld [vmem:[%s9323_s7 + $0x3c8] sm:$0xff]  ;;  %v7376_v45 = vcombine.low %v2152_v31, %v2156_v20 }
 0x4da   : > { %v2164_v42 = vld [vmem:[%s9323_s7 + $0x3e0] sm:$0xff]  ;;  %v2165_v44 = vld [vmem:[%s9323_s7 + $0x3e8] sm:$0xff]  ;;  %v7378_v46 = vcombine.low %v2153_v32, %v2157_v33 }
 0x4db   : > { %v7385_v47 = vcombine.high %v2160_v41, %v2164_v42  ;;  %v7387_v48 = vcombine.high %v2161_v43, %v2165_v44  ;;  %v2168_v49 = vld [vmem:[%s9323_s7 + $0x400] sm:$0xff]  ;;  %v7386_v54 = vcombine.low %v2161_v43, %v2165_v44  ;;  %v2189_v8 = vld [vmem:[%s9323_s7 + $0x4a8] sm:$0xff] }
 0x4dc   : > { %5167 = vmatpush1.bf16.msra.mxu0 %v7320_v50  ;;  %5339 = vmatpush1.bf16.msra.mxu1 %v7322_v51  ;;  %v2172_v50 = vld [vmem:[%s9323_s7 + $0x420] sm:$0xff]  ;;  %v2169_v51 = vld [vmem:[%s9323_s7 + $0x408] sm:$0xff] }
 0x4dd   : > { %5168 = vmatprep.subr.bf16.mxu0 %v7329_v52  ;;  %5340 = vmatprep.subr.bf16.mxu1 %v7331_v53  ;;  %v2173_v52 = vld [vmem:[%s9323_s7 + $0x428] sm:$0xff]  ;;  %v7384_v53 = vcombine.low %v2160_v41, %v2164_v42  ;;  %v7393_v55 = vcombine.high %v2168_v49, %v2172_v50  ;;  %v2176_v57 = vld [vmem:[%s9323_s7 + $0x440] sm:$0xff]  ;;  %v7392_v0 = vcombine.low %v2168_v49, %v2172_v50 }
 0x4de   : > { %v7395_v56 = vcombine.high %v2169_v51, %v2173_v52  ;;  %v7394_v1 = vcombine.low %v2169_v51, %v2173_v52  ;;  %v2197_v17 = vld [vmem:[%s9323_s7 + $0x4e8] sm:$0xff] }
 0x4df   : > { %v2205_v26 = vld [vmem:[%s9323_s7 + $0x528] sm:$0xff] }
 0x4e0   : > { %5169 = vmatpush1.bf16.msra.mxu0 %v7328_v58  ;;  %5341 = vmatpush1.bf16.msra.mxu1 %v7330_v59  ;;  %v2180_v58 = vld [vmem:[%s9323_s7 + $0x460] sm:$0xff]  ;;  %v2177_v59 = vld [vmem:[%s9323_s7 + $0x448] sm:$0xff] }
 0x4e1   : > { %5170 = vmatprep.subr.bf16.mxu0 %v7337_v60  ;;  %5342 = vmatprep.subr.bf16.mxu1 %v7339_v61  ;;  %v9504_v60 = vcombine.low %v9448_v34, %v9451_v35  ;;  %v2181_v61 = vld [vmem:[%s9323_s7 + $0x468] sm:$0xff]  ;;  %v2188_v34 = vld [vmem:[%s9323_s7 + $0x4a0] sm:$0xff]  ;;  %v9517_v35 = vcombine.high %v9508_v62, %v9511_v63  ;;  %v7400_v9 = vcombine.low %v2176_v57, %v2180_v58 }
 0x4e2   : > { %v7402_v11 = vcombine.low %v2177_v59, %v2181_v61  ;;  %v2213_v31 = vld [vmem:[%s9323_s7 + $0x568] sm:$0xff] }
 0x4e3   : > { %v2221_v41 = vld [vmem:[%s9323_s7 + $0x5a8] sm:$0xff] }
 0x4e4   : > { %5171 = vmatpush1.bf16.msra.mxu0 %v7336_v2  ;;  %5343 = vmatpush1.bf16.msra.mxu1 %v7338_v3  ;;  %v7401_v2 = vcombine.high %v2176_v57, %v2180_v58  ;;  %v7403_v3 = vcombine.high %v2177_v59, %v2181_v61  ;;  %v2229_v49 = vld [vmem:[%s9323_s7 + $0x5e8] sm:$0xff] }
 0x4e5   : > { %5172 = vmatprep.subr.bf16.mxu0 %v7345_v4  ;;  %5344 = vmatprep.subr.bf16.mxu1 %v7347_v6  ;;  %v2184_v4 = vld [vmem:[%s9323_s7 + $0x480] sm:$0xff]  ;;  %v2185_v6 = vld [vmem:[%s9323_s7 + $0x488] sm:$0xff] }
 0x4e6   : > { %v7409_v12 = vcombine.high %v2184_v4, %v2188_v34  ;;  %v7408_v18 = vcombine.low %v2184_v4, %v2188_v34  ;;  %v7410_v19 = vcombine.low %v2185_v6, %v2189_v8  ;;  %v2237_v57 = vld [vmem:[%s9323_s7 + $0x628] sm:$0xff] }
 0x4e7   : > { %v2245_v4 = vld [vmem:[%s9323_s7 + $0x668] sm:$0xff] }
 0x4e8   : > { %5173 = vmatpush1.bf16.msra.mxu0 %v7344_v14  ;;  %5345 = vmatpush1.bf16.msra.mxu1 %v7346_v15  ;;  %v7411_v14 = vcombine.high %v2185_v6, %v2189_v8  ;;  %v2192_v15 = vld [vmem:[%s9323_s7 + $0x4c0] sm:$0xff] }
 0x4e9   : > { %5174 = vmatprep.subr.bf16.mxu0 %v7353_v16  ;;  %5346 = vmatprep.subr.bf16.mxu1 %v7355_v5  ;;  %v2196_v16 = vld [vmem:[%s9323_s7 + $0x4e0] sm:$0xff]  ;;  %v2193_v5 = vld [vmem:[%s9323_s7 + $0x4c8] sm:$0xff] }
 0x4ea   : > { %v7417_v21 = vcombine.high %v2192_v15, %v2196_v16  ;;  %v7416_v27 = vcombine.low %v2192_v15, %v2196_v16  ;;  %v7418_v28 = vcombine.low %v2193_v5, %v2197_v17  ;;  %v2253_v15 = vld [vmem:[%s9323_s7 + $0x6a8] sm:$0xff] }
 0x4ec   : > { %5175 = vmatpush1.bf16.msra.mxu0 %v7352_v22  ;;  %5347 = vmatpush1.bf16.msra.mxu1 %v7354_v23  ;;  %v7419_v22 = vcombine.high %v2193_v5, %v2197_v17  ;;  %v2200_v23 = vld [vmem:[%s9323_s7 + $0x500] sm:$0xff] }
 0x4ed   : > { %5176 = vmatprep.subr.bf16.mxu0 %v7361_v24  ;;  %5348 = vmatprep.subr.bf16.mxu1 %v7363_v25  ;;  %v2204_v24 = vld [vmem:[%s9323_s7 + $0x520] sm:$0xff]  ;;  %v2201_v25 = vld [vmem:[%s9323_s7 + $0x508] sm:$0xff] }
 0x4ee   : > { %v7425_v7 = vcombine.high %v2200_v23, %v2204_v24  ;;  %v7424_v20 = vcombine.low %v2200_v23, %v2204_v24  ;;  %v7426_v32 = vcombine.low %v2201_v25, %v2205_v26  ;;  %v2261_v23 = vld [vmem:[%s9323_s7 + $0x6e8] sm:$0xff] }
 0x4f0   : > { %5177 = vmatpush1.bf16.msra.mxu0 %v7360_v10  ;;  %5349 = vmatpush1.bf16.msra.mxu1 %v7362_v13  ;;  %v7427_v10 = vcombine.high %v2201_v25, %v2205_v26  ;;  %v2208_v13 = vld [vmem:[%s9323_s7 + $0x540] sm:$0xff] }
 0x4f1   : > { %5178 = vmatprep.subr.bf16.mxu0 %v7369_v29  ;;  %5350 = vmatprep.subr.bf16.mxu1 %v7371_v30  ;;  %v2212_v29 = vld [vmem:[%s9323_s7 + $0x560] sm:$0xff]  ;;  %v2209_v30 = vld [vmem:[%s9323_s7 + $0x548] sm:$0xff] }
 0x4f2   : > { %v7433_v33 = vcombine.high %v2208_v13, %v2212_v29  ;;  %v7432_v42 = vcombine.low %v2208_v13, %v2212_v29  ;;  %v7434_v43 = vcombine.low %v2209_v30, %v2213_v31  ;;  %v2269_v13 = vld [vmem:[%s9323_s7 + $0x728] sm:$0xff] }
 0x4f4   : > { %5179 = vmatpush1.bf16.msra.mxu0 %v7368_v36  ;;  %5351 = vmatpush1.bf16.msra.mxu1 %v7370_v37  ;;  %v7435_v36 = vcombine.high %v2209_v30, %v2213_v31  ;;  %v2216_v37 = vld [vmem:[%s9323_s7 + $0x580] sm:$0xff] }
 0x4f5   : > { %5180 = vmatprep.subr.bf16.mxu0 %v7377_v38  ;;  %5352 = vmatprep.subr.bf16.mxu1 %v7379_v40  ;;  %v2220_v38 = vld [vmem:[%s9323_s7 + $0x5a0] sm:$0xff]  ;;  %v2217_v40 = vld [vmem:[%s9323_s7 + $0x588] sm:$0xff] }
 0x4f6   : > { %v7441_v44 = vcombine.high %v2216_v37, %v2220_v38  ;;  %v7440_v50 = vcombine.low %v2216_v37, %v2220_v38  ;;  %v7442_v51 = vcombine.low %v2217_v40, %v2221_v41  ;;  %v2277_v37 = vld [vmem:[%s9323_s7 + $0x768] sm:$0xff] }
 0x4f8   : > { %5181 = vmatpush1.bf16.msra.mxu0 %v7376_v45  ;;  %5353 = vmatpush1.bf16.msra.mxu1 %v7378_v46  ;;  %v7443_v45 = vcombine.high %v2217_v40, %v2221_v41  ;;  %v2224_v46 = vld [vmem:[%s9323_s7 + $0x5c0] sm:$0xff] }
 0x4f9   : > { %5182 = vmatprep.subr.bf16.mxu0 %v7385_v47  ;;  %5354 = vmatprep.subr.bf16.mxu1 %v7387_v48  ;;  %v2228_v47 = vld [vmem:[%s9323_s7 + $0x5e0] sm:$0xff]  ;;  %v2225_v48 = vld [vmem:[%s9323_s7 + $0x5c8] sm:$0xff] }
 0x4fa   : > { %v7449_v52 = vcombine.high %v2224_v46, %v2228_v47  ;;  %v7448_v58 = vcombine.low %v2224_v46, %v2228_v47  ;;  %v7450_v59 = vcombine.low %v2225_v48, %v2229_v49  ;;  %v2285_v46 = vld [vmem:[%s9323_s7 + $0x7a8] sm:$0xff] }
 0x4fc   : > { %5183 = vmatpush1.bf16.msra.mxu0 %v7384_v53  ;;  %5355 = vmatpush1.bf16.msra.mxu1 %v7386_v54  ;;  %v7451_v53 = vcombine.high %v2225_v48, %v2229_v49  ;;  %v2232_v54 = vld [vmem:[%s9323_s7 + $0x600] sm:$0xff] }
 0x4fd   : > { %5195 = vmatprep.subr.bf16.mxu0 %v7393_v55  ;;  %5367 = vmatprep.subr.bf16.mxu1 %v7395_v56  ;;  %v2236_v55 = vld [vmem:[%s9323_s7 + $0x620] sm:$0xff]  ;;  %v2233_v56 = vld [vmem:[%s9323_s7 + $0x608] sm:$0xff] }
 0x4fe   : > { %v7457_v61 = vcombine.high %v2232_v54, %v2236_v55  ;;  %v7456_v34 = vcombine.low %v2232_v54, %v2236_v55  ;;  %v7458_v6 = vcombine.low %v2233_v56, %v2237_v57  ;;  %v2293_v54 = vld [vmem:[%s9323_s7 + $0x7e8] sm:$0xff] }
 0x4ff   : > { %5185 = vmatmul.mubr.bf16.vlgmr.msra.gmra.mrb[0].mxu0 %v9504_v60  ;;  %5357 = vmatmul.mubr.bf16.vlgmr.msra.gmra.mrb[0].mxu1 %v9504_v60 }
 0x500   : > { %5196 = vmatpush1.bf16.msra.mxu0 %v7392_v0  ;;  %5368 = vmatpush1.bf16.msra.mxu1 %v7394_v1  ;;  %v7459_v0 = vcombine.high %v2233_v56, %v2237_v57  ;;  %v2240_v1 = vld [vmem:[%s9323_s7 + $0x640] sm:$0xff] }
 0x501   : > { %5197 = vmatprep.subr.bf16.mxu0 %v7401_v2  ;;  %5369 = vmatprep.subr.bf16.mxu1 %v7403_v3  ;;  %v2244_v2 = vld [vmem:[%s9323_s7 + $0x660] sm:$0xff]  ;;  %v2241_v3 = vld [vmem:[%s9323_s7 + $0x648] sm:$0xff] }
 0x502   : > { %5227 = vmatprep.mubr.bf16.mxu0 %v9517_v35  ;;  %5399 = vmatprep.mubr.bf16.mxu1 %v9517_v35  ;;  %v7465_v8 = vcombine.high %v2240_v1, %v2244_v2  ;;  %v7464_v16 = vcombine.low %v2240_v1, %v2244_v2  ;;  %v7466_v5 = vcombine.low %v2241_v3, %v2245_v4  ;;  %v2301_v1 = vld [vmem:[%s9323_s7 + $0x828] sm:$0xff] }
 0x504   : > { %5198 = vmatpush1.bf16.msra.mxu0 %v7400_v9  ;;  %5370 = vmatpush1.bf16.msra.mxu1 %v7402_v11  ;;  %v7467_v9 = vcombine.high %v2241_v3, %v2245_v4  ;;  %v2248_v11 = vld [vmem:[%s9323_s7 + $0x680] sm:$0xff] }
 0x505   : > { %5199 = vmatprep.subr.bf16.mxu0 %v7409_v12  ;;  %5371 = vmatprep.subr.bf16.mxu1 %v7411_v14  ;;  %v2252_v12 = vld [vmem:[%s9323_s7 + $0x6a0] sm:$0xff]  ;;  %v2249_v14 = vld [vmem:[%s9323_s7 + $0x688] sm:$0xff] }
 0x506   : > { %v7473_v17 = vcombine.high %v2248_v11, %v2252_v12  ;;  %v7472_v24 = vcombine.low %v2248_v11, %v2252_v12  ;;  %v7474_v25 = vcombine.low %v2249_v14, %v2253_v15  ;;  %v9586_v11 = vcombine.low %v9508_v62, %v9511_v63  ;;  %v2309_v12 = vld [vmem:[%s9323_s7 + $0x868] sm:$0xff]  ;;  %v2316_v62 = vld [vmem:[%s9323_s7 + $0x8a0] sm:$0xff] }
 0x508   : > { %5200 = vmatpush1.bf16.msra.mxu0 %v7408_v18  ;;  %5372 = vmatpush1.bf16.msra.mxu1 %v7410_v19  ;;  %v7475_v18 = vcombine.high %v2249_v14, %v2253_v15  ;;  %v2256_v19 = vld [vmem:[%s9323_s7 + $0x6c0] sm:$0xff] }
 0x509   : > { %5201 = vmatprep.subr.bf16.mxu0 %v7417_v21  ;;  %5373 = vmatprep.subr.bf16.mxu1 %v7419_v22  ;;  %v2260_v21 = vld [vmem:[%s9323_s7 + $0x6e0] sm:$0xff]  ;;  %v2257_v22 = vld [vmem:[%s9323_s7 + $0x6c8] sm:$0xff] }
 0x50a   : > { %v7481_v26 = vcombine.high %v2256_v19, %v2260_v21  ;;  %v7480_v29 = vcombine.low %v2256_v19, %v2260_v21  ;;  %v7482_v30 = vcombine.low %v2257_v22, %v2261_v23  ;;  %v9590_v14 = vld [vmem:[%s9304_s5 + $0x10] sm:$0xff]  ;;  %v2313_v21 = vld [vmem:[%s9323_s7 + $0x888] sm:$0xff] }
 0x50b   : > { %v9593_v15 = vld [vmem:[%s9304_s5 + $0x30] sm:$0xff] }
 0x50c   : > { %5202 = vmatpush1.bf16.msra.mxu0 %v7416_v27  ;;  %5374 = vmatpush1.bf16.msra.mxu1 %v7418_v28  ;;  %v7483_v27 = vcombine.high %v2257_v22, %v2261_v23  ;;  %v2264_v28 = vld [vmem:[%s9323_s7 + $0x700] sm:$0xff]  ;;  %v9599_v63 = vcombine.high %v9590_v14, %v9593_v15  ;;  %v2317_v22 = vld [vmem:[%s9323_s7 + $0x8a8] sm:$0xff] }
 0x50d   : > { %5203 = vmatprep.subr.bf16.mxu0 %v7425_v7  ;;  %5375 = vmatprep.subr.bf16.mxu1 %v7427_v10  ;;  %v2268_v7 = vld [vmem:[%s9323_s7 + $0x720] sm:$0xff]  ;;  %v2265_v10 = vld [vmem:[%s9323_s7 + $0x708] sm:$0xff] }
 0x50e   : > { %v7489_v31 = vcombine.high %v2264_v28, %v2268_v7  ;;  %v7488_v38 = vcombine.low %v2264_v28, %v2268_v7  ;;  %v7490_v40 = vcombine.low %v2265_v10, %v2269_v13  ;;  %v2312_v19 = vld [vmem:[%s9323_s7 + $0x880] sm:$0xff]  ;;  %v2321_v7 = vld [vmem:[%s9323_s7 + $0x8c8] sm:$0xff] }
 0x50f   : > { %v2324_v28 = vld [vmem:[%s9323_s7 + $0x8e0] sm:$0xff] }
 0x510   : > { %5204 = vmatpush1.bf16.msra.mxu0 %v7424_v20  ;;  %5376 = vmatpush1.bf16.msra.mxu1 %v7426_v32  ;;  %v7491_v20 = vcombine.high %v2265_v10, %v2269_v13  ;;  %v2272_v32 = vld [vmem:[%s9323_s7 + $0x740] sm:$0xff]  ;;  %v2325_v10 = vld [vmem:[%s9323_s7 + $0x8e8] sm:$0xff]  ;;  %v7536_v13 = vcombine.low %v2312_v19, %v2316_v62 }
 0x511   : > { %5205 = vmatprep.subr.bf16.mxu0 %v7433_v33  ;;  %5377 = vmatprep.subr.bf16.mxu1 %v7435_v36  ;;  %v2276_v33 = vld [vmem:[%s9323_s7 + $0x760] sm:$0xff]  ;;  %v2273_v36 = vld [vmem:[%s9323_s7 + $0x748] sm:$0xff] }
 0x512   : > { %v7497_v41 = vcombine.high %v2272_v32, %v2276_v33  ;;  %v7496_v47 = vcombine.low %v2272_v32, %v2276_v33  ;;  %v7498_v48 = vcombine.low %v2273_v36, %v2277_v37  ;;  %v2332_v32 = vld [vmem:[%s9323_s7 + $0x920] sm:$0xff]  ;;  %v2329_v33 = vld [vmem:[%s9323_s7 + $0x908] sm:$0xff] }
 0x514   : > { %5206 = vmatpush1.bf16.msra.mxu0 %v7432_v42  ;;  %5378 = vmatpush1.bf16.msra.mxu1 %v7434_v43  ;;  %v7499_v42 = vcombine.high %v2273_v36, %v2277_v37  ;;  %v2280_v43 = vld [vmem:[%s9323_s7 + $0x780] sm:$0xff]  ;;  %v2333_v36 = vld [vmem:[%s9323_s7 + $0x928] sm:$0xff] }
 0x515   : > { %5207 = vmatprep.subr.bf16.mxu0 %v7441_v44  ;;  %5379 = vmatprep.subr.bf16.mxu1 %v7443_v45  ;;  %v2284_v44 = vld [vmem:[%s9323_s7 + $0x7a0] sm:$0xff]  ;;  %v2281_v45 = vld [vmem:[%s9323_s7 + $0x788] sm:$0xff] }
 0x516   : > { %v7505_v49 = vcombine.high %v2280_v43, %v2284_v44  ;;  %v7504_v55 = vcombine.low %v2280_v43, %v2284_v44  ;;  %v7506_v56 = vcombine.low %v2281_v45, %v2285_v46  ;;  %v2340_v43 = vld [vmem:[%s9323_s7 + $0x960] sm:$0xff]  ;;  %v2337_v44 = vld [vmem:[%s9323_s7 + $0x948] sm:$0xff] }
 0x518   : > { %5208 = vmatpush1.bf16.msra.mxu0 %v7440_v50  ;;  %5380 = vmatpush1.bf16.msra.mxu1 %v7442_v51  ;;  %v7507_v50 = vcombine.high %v2281_v45, %v2285_v46  ;;  %v2288_v51 = vld [vmem:[%s9323_s7 + $0x7c0] sm:$0xff]  ;;  %v2341_v45 = vld [vmem:[%s9323_s7 + $0x968] sm:$0xff] }
 0x519   : > { %5209 = vmatprep.subr.bf16.mxu0 %v7449_v52  ;;  %5381 = vmatprep.subr.bf16.mxu1 %v7451_v53  ;;  %v2292_v52 = vld [vmem:[%s9323_s7 + $0x7e0] sm:$0xff]  ;;  %v2289_v53 = vld [vmem:[%s9323_s7 + $0x7c8] sm:$0xff] }
 0x51a   : > { %v7513_v57 = vcombine.high %v2288_v51, %v2292_v52  ;;  %v7512_v2 = vcombine.low %v2288_v51, %v2292_v52  ;;  %v7514_v3 = vcombine.low %v2289_v53, %v2293_v54  ;;  %v2348_v51 = vld [vmem:[%s9323_s7 + $0x9a0] sm:$0xff]  ;;  %v2345_v52 = vld [vmem:[%s9323_s7 + $0x988] sm:$0xff] }
 0x51c   : > { %5210 = vmatpush1.bf16.msra.mxu0 %v7448_v58  ;;  %5382 = vmatpush1.bf16.msra.mxu1 %v7450_v59  ;;  %v7515_v58 = vcombine.high %v2289_v53, %v2293_v54  ;;  %v2296_v59 = vld [vmem:[%s9323_s7 + $0x800] sm:$0xff]  ;;  %v2349_v53 = vld [vmem:[%s9323_s7 + $0x9a8] sm:$0xff] }
 0x51d   : > { %5211 = vmatprep.subr.bf16.mxu0 %v7457_v61  ;;  %5383 = vmatprep.subr.bf16.mxu1 %v7459_v0  ;;  %v2300_v61 = vld [vmem:[%s9323_s7 + $0x820] sm:$0xff]  ;;  %v2297_v0 = vld [vmem:[%s9323_s7 + $0x808] sm:$0xff] }
 0x51e   : > { %v7521_v4 = vcombine.high %v2296_v59, %v2300_v61 }
 0x520   : > { %5212 = vmatpush1.bf16.msra.mxu0 %v7456_v34  ;;  %5384 = vmatpush1.bf16.msra.mxu1 %v7458_v6  ;;  %v7523_v34 = vcombine.high %v2297_v0, %v2301_v1  ;;  %v2304_v6 = vld [vmem:[%s9323_s7 + $0x840] sm:$0xff] }
 0x521   : > { %5213 = vmatprep.subr.bf16.mxu0 %v7465_v8  ;;  %5385 = vmatprep.subr.bf16.mxu1 %v7467_v9  ;;  %v2308_v8 = vld [vmem:[%s9323_s7 + $0x860] sm:$0xff]  ;;  %v2305_v9 = vld [vmem:[%s9323_s7 + $0x848] sm:$0xff] }
 0x522   : > { %v7528_v23 = vcombine.low %v2304_v6, %v2308_v8 }
 0x524   : > { %5214 = vmatpush1.bf16.msra.mxu0 %v7464_v16  ;;  %5386 = vmatpush1.bf16.msra.mxu1 %v7466_v5  ;;  %v7520_v16 = vcombine.low %v2296_v59, %v2300_v61  ;;  %v7522_v5 = vcombine.low %v2297_v0, %v2301_v1  ;;  %v2356_v59 = vld [vmem:[%s9323_s7 + $0x9e0] sm:$0xff]  ;;  %v2353_v61 = vld [vmem:[%s9323_s7 + $0x9c8] sm:$0xff] }
 0x525   : > { %5215 = vmatprep.subr.bf16.mxu0 %v7473_v17  ;;  %5387 = vmatprep.subr.bf16.mxu1 %v7475_v18  ;;  %v7529_v17 = vcombine.high %v2304_v6, %v2308_v8  ;;  %v7531_v18 = vcombine.high %v2305_v9, %v2309_v12  ;;  %v2357_v0 = vld [vmem:[%s9323_s7 + $0x9e8] sm:$0xff]  ;;  %v2364_v6 = vld [vmem:[%s9323_s7 + $0xa20] sm:$0xff] }
 0x526   : > { %v2361_v8 = vld [vmem:[%s9323_s7 + $0xa08] sm:$0xff] }
 0x528   : > { %5216 = vmatpush1.bf16.msra.mxu0 %v7472_v24  ;;  %5388 = vmatpush1.bf16.msra.mxu1 %v7474_v25  ;;  %v7530_v24 = vcombine.low %v2305_v9, %v2309_v12  ;;  %v7537_v25 = vcombine.high %v2312_v19, %v2316_v62  ;;  %v2365_v9 = vld [vmem:[%s9323_s7 + $0xa28] sm:$0xff]  ;;  %v2372_v19 = vld [vmem:[%s9323_s7 + $0xa60] sm:$0xff] }
 0x529   : > { %5217 = vmatprep.subr.bf16.mxu0 %v7481_v26  ;;  %5389 = vmatprep.subr.bf16.mxu1 %v7483_v27  ;;  %v7539_v26 = vcombine.high %v2313_v21, %v2317_v22  ;;  %v2320_v27 = vld [vmem:[%s9323_s7 + $0x8c0] sm:$0xff]  ;;  %v2369_v62 = vld [vmem:[%s9323_s7 + $0xa48] sm:$0xff] }
 0x52a   : > { %v7544_v37 = vcombine.low %v2320_v27, %v2324_v28 }
 0x52c   : > { %5218 = vmatpush1.bf16.msra.mxu0 %v7480_v29  ;;  %5390 = vmatpush1.bf16.msra.mxu1 %v7482_v30  ;;  %v7538_v29 = vcombine.low %v2313_v21, %v2317_v22  ;;  %v7545_v30 = vcombine.high %v2320_v27, %v2324_v28  ;;  %v2373_v21 = vld [vmem:[%s9323_s7 + $0xa68] sm:$0xff]  ;;  %v2380_v27 = vld [vmem:[%s9323_s7 + $0xaa0] sm:$0xff] }
 0x52d   : > { %5219 = vmatprep.subr.bf16.mxu0 %v7489_v31  ;;  %5391 = vmatprep.subr.bf16.mxu1 %v7491_v20  ;;  %v7547_v31 = vcombine.high %v2321_v7, %v2325_v10  ;;  %v2328_v20 = vld [vmem:[%s9323_s7 + $0x900] sm:$0xff]  ;;  %v2377_v28 = vld [vmem:[%s9323_s7 + $0xa88] sm:$0xff] }
 0x52e   : > { %v7552_v46 = vcombine.low %v2328_v20, %v2332_v32 }
 0x530   : > { %5220 = vmatpush1.bf16.msra.mxu0 %v7488_v38  ;;  %5392 = vmatpush1.bf16.msra.mxu1 %v7490_v40  ;;  %v7546_v38 = vcombine.low %v2321_v7, %v2325_v10  ;;  %v7553_v40 = vcombine.high %v2328_v20, %v2332_v32  ;;  %v2381_v7 = vld [vmem:[%s9323_s7 + $0xaa8] sm:$0xff]  ;;  %v2388_v20 = vld [vmem:[%s9323_s7 + $0xae0] sm:$0xff] }
 0x531   : > { %5221 = vmatprep.subr.bf16.mxu0 %v7497_v41  ;;  %5393 = vmatprep.subr.bf16.mxu1 %v7499_v42  ;;  %v7555_v41 = vcombine.high %v2329_v33, %v2333_v36  ;;  %v2336_v42 = vld [vmem:[%s9323_s7 + $0x940] sm:$0xff]  ;;  %v2385_v32 = vld [vmem:[%s9323_s7 + $0xac8] sm:$0xff] }
 0x532   : > { %v7560_v54 = vcombine.low %v2336_v42, %v2340_v43 }
 0x534   : > { %5222 = vmatpush1.bf16.msra.mxu0 %v7496_v47  ;;  %5394 = vmatpush1.bf16.msra.mxu1 %v7498_v48  ;;  %v7554_v47 = vcombine.low %v2329_v33, %v2333_v36  ;;  %v7561_v48 = vcombine.high %v2336_v42, %v2340_v43  ;;  %v2389_v33 = vld [vmem:[%s9323_s7 + $0xae8] sm:$0xff]  ;;  %v2396_v42 = vld [vmem:[%s9323_s7 + $0xb20] sm:$0xff] }
 0x535   : > { %5223 = vmatprep.subr.bf16.mxu0 %v7505_v49  ;;  %5395 = vmatprep.subr.bf16.mxu1 %v7507_v50  ;;  %v7563_v49 = vcombine.high %v2337_v44, %v2341_v45  ;;  %v2344_v50 = vld [vmem:[%s9323_s7 + $0x980] sm:$0xff]  ;;  %v2393_v43 = vld [vmem:[%s9323_s7 + $0xb08] sm:$0xff] }
 0x536   : > { %v7568_v1 = vcombine.low %v2344_v50, %v2348_v51 }
 0x538   : > { %5224 = vmatpush1.bf16.msra.mxu0 %v7504_v55  ;;  %5396 = vmatpush1.bf16.msra.mxu1 %v7506_v56  ;;  %v7562_v55 = vcombine.low %v2337_v44, %v2341_v45  ;;  %v7569_v56 = vcombine.high %v2344_v50, %v2348_v51  ;;  %v2397_v44 = vld [vmem:[%s9323_s7 + $0xb28] sm:$0xff]  ;;  %v2404_v50 = vld [vmem:[%s9323_s7 + $0xb60] sm:$0xff] }
 0x539   : > { %5225 = vmatprep.subr.bf16.mxu0 %v7513_v57  ;;  %5397 = vmatprep.subr.bf16.mxu1 %v7515_v58  ;;  %v7571_v57 = vcombine.high %v2345_v52, %v2349_v53  ;;  %v2352_v58 = vld [vmem:[%s9323_s7 + $0x9c0] sm:$0xff]  ;;  %v2401_v51 = vld [vmem:[%s9323_s7 + $0xb48] sm:$0xff] }
 0x53a   : > { %v7576_v12 = vcombine.low %v2352_v58, %v2356_v59 }
 0x53c   : > { %5226 = vmatpush1.bf16.msra.mxu0 %v7512_v2  ;;  %5398 = vmatpush1.bf16.msra.mxu1 %v7514_v3  ;;  %v7570_v2 = vcombine.low %v2345_v52, %v2349_v53  ;;  %v7577_v3 = vcombine.high %v2352_v58, %v2356_v59  ;;  %v2405_v52 = vld [vmem:[%s9323_s7 + $0xb68] sm:$0xff]  ;;  %v2412_v58 = vld [vmem:[%s9323_s7 + $0xba0] sm:$0xff] }
 0x53d   : > { %5238 = vmatprep.subr.bf16.mxu0 %v7521_v4  ;;  %5410 = vmatprep.subr.bf16.mxu1 %v7523_v34  ;;  %v7579_v4 = vcombine.high %v2353_v61, %v2357_v0  ;;  %v2360_v34 = vld [vmem:[%s9323_s7 + $0xa00] sm:$0xff]  ;;  %v2409_v59 = vld [vmem:[%s9323_s7 + $0xb88] sm:$0xff] }
 0x53e   : > { %v7584_v22 = vcombine.low %v2360_v34, %v2364_v6 }
 0x53f   : > { %5228 = vmatmul.mubr.bf16.vlgmr.msra.gmra.mrb[0].mxu0 %v9586_v11  ;;  %5400 = vmatmul.mubr.bf16.vlgmr.msra.gmra.mrb[0].mxu1 %v9586_v11 }
 0x540   : > { %5239 = vmatpush1.bf16.msra.mxu0 %v7520_v16  ;;  %5411 = vmatpush1.bf16.msra.mxu1 %v7522_v5  ;;  %v7578_v16 = vcombine.low %v2353_v61, %v2357_v0  ;;  %v7585_v5 = vcombine.high %v2360_v34, %v2364_v6  ;;  %v2413_v61 = vld [vmem:[%s9323_s7 + $0xba8] sm:$0xff]  ;;  %v2420_v34 = vld [vmem:[%s9323_s7 + $0xbe0] sm:$0xff] }
 0x541   : > { %5240 = vmatprep.subr.bf16.mxu0 %v7529_v17  ;;  %5412 = vmatprep.subr.bf16.mxu1 %v7531_v18  ;;  %v7587_v17 = vcombine.high %v2361_v8, %v2365_v9  ;;  %v2368_v18 = vld [vmem:[%s9323_s7 + $0xa40] sm:$0xff]  ;;  %v2417_v6 = vld [vmem:[%s9323_s7 + $0xbc8] sm:$0xff] }
 0x542   : > { %5270 = vmatprep.mubr.bf16.mxu0 %v9599_v63  ;;  %5442 = vmatprep.mubr.bf16.mxu1 %v9599_v63  ;;  %v7592_v10 = vcombine.low %v2368_v18, %v2372_v19 }
 0x544   : > { %5241 = vmatpush1.bf16.msra.mxu0 %v7528_v23  ;;  %5413 = vmatpush1.bf16.msra.mxu1 %v7530_v24  ;;  %v7586_v23 = vcombine.low %v2361_v8, %v2365_v9  ;;  %v7593_v24 = vcombine.high %v2368_v18, %v2372_v19  ;;  %v2421_v8 = vld [vmem:[%s9323_s7 + $0xbe8] sm:$0xff]  ;;  %v2428_v18 = vld [vmem:[%s9323_s7 + $0xc20] sm:$0xff] }
 0x545   : > { %5242 = vmatprep.subr.bf16.mxu0 %v7537_v25  ;;  %5414 = vmatprep.subr.bf16.mxu1 %v7539_v26  ;;  %v7595_v25 = vcombine.high %v2369_v62, %v2373_v21  ;;  %v2376_v26 = vld [vmem:[%s9323_s7 + $0xa80] sm:$0xff]  ;;  %v2425_v19 = vld [vmem:[%s9323_s7 + $0xc08] sm:$0xff] }
 0x546   : > { %v7600_v36 = vcombine.low %v2376_v26, %v2380_v27 }
 0x548   : > { %5243 = vmatpush1.bf16.msra.mxu0 %v7536_v13  ;;  %5415 = vmatpush1.bf16.msra.mxu1 %v7538_v29  ;;  %v7594_v13 = vcombine.low %v2369_v62, %v2373_v21  ;;  %v7601_v29 = vcombine.high %v2376_v26, %v2380_v27  ;;  %v2429_v62 = vld [vmem:[%s9323_s7 + $0xc28] sm:$0xff]  ;;  %v2436_v26 = vld [vmem:[%s9323_s7 + $0xc60] sm:$0xff] }
 0x549   : > { %5244 = vmatprep.subr.bf16.mxu0 %v7545_v30  ;;  %5416 = vmatprep.subr.bf16.mxu1 %v7547_v31  ;;  %v7603_v30 = vcombine.high %v2377_v28, %v2381_v7  ;;  %v2384_v31 = vld [vmem:[%s9323_s7 + $0xac0] sm:$0xff]  ;;  %v2433_v27 = vld [vmem:[%s9323_s7 + $0xc48] sm:$0xff] }
 0x54a   : > { %v7608_v45 = vcombine.low %v2384_v31, %v2388_v20 }
 0x54c   : > { %5245 = vmatpush1.bf16.msra.mxu0 %v7544_v37  ;;  %5417 = vmatpush1.bf16.msra.mxu1 %v7546_v38  ;;  %v7602_v37 = vcombine.low %v2377_v28, %v2381_v7  ;;  %v7609_v38 = vcombine.high %v2384_v31, %v2388_v20  ;;  %v9668_v28 = vcombine.low %v9590_v14, %v9593_v15  ;;  %v2437_v7 = vld [vmem:[%s9323_s7 + $0xc68] sm:$0xff]  ;;  %v2444_v14 = vld [vmem:[%s9323_s7 + $0xca0] sm:$0xff] }
 0x54d   : > { %5246 = vmatprep.subr.bf16.mxu0 %v7553_v40  ;;  %5418 = vmatprep.subr.bf16.mxu1 %v7555_v41  ;;  %v7611_v40 = vcombine.high %v2385_v32, %v2389_v33  ;;  %v2392_v41 = vld [vmem:[%s9323_s7 + $0xb00] sm:$0xff]  ;;  %v7659_v20 = vcombine.high %v2433_v27, %v2437_v7 }
 0x54e   : > { %v7616_v53 = vcombine.low %v2392_v41, %v2396_v42 }
 0x550   : > { %5247 = vmatpush1.bf16.msra.mxu0 %v7552_v46  ;;  %5419 = vmatpush1.bf16.msra.mxu1 %v7554_v47  ;;  %v7610_v46 = vcombine.low %v2385_v32, %v2389_v33  ;;  %v7617_v47 = vcombine.high %v2392_v41, %v2396_v42  ;;  %v2440_v32 = vld [vmem:[%s9323_s7 + $0xc80] sm:$0xff]  ;;  %v2441_v33 = vld [vmem:[%s9323_s7 + $0xc88] sm:$0xff] }
 0x551   : > { %5248 = vmatprep.subr.bf16.mxu0 %v7561_v48  ;;  %5420 = vmatprep.subr.bf16.mxu1 %v7563_v49  ;;  %v7619_v48 = vcombine.high %v2393_v43, %v2397_v44  ;;  %v2400_v49 = vld [vmem:[%s9323_s7 + $0xb40] sm:$0xff] }
 0x552   : > { %v7624_v0 = vcombine.low %v2400_v49, %v2404_v50  ;;  %v2448_v42 = vld [vmem:[%s9323_s7 + $0xcc0] sm:$0xff] }
 0x554   : > { %5249 = vmatpush1.bf16.msra.mxu0 %v7560_v54  ;;  %5421 = vmatpush1.bf16.msra.mxu1 %v7562_v55  ;;  %v7618_v54 = vcombine.low %v2393_v43, %v2397_v44  ;;  %v7625_v55 = vcombine.high %v2400_v49, %v2404_v50  ;;  %v2452_v43 = vld [vmem:[%s9323_s7 + $0xce0] sm:$0xff]  ;;  %v2449_v44 = vld [vmem:[%s9323_s7 + $0xcc8] sm:$0xff] }
 0x555   : > { %5250 = vmatprep.subr.bf16.mxu0 %v7569_v56  ;;  %5422 = vmatprep.subr.bf16.mxu1 %v7571_v57  ;;  %v7627_v56 = vcombine.high %v2401_v51, %v2405_v52  ;;  %v2408_v57 = vld [vmem:[%s9323_s7 + $0xb80] sm:$0xff] }
 0x556   : > { %v7632_v9 = vcombine.low %v2408_v57, %v2412_v58  ;;  %v2456_v50 = vld [vmem:[%s9323_s7 + $0xd00] sm:$0xff] }
 0x558   : > { %5251 = vmatpush1.bf16.msra.mxu0 %v7568_v1  ;;  %5423 = vmatpush1.bf16.msra.mxu1 %v7570_v2  ;;  %v7626_v1 = vcombine.low %v2401_v51, %v2405_v52  ;;  %v7633_v2 = vcombine.high %v2408_v57, %v2412_v58  ;;  %v2460_v51 = vld [vmem:[%s9323_s7 + $0xd20] sm:$0xff]  ;;  %v2457_v52 = vld [vmem:[%s9323_s7 + $0xd08] sm:$0xff] }
 0x559   : > { %5252 = vmatprep.subr.bf16.mxu0 %v7577_v3  ;;  %5424 = vmatprep.subr.bf16.mxu1 %v7579_v4  ;;  %v7635_v3 = vcombine.high %v2409_v59, %v2413_v61  ;;  %v2416_v4 = vld [vmem:[%s9323_s7 + $0xbc0] sm:$0xff] }
 0x55a   : > { %v7640_v21 = vcombine.low %v2416_v4, %v2420_v34  ;;  %v2464_v58 = vld [vmem:[%s9323_s7 + $0xd40] sm:$0xff] }
 0x55c   : > { %5253 = vmatpush1.bf16.msra.mxu0 %v7576_v12  ;;  %5425 = vmatpush1.bf16.msra.mxu1 %v7578_v16  ;;  %v7634_v12 = vcombine.low %v2409_v59, %v2413_v61  ;;  %v7641_v16 = vcombine.high %v2416_v4, %v2420_v34  ;;  %v2468_v59 = vld [vmem:[%s9323_s7 + $0xd60] sm:$0xff]  ;;  %v2465_v61 = vld [vmem:[%s9323_s7 + $0xd48] sm:$0xff] }
 0x55d   : > { %5254 = vmatprep.subr.bf16.mxu0 %v7585_v5  ;;  %5426 = vmatprep.subr.bf16.mxu1 %v7587_v17  ;;  %v7643_v5 = vcombine.high %v2417_v6, %v2421_v8  ;;  %v2424_v17 = vld [vmem:[%s9323_s7 + $0xc00] sm:$0xff] }
 0x55e   : > { %v2472_v34 = vld [vmem:[%s9323_s7 + $0xd80] sm:$0xff] }
 0x560   : > { %5255 = vmatpush1.bf16.msra.mxu0 %v7584_v22  ;;  %5427 = vmatpush1.bf16.msra.mxu1 %v7586_v23  ;;  %v7642_v22 = vcombine.low %v2417_v6, %v2421_v8  ;;  %v7649_v23 = vcombine.high %v2424_v17, %v2428_v18  ;;  %v2476_v6 = vld [vmem:[%s9323_s7 + $0xda0] sm:$0xff]  ;;  %v2473_v8 = vld [vmem:[%s9323_s7 + $0xd88] sm:$0xff] }
 0x561   : > { %5256 = vmatprep.subr.bf16.mxu0 %v7593_v24  ;;  %5428 = vmatprep.subr.bf16.mxu1 %v7595_v25  ;;  %v7651_v24 = vcombine.high %v2425_v19, %v2429_v62  ;;  %v2432_v25 = vld [vmem:[%s9323_s7 + $0xc40] sm:$0xff] }
 0x562   : > { %v7657_v31 = vcombine.high %v2432_v25, %v2436_v26 }
 0x564   : > { %5257 = vmatpush1.bf16.msra.mxu0 %v7592_v10  ;;  %5429 = vmatpush1.bf16.msra.mxu1 %v7594_v13  ;;  %v9672_v10 = vld [vmem:[%s9304_s5 + $0x18] sm:$0xff] }
 0x565   : > { %5258 = vmatprep.subr.bf16.mxu0 %v7601_v29  ;;  %5430 = vmatprep.subr.bf16.mxu1 %v7603_v30  ;;  %v9675_v13 = vld [vmem:[%s9304_s5 + $0x38] sm:$0xff]  ;;  %v7648_v29 = vcombine.low %v2424_v17, %v2428_v18  ;;  %v7650_v30 = vcombine.low %v2425_v19, %v2429_v62  ;;  %v2480_v18 = vld [vmem:[%s9323_s7 + $0xdc0] sm:$0xff]  ;;  %s10283_s5 = sld [smem:[#allocation39_spill]] }
 0x566   : > { %v9681_v15 = vcombine.high %v9672_v10, %v9675_v13  ;;  %v2484_v19 = vld [vmem:[%s9323_s7 + $0xde0] sm:$0xff]  ;;  %v2481_v62 = vld [vmem:[%s9323_s7 + $0xdc8] sm:$0xff] }
 0x568   : > { %5259 = vmatpush1.bf16.msra.mxu0 %v7600_v36  ;;  %5431 = vmatpush1.bf16.msra.mxu1 %v7602_v37  ;;  %v2445_v36 = vld [vmem:[%s9323_s7 + $0xca8] sm:$0xff]  ;;  %v7656_v37 = vcombine.low %v2432_v25, %v2436_v26  ;;  %v2488_v26 = vld [vmem:[%s9323_s7 + $0xe00] sm:$0xff] }
 0x569   : > { %5260 = vmatprep.subr.bf16.mxu0 %v7609_v38  ;;  %5432 = vmatprep.subr.bf16.mxu1 %v7611_v40  ;;  %v7658_v38 = vcombine.low %v2433_v27, %v2437_v7  ;;  %v7665_v40 = vcombine.high %v2440_v32, %v2444_v14  ;;  %v7667_v41 = vcombine.high %v2441_v33, %v2445_v36  ;;  %v2492_v27 = vld [vmem:[%s9323_s7 + $0xe20] sm:$0xff]  ;;  %v2489_v7 = vld [vmem:[%s9323_s7 + $0xe08] sm:$0xff] }
 0x56b   : > { %p7776_p3 = scmp.ne.s32.totalorder %s10283_s5, 1 }
 0x56c   : > { %5261 = vmatpush1.bf16.msra.mxu0 %v7608_v45  ;;  %5433 = vmatpush1.bf16.msra.mxu1 %v7610_v46  ;;  %v2453_v45 = vld [vmem:[%s9323_s7 + $0xce8] sm:$0xff]  ;;  %v7664_v46 = vcombine.low %v2440_v32, %v2444_v14  ;;  %v2496_v14 = vld [vmem:[%s9323_s7 + $0xe40] sm:$0xff] }
 0x56d   : > { %5262 = vmatprep.subr.bf16.mxu0 %v7617_v47  ;;  %5434 = vmatprep.subr.bf16.mxu1 %v7619_v48  ;;  %v7666_v47 = vcombine.low %v2441_v33, %v2445_v36  ;;  %v7673_v48 = vcombine.high %v2448_v42, %v2452_v43  ;;  %v7675_v49 = vcombine.high %v2449_v44, %v2453_v45  ;;  %v2500_v33 = vld [vmem:[%s9323_s7 + $0xe60] sm:$0xff]  ;;  %v2497_v36 = vld [vmem:[%s9323_s7 + $0xe48] sm:$0xff] }
 0x570   : > { %5263 = vmatpush1.bf16.msra.mxu0 %v7616_v53  ;;  %5435 = vmatpush1.bf16.msra.mxu1 %v7618_v54  ;;  %v2461_v53 = vld [vmem:[%s9323_s7 + $0xd28] sm:$0xff]  ;;  %v7672_v54 = vcombine.low %v2448_v42, %v2452_v43  ;;  %v2504_v43 = vld [vmem:[%s9323_s7 + $0xe80] sm:$0xff] }
 0x571   : > { %5264 = vmatprep.subr.bf16.mxu0 %v7625_v55  ;;  %5436 = vmatprep.subr.bf16.mxu1 %v7627_v56  ;;  %v7674_v55 = vcombine.low %v2449_v44, %v2453_v45  ;;  %v7681_v56 = vcombine.high %v2456_v50, %v2460_v51  ;;  %v7683_v57 = vcombine.high %v2457_v52, %v2461_v53  ;;  %v2508_v44 = vld [vmem:[%s9323_s7 + $0xea0] sm:$0xff]  ;;  %v2505_v45 = vld [vmem:[%s9323_s7 + $0xe88] sm:$0xff] }
 0x574   : > { %5265 = vmatpush1.bf16.msra.mxu0 %v7624_v0  ;;  %5437 = vmatpush1.bf16.msra.mxu1 %v7626_v1  ;;  %v2469_v0 = vld [vmem:[%s9323_s7 + $0xd68] sm:$0xff]  ;;  %v7680_v1 = vcombine.low %v2456_v50, %v2460_v51  ;;  %v2512_v51 = vld [vmem:[%s9323_s7 + $0xec0] sm:$0xff] }
 0x575   : > { %5266 = vmatprep.subr.bf16.mxu0 %v7633_v2  ;;  %5438 = vmatprep.subr.bf16.mxu1 %v7635_v3  ;;  %v7682_v2 = vcombine.low %v2457_v52, %v2461_v53  ;;  %v7689_v3 = vcombine.high %v2464_v58, %v2468_v59  ;;  %v7691_v4 = vcombine.high %v2465_v61, %v2469_v0  ;;  %v2516_v52 = vld [vmem:[%s9323_s7 + $0xee0] sm:$0xff]  ;;  %v2513_v53 = vld [vmem:[%s9323_s7 + $0xec8] sm:$0xff] }
 0x578   : > { %5267 = vmatpush1.bf16.msra.mxu0 %v7632_v9  ;;  %5439 = vmatpush1.bf16.msra.mxu1 %v7634_v12  ;;  %v2477_v9 = vld [vmem:[%s9323_s7 + $0xda8] sm:$0xff]  ;;  %v7688_v12 = vcombine.low %v2464_v58, %v2468_v59  ;;  %v2520_v59 = vld [vmem:[%s9323_s7 + $0xf00] sm:$0xff] }
 0x579   : > { %5268 = vmatprep.subr.bf16.mxu0 %v7641_v16  ;;  %5440 = vmatprep.subr.bf16.mxu1 %v7643_v5  ;;  %v7690_v16 = vcombine.low %v2465_v61, %v2469_v0  ;;  %v7697_v5 = vcombine.high %v2472_v34, %v2476_v6  ;;  %v7699_v17 = vcombine.high %v2473_v8, %v2477_v9  ;;  %v2524_v61 = vld [vmem:[%s9323_s7 + $0xf20] sm:$0xff]  ;;  %v2521_v0 = vld [vmem:[%s9323_s7 + $0xf08] sm:$0xff] }
 0x57c   : > { %5269 = vmatpush1.bf16.msra.mxu0 %v7640_v21  ;;  %5441 = vmatpush1.bf16.msra.mxu1 %v7642_v22  ;;  %v2485_v21 = vld [vmem:[%s9323_s7 + $0xde8] sm:$0xff]  ;;  %v7696_v22 = vcombine.low %v2472_v34, %v2476_v6  ;;  %v2528_v6 = vld [vmem:[%s9323_s7 + $0xf40] sm:$0xff] }
 0x57d   : > { %5281 = vmatprep.subr.bf16.mxu0 %v7649_v23  ;;  %5453 = vmatprep.subr.bf16.mxu1 %v7651_v24  ;;  %v7698_v23 = vcombine.low %v2473_v8, %v2477_v9  ;;  %v7705_v24 = vcombine.high %v2480_v18, %v2484_v19  ;;  %v7707_v25 = vcombine.high %v2481_v62, %v2485_v21  ;;  %v2532_v8 = vld [vmem:[%s9323_s7 + $0xf60] sm:$0xff]  ;;  %v2529_v9 = vld [vmem:[%s9323_s7 + $0xf48] sm:$0xff] }
 0x57f   : > { %5271 = vmatmul.mubr.bf16.vlgmr.msra.gmra.mrb[0].mxu0 %v9668_v28  ;;  %5443 = vmatmul.mubr.bf16.vlgmr.msra.gmra.mrb[0].mxu1 %v9668_v28 }
 0x580   : > { %5282 = vmatpush1.bf16.msra.mxu0 %v7648_v29  ;;  %5454 = vmatpush1.bf16.msra.mxu1 %v7650_v30  ;;  %v2493_v29 = vld [vmem:[%s9323_s7 + $0xe28] sm:$0xff]  ;;  %v7704_v30 = vcombine.low %v2480_v18, %v2484_v19  ;;  %v2536_v19 = vld [vmem:[%s9323_s7 + $0xf80] sm:$0xff] }
 0x581   : > { %5283 = vmatprep.subr.bf16.mxu0 %v7657_v31  ;;  %5455 = vmatprep.subr.bf16.mxu1 %v7659_v20  ;;  %v7706_v31 = vcombine.low %v2481_v62, %v2485_v21  ;;  %v7713_v20 = vcombine.high %v2488_v26, %v2492_v27  ;;  %v7715_v32 = vcombine.high %v2489_v7, %v2493_v29  ;;  %v2540_v62 = vld [vmem:[%s9323_s7 + $0xfa0] sm:$0xff]  ;;  %v2537_v21 = vld [vmem:[%s9323_s7 + $0xf88] sm:$0xff] }
 0x582   : > { %5313 = vmatprep.mubr.bf16.mxu0 %v9681_v15  ;;  %5485 = vmatprep.mubr.bf16.mxu1 %v9681_v15 }
 0x584   : > { %5284 = vmatpush1.bf16.msra.mxu0 %v7656_v37  ;;  %5456 = vmatpush1.bf16.msra.mxu1 %v7658_v38  ;;  %v2501_v37 = vld [vmem:[%s9323_s7 + $0xe68] sm:$0xff]  ;;  %v7712_v38 = vcombine.low %v2488_v26, %v2492_v27  ;;  %v2544_v27 = vld [vmem:[%s9323_s7 + $0xfc0] sm:$0xff] }
 0x585   : > { %5285 = vmatprep.subr.bf16.mxu0 %v7665_v40  ;;  %5457 = vmatprep.subr.bf16.mxu1 %v7667_v41  ;;  %v7714_v40 = vcombine.low %v2489_v7, %v2493_v29  ;;  %v7721_v41 = vcombine.high %v2496_v14, %v2500_v33  ;;  %v7723_v42 = vcombine.high %v2497_v36, %v2501_v37  ;;  %v2548_v7 = vld [vmem:[%s9323_s7 + $0xfe0] sm:$0xff]  ;;  %v2545_v29 = vld [vmem:[%s9323_s7 + $0xfc8] sm:$0xff] }
 0x588   : > { %5286 = vmatpush1.bf16.msra.mxu0 %v7664_v46  ;;  %5458 = vmatpush1.bf16.msra.mxu1 %v7666_v47  ;;  %v2509_v46 = vld [vmem:[%s9323_s7 + $0xea8] sm:$0xff]  ;;  %v7720_v47 = vcombine.low %v2496_v14, %v2500_v33  ;;  %v2042_v33 = vld [vmem:[%s9323_s7 + $0x10] sm:$0xff] }
 0x589   : > { %5287 = vmatprep.subr.bf16.mxu0 %v7673_v48  ;;  %5459 = vmatprep.subr.bf16.mxu1 %v7675_v49  ;;  %v7722_v48 = vcombine.low %v2497_v36, %v2501_v37  ;;  %v7729_v49 = vcombine.high %v2504_v43, %v2508_v44  ;;  %v7731_v50 = vcombine.high %v2505_v45, %v2509_v46  ;;  %v2046_v36 = vld [vmem:[%s9323_s7 + $0x30] sm:$0xff]  ;;  %v2043_v37 = vld [vmem:[%s9323_s7 + $0x18] sm:$0xff] }
 0x58c   : > { %5288 = vmatpush1.bf16.msra.mxu0 %v7672_v54  ;;  %5460 = vmatpush1.bf16.msra.mxu1 %v7674_v55  ;;  %v2517_v54 = vld [vmem:[%s9323_s7 + $0xee8] sm:$0xff]  ;;  %v7728_v55 = vcombine.low %v2504_v43, %v2508_v44  ;;  %v2050_v44 = vld [vmem:[%s9323_s7 + $0x50] sm:$0xff] }
 0x58d   : > { %5289 = vmatprep.subr.bf16.mxu0 %v7681_v56  ;;  %5461 = vmatprep.subr.bf16.mxu1 %v7683_v57  ;;  %v7730_v56 = vcombine.low %v2505_v45, %v2509_v46  ;;  %v7737_v57 = vcombine.high %v2512_v51, %v2516_v52  ;;  %v7739_v58 = vcombine.high %v2513_v53, %v2517_v54  ;;  %v2054_v45 = vld [vmem:[%s9323_s7 + $0x70] sm:$0xff] }
 0x58e   : > { %v9749_v46 = vcombine.low %v9672_v10, %v9675_v13  ;;  %v2059_v10 = vld [vmem:[%s9323_s7 + $0x98] sm:$0xff] }
 0x58f   : > { %v2063_v13 = vld [vmem:[%s9323_s7 + $0xb8] sm:$0xff] }
 0x590   : > { %5290 = vmatpush1.bf16.msra.mxu0 %v7680_v1  ;;  %5462 = vmatpush1.bf16.msra.mxu1 %v7682_v2  ;;  %v2525_v1 = vld [vmem:[%s9323_s7 + $0xf28] sm:$0xff]  ;;  %v7736_v2 = vcombine.low %v2512_v51, %v2516_v52  ;;  %v7277_v51 = vcombine.high %v2050_v44, %v2054_v45 }
 0x591   : > { %5291 = vmatprep.subr.bf16.mxu0 %v7689_v3  ;;  %5463 = vmatprep.subr.bf16.mxu1 %v7691_v4  ;;  %v7738_v3 = vcombine.low %v2513_v53, %v2517_v54  ;;  %v7745_v4 = vcombine.high %v2520_v59, %v2524_v61  ;;  %v7747_v34 = vcombine.high %v2521_v0, %v2525_v1  ;;  %v2058_v53 = vld [vmem:[%s9323_s7 + $0x90] sm:$0xff] }
 0x592   : > { %v2062_v54 = vld [vmem:[%s9323_s7 + $0xb0] sm:$0xff] }
 0x594   : > { %5292 = vmatpush1.bf16.msra.mxu0 %v7688_v12  ;;  %5464 = vmatpush1.bf16.msra.mxu1 %v7690_v16  ;;  %v2533_v12 = vld [vmem:[%s9323_s7 + $0xf68] sm:$0xff]  ;;  %v7744_v16 = vcombine.low %v2520_v59, %v2524_v61  ;;  %v2066_v59 = vld [vmem:[%s9323_s7 + $0xd0] sm:$0xff] }
 0x595   : > { %5293 = vmatprep.subr.bf16.mxu0 %v7697_v5  ;;  %5465 = vmatprep.subr.bf16.mxu1 %v7699_v17  ;;  %v7746_v5 = vcombine.low %v2521_v0, %v2525_v1  ;;  %v7753_v17 = vcombine.high %v2528_v6, %v2532_v8  ;;  %v7755_v18 = vcombine.high %v2529_v9, %v2533_v12  ;;  %v2070_v61 = vld [vmem:[%s9323_s7 + $0xf0] sm:$0xff]  ;;  %v2067_v0 = vld [vmem:[%s9323_s7 + $0xd8] sm:$0xff] }
 0x596   : > { %v2071_v1 = vld [vmem:[%s9323_s7 + $0xf8] sm:$0xff] }
 0x598   : > { %5294 = vmatpush1.bf16.msra.mxu0 %v7696_v22  ;;  %5466 = vmatpush1.bf16.msra.mxu1 %v7698_v23  ;;  %v2541_v22 = vld [vmem:[%s9323_s7 + $0xfa8] sm:$0xff]  ;;  %v7752_v23 = vcombine.low %v2528_v6, %v2532_v8  ;;  %v2074_v6 = vld [vmem:[%s9323_s7 + $0x110] sm:$0xff] }
 0x599   : > { %5295 = vmatprep.subr.bf16.mxu0 %v7705_v24  ;;  %5467 = vmatprep.subr.bf16.mxu1 %v7707_v25  ;;  %v7754_v24 = vcombine.low %v2529_v9, %v2533_v12  ;;  %v7761_v25 = vcombine.high %v2536_v19, %v2540_v62  ;;  %v7763_v26 = vcombine.high %v2537_v21, %v2541_v22  ;;  %v2078_v8 = vld [vmem:[%s9323_s7 + $0x130] sm:$0xff]  ;;  %v2075_v9 = vld [vmem:[%s9323_s7 + $0x118] sm:$0xff] }
 0x59a   : > { %v2079_v12 = vld [vmem:[%s9323_s7 + $0x138] sm:$0xff] }
 0x59c   : > { %5296 = vmatpush1.bf16.msra.mxu0 %v7704_v30  ;;  %5468 = vmatpush1.bf16.msra.mxu1 %v7706_v31  ;;  %v2549_v30 = vld [vmem:[%s9323_s7 + $0xfe8] sm:$0xff]  ;;  %v7760_v31 = vcombine.low %v2536_v19, %v2540_v62  ;;  %v2086_v19 = vld [vmem:[%s9323_s7 + $0x170] sm:$0xff]  ;;  %v2083_v62 = vld [vmem:[%s9323_s7 + $0x158] sm:$0xff] }
 0x59d   : > { %5297 = vmatprep.subr.bf16.mxu0 %v7713_v20  ;;  %5469 = vmatprep.subr.bf16.mxu1 %v7715_v32  ;;  %v7762_v20 = vcombine.low %v2537_v21, %v2541_v22  ;;  %v7769_v32 = vcombine.high %v2544_v27, %v2548_v7  ;;  %v7771_v14 = vcombine.high %v2545_v29, %v2549_v30  ;;  %v2087_v21 = vld [vmem:[%s9323_s7 + $0x178] sm:$0xff] }
 0x59e   : > { %v7300_v22 = vcombine.low %v2074_v6, %v2078_v8 }
 0x5a0   : > { %5298 = vmatpush1.bf16.msra.mxu0 %v7712_v38  ;;  %5470 = vmatpush1.bf16.msra.mxu1 %v7714_v40  ;;  %v2047_v38 = vld [vmem:[%s9323_s7 + $0x38] sm:$0xff]  ;;  %v7768_v40 = vcombine.low %v2544_v27, %v2548_v7  ;;  %v2094_v27 = vld [vmem:[%s9323_s7 + $0x1b0] sm:$0xff] }
 0x5a1   : > { %5299 = vmatprep.subr.bf16.mxu0 %v7721_v41  ;;  %5471 = vmatprep.subr.bf16.mxu1 %v7723_v42  ;;  %v7770_v41 = vcombine.low %v2545_v29, %v2549_v30  ;;  %v7269_v42 = vcombine.high %v2042_v33, %v2046_v36  ;;  %v7271_v43 = vcombine.high %v2043_v37, %v2047_v38  ;;  %v2091_v7 = vld [vmem:[%s9323_s7 + $0x198] sm:$0xff] }
 0x5a2   : > { %v2095_v29 = vld [vmem:[%s9323_s7 + $0x1b8] sm:$0xff] }
 0x5a4   : > { %5300 = vmatpush1.bf16.msra.mxu0 %v7720_v47  ;;  %5472 = vmatpush1.bf16.msra.mxu1 %v7722_v48  ;;  %v2051_v47 = vld [vmem:[%s9323_s7 + $0x58] sm:$0xff] }
 0x5a5   : > { %5301 = vmatprep.subr.bf16.mxu0 %v7729_v49  ;;  %5473 = vmatprep.subr.bf16.mxu1 %v7731_v50  ;;  %v2055_v48 = vld [vmem:[%s9323_s7 + $0x78] sm:$0xff]  ;;  %v7268_v49 = vcombine.low %v2042_v33, %v2046_v36  ;;  %v7270_v50 = vcombine.low %v2043_v37, %v2047_v38  ;;  %v2102_v33 = vld [vmem:[%s9323_s7 + $0x1f0] sm:$0xff] }
 0x5a6   : > { %v7279_v52 = vcombine.high %v2051_v47, %v2055_v48  ;;  %v2099_v36 = vld [vmem:[%s9323_s7 + $0x1d8] sm:$0xff] }
 0x5a7   : > { %v2103_v37 = vld [vmem:[%s9323_s7 + $0x1f8] sm:$0xff] }
 0x5a8   : > { %5302 = vmatpush1.bf16.msra.mxu0 %v7728_v55  ;;  %5474 = vmatpush1.bf16.msra.mxu1 %v7730_v56  ;;  %v7276_v55 = vcombine.low %v2050_v44, %v2054_v45  ;;  %v7278_v56 = vcombine.low %v2051_v47, %v2055_v48  ;;  %v2110_v44 = vld [vmem:[%s9323_s7 + $0x230] sm:$0xff]  ;;  %v2107_v45 = vld [vmem:[%s9323_s7 + $0x218] sm:$0xff] }
 0x5a9   : > { %5303 = vmatprep.subr.bf16.mxu0 %v7737_v57  ;;  %5475 = vmatprep.subr.bf16.mxu1 %v7739_v58  ;;  %v7285_v57 = vcombine.high %v2058_v53, %v2062_v54  ;;  %v7287_v58 = vcombine.high %v2059_v10, %v2063_v13  ;;  %v2111_v47 = vld [vmem:[%s9323_s7 + $0x238] sm:$0xff] }
 0x5ac   : > { %5304 = vmatpush1.bf16.msra.mxu0 %v7736_v2  ;;  %5476 = vmatpush1.bf16.msra.mxu1 %v7738_v3  ;;  %v7284_v2 = vcombine.low %v2058_v53, %v2062_v54  ;;  %v7286_v3 = vcombine.low %v2059_v10, %v2063_v13  ;;  %v2118_v53 = vld [vmem:[%s9323_s7 + $0x270] sm:$0xff]  ;;  %v2115_v54 = vld [vmem:[%s9323_s7 + $0x258] sm:$0xff] }
 0x5ad   : > { %5305 = vmatprep.subr.bf16.mxu0 %v7745_v4  ;;  %5477 = vmatprep.subr.bf16.mxu1 %v7747_v34  ;;  %v7293_v4 = vcombine.high %v2066_v59, %v2070_v61  ;;  %v7295_v34 = vcombine.high %v2067_v0, %v2071_v1  ;;  %v2119_v10 = vld [vmem:[%s9323_s7 + $0x278] sm:$0xff] }
 0x5b0   : > { %5306 = vmatpush1.bf16.msra.mxu0 %v7744_v16  ;;  %5478 = vmatpush1.bf16.msra.mxu1 %v7746_v5  ;;  %v7292_v16 = vcombine.low %v2066_v59, %v2070_v61  ;;  %v7301_v5 = vcombine.high %v2074_v6, %v2078_v8  ;;  %v2126_v59 = vld [vmem:[%s9323_s7 + $0x2b0] sm:$0xff]  ;;  %v2123_v61 = vld [vmem:[%s9323_s7 + $0x298] sm:$0xff] }
 0x5b1   : > { %5307 = vmatprep.subr.bf16.mxu0 %v7753_v17  ;;  %5479 = vmatprep.subr.bf16.mxu1 %v7755_v18  ;;  %v7303_v17 = vcombine.high %v2075_v9, %v2079_v12  ;;  %v2082_v18 = vld [vmem:[%s9323_s7 + $0x150] sm:$0xff]  ;;  %v2131_v8 = vld [vmem:[%s9323_s7 + $0x2d8] sm:$0xff] }
 0x5b2   : > { %v7308_v30 = vcombine.low %v2082_v18, %v2086_v19  ;;  %v2134_v6 = vld [vmem:[%s9323_s7 + $0x2f0] sm:$0xff] }
 0x5b4   : > { %5308 = vmatpush1.bf16.msra.mxu0 %v7752_v23  ;;  %5480 = vmatpush1.bf16.msra.mxu1 %v7754_v24  ;;  %v7302_v23 = vcombine.low %v2075_v9, %v2079_v12  ;;  %v7309_v24 = vcombine.high %v2082_v18, %v2086_v19  ;;  %v2135_v9 = vld [vmem:[%s9323_s7 + $0x2f8] sm:$0xff]  ;;  %v2142_v18 = vld [vmem:[%s9323_s7 + $0x330] sm:$0xff] }
 0x5b5   : > { %5309 = vmatprep.subr.bf16.mxu0 %v7761_v25  ;;  %5481 = vmatprep.subr.bf16.mxu1 %v7763_v26  ;;  %v7311_v25 = vcombine.high %v2083_v62, %v2087_v21  ;;  %v2090_v26 = vld [vmem:[%s9323_s7 + $0x190] sm:$0xff]  ;;  %v2139_v19 = vld [vmem:[%s9323_s7 + $0x318] sm:$0xff] }
 0x5b6   : > { %v7316_v38 = vcombine.low %v2090_v26, %v2094_v27 }
 0x5b8   : > { %5310 = vmatpush1.bf16.msra.mxu0 %v7760_v31  ;;  %5482 = vmatpush1.bf16.msra.mxu1 %v7762_v20  ;;  %v7310_v31 = vcombine.low %v2083_v62, %v2087_v21  ;;  %v7317_v20 = vcombine.high %v2090_v26, %v2094_v27  ;;  %v2143_v62 = vld [vmem:[%s9323_s7 + $0x338] sm:$0xff]  ;;  %v2150_v26 = vld [vmem:[%s9323_s7 + $0x370] sm:$0xff] }
 0x5b9   : > { %5311 = vmatprep.subr.bf16.mxu0 %v7769_v32  ;;  %5483 = vmatprep.subr.bf16.mxu1 %v7771_v14  ;;  %v7319_v32 = vcombine.high %v2091_v7, %v2095_v29  ;;  %v2098_v14 = vld [vmem:[%s9323_s7 + $0x1d0] sm:$0xff]  ;;  %v2147_v27 = vld [vmem:[%s9323_s7 + $0x358] sm:$0xff] }
 0x5ba   : > { %v7324_v48 = vcombine.low %v2098_v14, %v2102_v33 }
 0x5bc   : > { %5312 = vmatpush1.bf16.msra.mxu0 %v7768_v40  ;;  %5484 = vmatpush1.bf16.msra.mxu1 %v7770_v41  ;;  %v7318_v40 = vcombine.low %v2091_v7, %v2095_v29  ;;  %v7325_v41 = vcombine.high %v2098_v14, %v2102_v33  ;;  %v2151_v7 = vld [vmem:[%s9323_s7 + $0x378] sm:$0xff]  ;;  %v2158_v14 = vld [vmem:[%s9323_s7 + $0x3b0] sm:$0xff] }
 0x5bd   : > { %5496 = vmatprep.subr.bf16.mxu0 %v7269_v42  ;;  %5668 = vmatprep.subr.bf16.mxu1 %v7271_v43  ;;  %v7327_v42 = vcombine.high %v2099_v36, %v2103_v37  ;;  %v2106_v43 = vld [vmem:[%s9323_s7 + $0x210] sm:$0xff]  ;;  %v2155_v33 = vld [vmem:[%s9323_s7 + $0x398] sm:$0xff] }
 0x5be   : > { %v7332_v13 = vcombine.low %v2106_v43, %v2110_v44 }
 0x5bf   : > { %5314 = vmatmul.mubr.bf16.vlgmr.msra.gmra.mrb[0].mxu0 %v9749_v46  ;;  %5486 = vmatmul.mubr.bf16.vlgmr.msra.gmra.mrb[0].mxu1 %v9749_v46 }
 0x5c0   : > { %5497 = vmatpush1.bf16.msra.mxu0 %v7268_v49  ;;  %5669 = vmatpush1.bf16.msra.mxu1 %v7270_v50  ;;  %v7326_v49 = vcombine.low %v2099_v36, %v2103_v37  ;;  %v7333_v50 = vcombine.high %v2106_v43, %v2110_v44  ;;  %v2159_v36 = vld [vmem:[%s9323_s7 + $0x3b8] sm:$0xff]  ;;  %v2166_v43 = vld [vmem:[%s9323_s7 + $0x3f0] sm:$0xff] }
 0x5c1   : > { %5498 = vmatprep.subr.bf16.mxu0 %v7277_v51  ;;  %5670 = vmatprep.subr.bf16.mxu1 %v7279_v52  ;;  %v7335_v51 = vcombine.high %v2107_v45, %v2111_v47  ;;  %v2114_v52 = vld [vmem:[%s9323_s7 + $0x250] sm:$0xff]  ;;  %v2163_v44 = vld [vmem:[%s9323_s7 + $0x3d8] sm:$0xff] }
 0x5c2   : > { %5528 = vmatprep.mubr.bf16.mxu0 %v9457_v39  ;;  %5700 = vmatprep.mubr.bf16.mxu1 %v9457_v39  ;;  %v7294_v39 = vcombine.low %v2067_v0, %v2071_v1  ;;  %v2127_v0 = vld [vmem:[%s9323_s7 + $0x2b8] sm:$0xff]  ;;  %v7340_v1 = vcombine.low %v2114_v52, %v2118_v53 }
 0x5c4   : > { %5499 = vmatpush1.bf16.msra.mxu0 %v7276_v55  ;;  %5671 = vmatpush1.bf16.msra.mxu1 %v7278_v56  ;;  %v7334_v55 = vcombine.low %v2107_v45, %v2111_v47  ;;  %v7341_v56 = vcombine.high %v2114_v52, %v2118_v53  ;;  %v2167_v45 = vld [vmem:[%s9323_s7 + $0x3f8] sm:$0xff]  ;;  %v2174_v52 = vld [vmem:[%s9323_s7 + $0x430] sm:$0xff] }
 0x5c5   : > { %5500 = vmatprep.subr.bf16.mxu0 %v7285_v57  ;;  %5672 = vmatprep.subr.bf16.mxu1 %v7287_v58  ;;  %v7343_v57 = vcombine.high %v2115_v54, %v2119_v10  ;;  %v2122_v58 = vld [vmem:[%s9323_s7 + $0x290] sm:$0xff]  ;;  %v2171_v53 = vld [vmem:[%s9323_s7 + $0x418] sm:$0xff] }
 0x5c6   : > { %v7348_v12 = vcombine.low %v2122_v58, %v2126_v59 }
 0x5c8   : > { %5501 = vmatpush1.bf16.msra.mxu0 %v7284_v2  ;;  %5673 = vmatpush1.bf16.msra.mxu1 %v7286_v3  ;;  %v7342_v2 = vcombine.low %v2115_v54, %v2119_v10  ;;  %v7349_v3 = vcombine.high %v2122_v58, %v2126_v59  ;;  %v2175_v54 = vld [vmem:[%s9323_s7 + $0x438] sm:$0xff]  ;;  %v2182_v58 = vld [vmem:[%s9323_s7 + $0x470] sm:$0xff] }
 0x5c9   : > { %5502 = vmatprep.subr.bf16.mxu0 %v7293_v4  ;;  %5674 = vmatprep.subr.bf16.mxu1 %v7295_v34  ;;  %v7351_v4 = vcombine.high %v2123_v61, %v2127_v0  ;;  %v2130_v34 = vld [vmem:[%s9323_s7 + $0x2d0] sm:$0xff]  ;;  %v2179_v59 = vld [vmem:[%s9323_s7 + $0x458] sm:$0xff] }
 0x5ca   : > { %v7356_v21 = vcombine.low %v2130_v34, %v2134_v6 }
 0x5cc   : > { %5503 = vmatpush1.bf16.msra.mxu0 %v7292_v16  ;;  %5675 = vmatpush1.bf16.msra.mxu1 %v7294_v39  ;;  %v7350_v16 = vcombine.low %v2123_v61, %v2127_v0  ;;  %v7357_v39 = vcombine.high %v2130_v34, %v2134_v6  ;;  %v2183_v61 = vld [vmem:[%s9323_s7 + $0x478] sm:$0xff]  ;;  %v2190_v34 = vld [vmem:[%s9323_s7 + $0x4b0] sm:$0xff] }
 0x5cd   : > { %5504 = vmatprep.subr.bf16.mxu0 %v7301_v5  ;;  %5676 = vmatprep.subr.bf16.mxu1 %v7303_v17  ;;  %v7359_v5 = vcombine.high %v2131_v8, %v2135_v9  ;;  %v2138_v17 = vld [vmem:[%s9323_s7 + $0x310] sm:$0xff]  ;;  %v2187_v6 = vld [vmem:[%s9323_s7 + $0x498] sm:$0xff] }
 0x5ce   : > { %v7364_v29 = vcombine.low %v2138_v17, %v2142_v18 }
 0x5d0   : > { %5505 = vmatpush1.bf16.msra.mxu0 %v7300_v22  ;;  %5677 = vmatpush1.bf16.msra.mxu1 %v7302_v23  ;;  %v7358_v22 = vcombine.low %v2131_v8, %v2135_v9  ;;  %v7365_v23 = vcombine.high %v2138_v17, %v2142_v18  ;;  %v2191_v8 = vld [vmem:[%s9323_s7 + $0x4b8] sm:$0xff]  ;;  %v2198_v17 = vld [vmem:[%s9323_s7 + $0x4f0] sm:$0xff] }
 0x5d1   : > { %5506 = vmatprep.subr.bf16.mxu0 %v7309_v24  ;;  %5678 = vmatprep.subr.bf16.mxu1 %v7311_v25  ;;  %v7367_v24 = vcombine.high %v2139_v19, %v2143_v62  ;;  %v2146_v25 = vld [vmem:[%s9323_s7 + $0x350] sm:$0xff]  ;;  %v2195_v18 = vld [vmem:[%s9323_s7 + $0x4d8] sm:$0xff] }
 0x5d2   : > { %v7372_v37 = vcombine.low %v2146_v25, %v2150_v26 }
 0x5d4   : > { %5507 = vmatpush1.bf16.msra.mxu0 %v7308_v30  ;;  %5679 = vmatpush1.bf16.msra.mxu1 %v7310_v31  ;;  %v7366_v30 = vcombine.low %v2139_v19, %v2143_v62  ;;  %v7373_v31 = vcombine.high %v2146_v25, %v2150_v26  ;;  %v2199_v19 = vld [vmem:[%s9323_s7 + $0x4f8] sm:$0xff]  ;;  %v7414_v62 = vcombine.low %v2187_v6, %v2191_v8 }
 0x5d5   : > { %5508 = vmatprep.subr.bf16.mxu0 %v7317_v20  ;;  %5680 = vmatprep.subr.bf16.mxu1 %v7319_v32  ;;  %v7375_v20 = vcombine.high %v2147_v27, %v2151_v7  ;;  %v2154_v32 = vld [vmem:[%s9323_s7 + $0x390] sm:$0xff]  ;;  %v2203_v25 = vld [vmem:[%s9323_s7 + $0x518] sm:$0xff] }
 0x5d6   : > { %v7380_v47 = vcombine.low %v2154_v32, %v2158_v14  ;;  %v2207_v26 = vld [vmem:[%s9323_s7 + $0x538] sm:$0xff] }
 0x5d8   : > { %5509 = vmatpush1.bf16.msra.mxu0 %v7316_v38  ;;  %5681 = vmatpush1.bf16.msra.mxu1 %v7318_v40  ;;  %v7374_v38 = vcombine.low %v2147_v27, %v2151_v7  ;;  %v7381_v40 = vcombine.high %v2154_v32, %v2158_v14  ;;  %v2215_v32 = vld [vmem:[%s9323_s7 + $0x578] sm:$0xff] }
 0x5d9   : > { %5510 = vmatprep.subr.bf16.mxu0 %v7325_v41  ;;  %5682 = vmatprep.subr.bf16.mxu1 %v7327_v42  ;;  %v7383_v41 = vcombine.high %v2155_v33, %v2159_v36  ;;  %v2162_v42 = vld [vmem:[%s9323_s7 + $0x3d0] sm:$0xff] }
 0x5da   : > { %v7388_v10 = vcombine.low %v2162_v42, %v2166_v43 }
 0x5dc   : > { %5511 = vmatpush1.bf16.msra.mxu0 %v7324_v48  ;;  %5683 = vmatpush1.bf16.msra.mxu1 %v7326_v49  ;;  %v7382_v48 = vcombine.low %v2155_v33, %v2159_v36  ;;  %v7389_v49 = vcombine.high %v2162_v42, %v2166_v43  ;;  %v7430_v33 = vcombine.low %v2203_v25, %v2207_v26  ;;  %v2223_v42 = vld [vmem:[%s9323_s7 + $0x5b8] sm:$0xff] }
 0x5dd   : > { %5512 = vmatprep.subr.bf16.mxu0 %v7333_v50  ;;  %5684 = vmatprep.subr.bf16.mxu1 %v7335_v51  ;;  %v7391_v50 = vcombine.high %v2163_v44, %v2167_v45  ;;  %v2170_v51 = vld [vmem:[%s9323_s7 + $0x410] sm:$0xff] }
 0x5de   : > { %v7396_v0 = vcombine.low %v2170_v51, %v2174_v52 }
 0x5e0   : > { %5513 = vmatpush1.bf16.msra.mxu0 %v7332_v13  ;;  %5685 = vmatpush1.bf16.msra.mxu1 %v7334_v55  ;;  %v7390_v13 = vcombine.low %v2163_v44, %v2167_v45  ;;  %v7397_v55 = vcombine.high %v2170_v51, %v2174_v52  ;;  %v2231_v51 = vld [vmem:[%s9323_s7 + $0x5f8] sm:$0xff] }
 0x5e1   : > { %5514 = vmatprep.subr.bf16.mxu0 %v7341_v56  ;;  %5686 = vmatprep.subr.bf16.mxu1 %v7343_v57  ;;  %v7399_v56 = vcombine.high %v2171_v53, %v2175_v54  ;;  %v2178_v57 = vld [vmem:[%s9323_s7 + $0x450] sm:$0xff] }
 0x5e2   : > { %v7404_v9 = vcombine.low %v2178_v57, %v2182_v58 }
 0x5e4   : > { %5515 = vmatpush1.bf16.msra.mxu0 %v7340_v1  ;;  %5687 = vmatpush1.bf16.msra.mxu1 %v7342_v2  ;;  %v7398_v1 = vcombine.low %v2171_v53, %v2175_v54  ;;  %v7405_v2 = vcombine.high %v2178_v57, %v2182_v58  ;;  %v2239_v57 = vld [vmem:[%s9323_s7 + $0x638] sm:$0xff] }
 0x5e5   : > { %5516 = vmatprep.subr.bf16.mxu0 %v7349_v3  ;;  %5688 = vmatprep.subr.bf16.mxu1 %v7351_v4  ;;  %v7407_v3 = vcombine.high %v2179_v59, %v2183_v61  ;;  %v2186_v4 = vld [vmem:[%s9323_s7 + $0x490] sm:$0xff] }
 0x5e8   : > { %5517 = vmatpush1.bf16.msra.mxu0 %v7348_v12  ;;  %5689 = vmatpush1.bf16.msra.mxu1 %v7350_v16  ;;  %v7406_v12 = vcombine.low %v2179_v59, %v2183_v61  ;;  %v7413_v16 = vcombine.high %v2186_v4, %v2190_v34 }
 0x5e9   : > { %5518 = vmatprep.subr.bf16.mxu0 %v7357_v39  ;;  %5690 = vmatprep.subr.bf16.mxu1 %v7359_v5  ;;  %v7415_v39 = vcombine.high %v2187_v6, %v2191_v8  ;;  %v2194_v5 = vld [vmem:[%s9323_s7 + $0x4d0] sm:$0xff] }
 0x5ea   : > { %v7420_v27 = vcombine.low %v2194_v5, %v2198_v17 }
 0x5ec   : > { %5519 = vmatpush1.bf16.msra.mxu0 %v7356_v21  ;;  %5691 = vmatpush1.bf16.msra.mxu1 %v7358_v22  ;;  %v7421_v21 = vcombine.high %v2194_v5, %v2198_v17  ;;  %v7423_v22 = vcombine.high %v2195_v18, %v2199_v19  ;;  %v2255_v5 = vld [vmem:[%s9323_s7 + $0x6b8] sm:$0xff] }
 0x5ed   : > { %5520 = vmatprep.subr.bf16.mxu0 %v7365_v23  ;;  %5692 = vmatprep.subr.bf16.mxu1 %v7367_v24  ;;  %v2202_v23 = vld [vmem:[%s9323_s7 + $0x510] sm:$0xff] }
 0x5ee   : > { %v2206_v24 = vld [vmem:[%s9323_s7 + $0x530] sm:$0xff] }
 0x5ef   : > { %v7429_v7 = vcombine.high %v2202_v23, %v2206_v24  ;;  %v7428_v14 = vcombine.low %v2202_v23, %v2206_v24  ;;  %v2263_v23 = vld [vmem:[%s9323_s7 + $0x6f8] sm:$0xff] }
 0x5f0   : > { %5521 = vmatpush1.bf16.msra.mxu0 %v7364_v29  ;;  %5693 = vmatpush1.bf16.msra.mxu1 %v7366_v30  ;;  %v7431_v29 = vcombine.high %v2203_v25, %v2207_v26  ;;  %v2210_v30 = vld [vmem:[%s9323_s7 + $0x550] sm:$0xff] }
 0x5f1   : > { %5522 = vmatprep.subr.bf16.mxu0 %v7373_v31  ;;  %5694 = vmatprep.subr.bf16.mxu1 %v7375_v20  ;;  %v2214_v31 = vld [vmem:[%s9323_s7 + $0x570] sm:$0xff]  ;;  %v2211_v20 = vld [vmem:[%s9323_s7 + $0x558] sm:$0xff] }
 0x5f2   : > { %v7437_v36 = vcombine.high %v2210_v30, %v2214_v31  ;;  %v7436_v43 = vcombine.low %v2210_v30, %v2214_v31  ;;  %v7438_v44 = vcombine.low %v2211_v20, %v2215_v32  ;;  %v2271_v30 = vld [vmem:[%s9323_s7 + $0x738] sm:$0xff] }
 0x5f4   : > { %5523 = vmatpush1.bf16.msra.mxu0 %v7372_v37  ;;  %5695 = vmatpush1.bf16.msra.mxu1 %v7374_v38  ;;  %v7439_v37 = vcombine.high %v2211_v20, %v2215_v32  ;;  %v2218_v38 = vld [vmem:[%s9323_s7 + $0x590] sm:$0xff] }
 0x5f5   : > { %5524 = vmatprep.subr.bf16.mxu0 %v7381_v40  ;;  %5696 = vmatprep.subr.bf16.mxu1 %v7383_v41  ;;  %v2222_v40 = vld [vmem:[%s9323_s7 + $0x5b0] sm:$0xff]  ;;  %v2219_v41 = vld [vmem:[%s9323_s7 + $0x598] sm:$0xff] }
 0x5f6   : > { %v7445_v45 = vcombine.high %v2218_v38, %v2222_v40  ;;  %v7444_v52 = vcombine.low %v2218_v38, %v2222_v40  ;;  %v7446_v53 = vcombine.low %v2219_v41, %v2223_v42  ;;  %v2279_v38 = vld [vmem:[%s9323_s7 + $0x778] sm:$0xff] }
 0x5f8   : > { %5525 = vmatpush1.bf16.msra.mxu0 %v7380_v47  ;;  %5697 = vmatpush1.bf16.msra.mxu1 %v7382_v48  ;;  %v7447_v47 = vcombine.high %v2219_v41, %v2223_v42  ;;  %v2226_v48 = vld [vmem:[%s9323_s7 + $0x5d0] sm:$0xff] }
 0x5f9   : > { %5526 = vmatprep.subr.bf16.mxu0 %v7389_v49  ;;  %5698 = vmatprep.subr.bf16.mxu1 %v7391_v50  ;;  %v2230_v49 = vld [vmem:[%s9323_s7 + $0x5f0] sm:$0xff]  ;;  %v2227_v50 = vld [vmem:[%s9323_s7 + $0x5d8] sm:$0xff] }
 0x5fa   : > { %v7453_v54 = vcombine.high %v2226_v48, %v2230_v49  ;;  %v7452_v58 = vcombine.low %v2226_v48, %v2230_v49  ;;  %v7454_v59 = vcombine.low %v2227_v50, %v2231_v51  ;;  %v2287_v48 = vld [vmem:[%s9323_s7 + $0x7b8] sm:$0xff] }
 0x5fc   : > { %5527 = vmatpush1.bf16.msra.mxu0 %v7388_v10  ;;  %5699 = vmatpush1.bf16.msra.mxu1 %v7390_v13  ;;  %v7455_v10 = vcombine.high %v2227_v50, %v2231_v51  ;;  %v2234_v13 = vld [vmem:[%s9323_s7 + $0x610] sm:$0xff] }
 0x5fd   : > { %5539 = vmatprep.subr.bf16.mxu0 %v7397_v55  ;;  %5711 = vmatprep.subr.bf16.mxu1 %v7399_v56  ;;  %v2238_v55 = vld [vmem:[%s9323_s7 + $0x630] sm:$0xff]  ;;  %v2235_v56 = vld [vmem:[%s9323_s7 + $0x618] sm:$0xff] }
 0x5fe   : > { %v7461_v61 = vcombine.high %v2234_v13, %v2238_v55  ;;  %v7462_v6 = vcombine.low %v2235_v56, %v2239_v57 }
 0x5ff   : > { %5529 = vmatmul.mubr.bf16.vlgmr.msra.gmra.mrb[4].mxu0 %v9504_v60  ;;  %5701 = vmatmul.mubr.bf16.vlgmr.msra.gmra.mrb[4].mxu1 %v9504_v60  ;;  %v7412_v60 = vcombine.low %v2186_v4, %v2190_v34  ;;  %v2247_v4 = vld [vmem:[%s9323_s7 + $0x678] sm:$0xff]  ;;  %v7460_v34 = vcombine.low %v2234_v13, %v2238_v55 }
 0x600   : > { %5540 = vmatpush1.bf16.msra.mxu0 %v7396_v0  ;;  %5712 = vmatpush1.bf16.msra.mxu1 %v7398_v1  ;;  %v7463_v0 = vcombine.high %v2235_v56, %v2239_v57  ;;  %v2242_v1 = vld [vmem:[%s9323_s7 + $0x650] sm:$0xff]  ;;  %v2295_v13 = vld [vmem:[%s9323_s7 + $0x7f8] sm:$0xff] }
 0x601   : > { %5541 = vmatprep.subr.bf16.mxu0 %v7405_v2  ;;  %5713 = vmatprep.subr.bf16.mxu1 %v7407_v3  ;;  %v2246_v2 = vld [vmem:[%s9323_s7 + $0x670] sm:$0xff]  ;;  %v2243_v3 = vld [vmem:[%s9323_s7 + $0x658] sm:$0xff] }
 0x602   : > { %5571 = vmatprep.mubr.bf16.mxu0 %v9517_v35  ;;  %5743 = vmatprep.mubr.bf16.mxu1 %v9517_v35  ;;  %v7422_v35 = vcombine.low %v2195_v18, %v2199_v19  ;;  %v7469_v8 = vcombine.high %v2242_v1, %v2246_v2  ;;  %v7468_v17 = vcombine.low %v2242_v1, %v2246_v2  ;;  %v2303_v1 = vld [vmem:[%s9323_s7 + $0x838] sm:$0xff] }
 0x603   : > { %v7470_v18 = vcombine.low %v2243_v3, %v2247_v4 }
 0x604   : > { %5542 = vmatpush1.bf16.msra.mxu0 %v7404_v9  ;;  %5714 = vmatpush1.bf16.msra.mxu1 %v7406_v12  ;;  %v7471_v9 = vcombine.high %v2243_v3, %v2247_v4  ;;  %v2250_v12 = vld [vmem:[%s9323_s7 + $0x690] sm:$0xff] }
 0x605   : > { %5543 = vmatprep.subr.bf16.mxu0 %v7413_v16  ;;  %5715 = vmatprep.subr.bf16.mxu1 %v7415_v39  ;;  %v2254_v16 = vld [vmem:[%s9323_s7 + $0x6b0] sm:$0xff]  ;;  %v2251_v39 = vld [vmem:[%s9323_s7 + $0x698] sm:$0xff] }
 0x606   : > { %v7477_v19 = vcombine.high %v2250_v12, %v2254_v16  ;;  %v7476_v24 = vcombine.low %v2250_v12, %v2254_v16  ;;  %v7478_v25 = vcombine.low %v2251_v39, %v2255_v5  ;;  %v2311_v12 = vld [vmem:[%s9323_s7 + $0x878] sm:$0xff] }
 0x608   : > { %5544 = vmatpush1.bf16.msra.mxu0 %v7412_v60  ;;  %5716 = vmatpush1.bf16.msra.mxu1 %v7414_v62  ;;  %v7479_v60 = vcombine.high %v2251_v39, %v2255_v5  ;;  %v2258_v62 = vld [vmem:[%s9323_s7 + $0x6d0] sm:$0xff] }
 0x609   : > { %5545 = vmatprep.subr.bf16.mxu0 %v7421_v21  ;;  %5717 = vmatprep.subr.bf16.mxu1 %v7423_v22  ;;  %v2262_v21 = vld [vmem:[%s9323_s7 + $0x6f0] sm:$0xff]  ;;  %v2259_v22 = vld [vmem:[%s9323_s7 + $0x6d8] sm:$0xff] }
 0x60a   : > { %v7485_v26 = vcombine.high %v2258_v62, %v2262_v21  ;;  %v7484_v31 = vcombine.low %v2258_v62, %v2262_v21  ;;  %v7486_v20 = vcombine.low %v2259_v22, %v2263_v23  ;;  %v2319_v62 = vld [vmem:[%s9323_s7 + $0x8b8] sm:$0xff] }
 0x60c   : > { %5546 = vmatpush1.bf16.msra.mxu0 %v7420_v27  ;;  %5718 = vmatpush1.bf16.msra.mxu1 %v7422_v35  ;;  %v7487_v27 = vcombine.high %v2259_v22, %v2263_v23  ;;  %v2266_v35 = vld [vmem:[%s9323_s7 + $0x710] sm:$0xff] }
 0x60d   : > { %5547 = vmatprep.subr.bf16.mxu0 %v7429_v7  ;;  %5719 = vmatprep.subr.bf16.mxu1 %v7431_v29  ;;  %v2270_v7 = vld [vmem:[%s9323_s7 + $0x730] sm:$0xff]  ;;  %v2267_v29 = vld [vmem:[%s9323_s7 + $0x718] sm:$0xff] }
 0x60e   : > { %v7493_v32 = vcombine.high %v2266_v35, %v2270_v7  ;;  %v7492_v40 = vcombine.low %v2266_v35, %v2270_v7  ;;  %v7494_v41 = vcombine.low %v2267_v29, %v2271_v30  ;;  %v2327_v35 = vld [vmem:[%s9323_s7 + $0x8f8] sm:$0xff] }
 0x610   : > { %5548 = vmatpush1.bf16.msra.mxu0 %v7428_v14  ;;  %5720 = vmatpush1.bf16.msra.mxu1 %v7430_v33  ;;  %v7495_v14 = vcombine.high %v2267_v29, %v2271_v30  ;;  %v2274_v33 = vld [vmem:[%s9323_s7 + $0x750] sm:$0xff] }
 0x611   : > { %5549 = vmatprep.subr.bf16.mxu0 %v7437_v36  ;;  %5721 = vmatprep.subr.bf16.mxu1 %v7439_v37  ;;  %v2278_v36 = vld [vmem:[%s9323_s7 + $0x770] sm:$0xff]  ;;  %v2275_v37 = vld [vmem:[%s9323_s7 + $0x758] sm:$0xff] }
 0x612   : > { %v7501_v42 = vcombine.high %v2274_v33, %v2278_v36  ;;  %v7500_v49 = vcombine.low %v2274_v33, %v2278_v36  ;;  %v7502_v50 = vcombine.low %v2275_v37, %v2279_v38 }
 0x614   : > { %5550 = vmatpush1.bf16.msra.mxu0 %v7436_v43  ;;  %5722 = vmatpush1.bf16.msra.mxu1 %v7438_v44  ;;  %v7503_v43 = vcombine.high %v2275_v37, %v2279_v38  ;;  %v2282_v44 = vld [vmem:[%s9323_s7 + $0x790] sm:$0xff] }
 0x615   : > { %5551 = vmatprep.subr.bf16.mxu0 %v7445_v45  ;;  %5723 = vmatprep.subr.bf16.mxu1 %v7447_v47  ;;  %v2286_v45 = vld [vmem:[%s9323_s7 + $0x7b0] sm:$0xff]  ;;  %v2283_v47 = vld [vmem:[%s9323_s7 + $0x798] sm:$0xff] }
 0x616   : > { %v7509_v51 = vcombine.high %v2282_v44, %v2286_v45  ;;  %v7508_v55 = vcombine.low %v2282_v44, %v2286_v45  ;;  %v7510_v56 = vcombine.low %v2283_v47, %v2287_v48  ;;  %v2338_v38 = vld [vmem:[%s9323_s7 + $0x950] sm:$0xff] }
 0x618   : > { %5552 = vmatpush1.bf16.msra.mxu0 %v7444_v52  ;;  %5724 = vmatpush1.bf16.msra.mxu1 %v7446_v53  ;;  %v7511_v52 = vcombine.high %v2283_v47, %v2287_v48  ;;  %v2290_v53 = vld [vmem:[%s9323_s7 + $0x7d0] sm:$0xff] }
 0x619   : > { %5553 = vmatprep.subr.bf16.mxu0 %v7453_v54  ;;  %5725 = vmatprep.subr.bf16.mxu1 %v7455_v10  ;;  %v2294_v54 = vld [vmem:[%s9323_s7 + $0x7f0] sm:$0xff]  ;;  %v2291_v10 = vld [vmem:[%s9323_s7 + $0x7d8] sm:$0xff] }
 0x61a   : > { %v7517_v57 = vcombine.high %v2290_v53, %v2294_v54  ;;  %v7516_v2 = vcombine.low %v2290_v53, %v2294_v54  ;;  %v7518_v3 = vcombine.low %v2291_v10, %v2295_v13  ;;  %v2346_v48 = vld [vmem:[%s9323_s7 + $0x990] sm:$0xff] }
 0x61c   : > { %5554 = vmatpush1.bf16.msra.mxu0 %v7452_v58  ;;  %5726 = vmatpush1.bf16.msra.mxu1 %v7454_v59  ;;  %v7519_v58 = vcombine.high %v2291_v10, %v2295_v13  ;;  %v2298_v59 = vld [vmem:[%s9323_s7 + $0x810] sm:$0xff] }
 0x61d   : > { %5555 = vmatprep.subr.bf16.mxu0 %v7461_v61  ;;  %5727 = vmatprep.subr.bf16.mxu1 %v7463_v0  ;;  %v2302_v61 = vld [vmem:[%s9323_s7 + $0x830] sm:$0xff]  ;;  %v2299_v0 = vld [vmem:[%s9323_s7 + $0x818] sm:$0xff] }
 0x61e   : > { %v7525_v4 = vcombine.high %v2298_v59, %v2302_v61  ;;  %v7524_v16 = vcombine.low %v2298_v59, %v2302_v61  ;;  %v7526_v39 = vcombine.low %v2299_v0, %v2303_v1  ;;  %v2354_v13 = vld [vmem:[%s9323_s7 + $0x9d0] sm:$0xff] }
 0x620   : > { %5556 = vmatpush1.bf16.msra.mxu0 %v7460_v34  ;;  %5728 = vmatpush1.bf16.msra.mxu1 %v7462_v6  ;;  %v7527_v34 = vcombine.high %v2299_v0, %v2303_v1  ;;  %v2306_v6 = vld [vmem:[%s9323_s7 + $0x850] sm:$0xff] }
 0x621   : > { %5557 = vmatprep.subr.bf16.mxu0 %v7469_v8  ;;  %5729 = vmatprep.subr.bf16.mxu1 %v7471_v9  ;;  %v2310_v8 = vld [vmem:[%s9323_s7 + $0x870] sm:$0xff]  ;;  %v2307_v9 = vld [vmem:[%s9323_s7 + $0x858] sm:$0xff] }
 0x622   : > { %v7533_v5 = vcombine.high %v2306_v6, %v2310_v8  ;;  %v7532_v21 = vcombine.low %v2306_v6, %v2310_v8  ;;  %v7534_v22 = vcombine.low %v2307_v9, %v2311_v12  ;;  %v2362_v1 = vld [vmem:[%s9323_s7 + $0xa10] sm:$0xff] }
 0x624   : > { %5558 = vmatpush1.bf16.msra.mxu0 %v7468_v17  ;;  %5730 = vmatpush1.bf16.msra.mxu1 %v7470_v18  ;;  %v7535_v17 = vcombine.high %v2307_v9, %v2311_v12  ;;  %v2314_v18 = vld [vmem:[%s9323_s7 + $0x890] sm:$0xff] }
 0x625   : > { %5559 = vmatprep.subr.bf16.mxu0 %v7477_v19  ;;  %5731 = vmatprep.subr.bf16.mxu1 %v7479_v60  ;;  %v2318_v19 = vld [vmem:[%s9323_s7 + $0x8b0] sm:$0xff]  ;;  %v2315_v60 = vld [vmem:[%s9323_s7 + $0x898] sm:$0xff] }
 0x626   : > { %v7541_v23 = vcombine.high %v2314_v18, %v2318_v19  ;;  %v7542_v7 = vcombine.low %v2315_v60, %v2319_v62  ;;  %v2370_v12 = vld [vmem:[%s9323_s7 + $0xa50] sm:$0xff] }
 0x628   : > { %5560 = vmatpush1.bf16.msra.mxu0 %v7476_v24  ;;  %5732 = vmatpush1.bf16.msra.mxu1 %v7478_v25  ;;  %v7543_v24 = vcombine.high %v2315_v60, %v2319_v62  ;;  %v2322_v25 = vld [vmem:[%s9323_s7 + $0x8d0] sm:$0xff] }
 0x629   : > { %5561 = vmatprep.subr.bf16.mxu0 %v7485_v26  ;;  %5733 = vmatprep.subr.bf16.mxu1 %v7487_v27  ;;  %v2326_v26 = vld [vmem:[%s9323_s7 + $0x8f0] sm:$0xff]  ;;  %v2323_v27 = vld [vmem:[%s9323_s7 + $0x8d8] sm:$0xff] }
 0x62a   : > { %v7549_v29 = vcombine.high %v2322_v25, %v2326_v26  ;;  %v7551_v30 = vcombine.high %v2323_v27, %v2327_v35  ;;  %v7548_v33 = vcombine.low %v2322_v25, %v2326_v26  ;;  %v2378_v62 = vld [vmem:[%s9323_s7 + $0xa90] sm:$0xff] }
 0x62c   : > { %5562 = vmatpush1.bf16.msra.mxu0 %v7484_v31  ;;  %5734 = vmatpush1.bf16.msra.mxu1 %v7486_v20  ;;  %v2330_v31 = vld [vmem:[%s9323_s7 + $0x910] sm:$0xff] }
 0x62d   : > { %5563 = vmatprep.subr.bf16.mxu0 %v7493_v32  ;;  %5735 = vmatprep.subr.bf16.mxu1 %v7495_v14  ;;  %v2334_v20 = vld [vmem:[%s9323_s7 + $0x930] sm:$0xff]  ;;  %v2331_v32 = vld [vmem:[%s9323_s7 + $0x918] sm:$0xff] }
 0x62e   : > { %v2335_v14 = vld [vmem:[%s9323_s7 + $0x938] sm:$0xff]  ;;  %v7557_v36 = vcombine.high %v2330_v31, %v2334_v20 }
 0x62f   : > { %v7559_v37 = vcombine.high %v2331_v32, %v2335_v14  ;;  %v7558_v44 = vcombine.low %v2331_v32, %v2335_v14  ;;  %v2394_v14 = vld [vmem:[%s9323_s7 + $0xb10] sm:$0xff] }
 0x630   : > { %5564 = vmatpush1.bf16.msra.mxu0 %v7492_v40  ;;  %5736 = vmatpush1.bf16.msra.mxu1 %v7494_v41  ;;  %v2342_v40 = vld [vmem:[%s9323_s7 + $0x970] sm:$0xff]  ;;  %v2339_v41 = vld [vmem:[%s9323_s7 + $0x958] sm:$0xff] }
 0x631   : > { %5565 = vmatprep.subr.bf16.mxu0 %v7501_v42  ;;  %5737 = vmatprep.subr.bf16.mxu1 %v7503_v43  ;;  %v2343_v42 = vld [vmem:[%s9323_s7 + $0x978] sm:$0xff]  ;;  %v7556_v43 = vcombine.low %v2330_v31, %v2334_v20  ;;  %v7565_v45 = vcombine.high %v2338_v38, %v2342_v40 }
 0x632   : > { %v7567_v47 = vcombine.high %v2339_v41, %v2343_v42  ;;  %v7566_v53 = vcombine.low %v2339_v41, %v2343_v42  ;;  %v2402_v42 = vld [vmem:[%s9323_s7 + $0xb50] sm:$0xff] }
 0x634   : > { %5566 = vmatpush1.bf16.msra.mxu0 %v7500_v49  ;;  %5738 = vmatpush1.bf16.msra.mxu1 %v7502_v50  ;;  %v2350_v49 = vld [vmem:[%s9323_s7 + $0x9b0] sm:$0xff]  ;;  %v2347_v50 = vld [vmem:[%s9323_s7 + $0x998] sm:$0xff] }
 0x635   : > { %5567 = vmatprep.subr.bf16.mxu0 %v7509_v51  ;;  %5739 = vmatprep.subr.bf16.mxu1 %v7511_v52  ;;  %v2351_v51 = vld [vmem:[%s9323_s7 + $0x9b8] sm:$0xff]  ;;  %v7564_v52 = vcombine.low %v2338_v38, %v2342_v40  ;;  %v7573_v54 = vcombine.high %v2346_v48, %v2350_v49 }
 0x636   : > { %v7575_v10 = vcombine.high %v2347_v50, %v2351_v51  ;;  %v7574_v59 = vcombine.low %v2347_v50, %v2351_v51  ;;  %v2410_v51 = vld [vmem:[%s9323_s7 + $0xb90] sm:$0xff] }
 0x638   : > { %5568 = vmatpush1.bf16.msra.mxu0 %v7508_v55  ;;  %5740 = vmatpush1.bf16.msra.mxu1 %v7510_v56  ;;  %v2358_v55 = vld [vmem:[%s9323_s7 + $0x9f0] sm:$0xff]  ;;  %v2355_v56 = vld [vmem:[%s9323_s7 + $0x9d8] sm:$0xff] }
 0x639   : > { %5569 = vmatprep.subr.bf16.mxu0 %v7517_v57  ;;  %5741 = vmatprep.subr.bf16.mxu1 %v7519_v58  ;;  %v2359_v57 = vld [vmem:[%s9323_s7 + $0x9f8] sm:$0xff]  ;;  %v7572_v58 = vcombine.low %v2346_v48, %v2350_v49  ;;  %v7581_v61 = vcombine.high %v2354_v13, %v2358_v55 }
 0x63a   : > { %v7583_v0 = vcombine.high %v2355_v56, %v2359_v57  ;;  %v7582_v6 = vcombine.low %v2355_v56, %v2359_v57  ;;  %v2418_v57 = vld [vmem:[%s9323_s7 + $0xbd0] sm:$0xff] }
 0x63c   : > { %5570 = vmatpush1.bf16.msra.mxu0 %v7516_v2  ;;  %5742 = vmatpush1.bf16.msra.mxu1 %v7518_v3  ;;  %v2366_v2 = vld [vmem:[%s9323_s7 + $0xa30] sm:$0xff]  ;;  %v2363_v3 = vld [vmem:[%s9323_s7 + $0xa18] sm:$0xff] }
 0x63d   : > { %5582 = vmatprep.subr.bf16.mxu0 %v7525_v4  ;;  %5754 = vmatprep.subr.bf16.mxu1 %v7527_v34  ;;  %v2367_v4 = vld [vmem:[%s9323_s7 + $0xa38] sm:$0xff]  ;;  %v7580_v34 = vcombine.low %v2354_v13, %v2358_v55  ;;  %v7589_v8 = vcombine.high %v2362_v1, %v2366_v2 }
 0x63e   : > { %v7591_v9 = vcombine.high %v2363_v3, %v2367_v4 }
 0x63f   : > { %5572 = vmatmul.mubr.bf16.vlgmr.msra.gmra.mrb[4].mxu0 %v9586_v11  ;;  %5744 = vmatmul.mubr.bf16.vlgmr.msra.gmra.mrb[4].mxu1 %v9586_v11  ;;  %v7540_v11 = vcombine.low %v2314_v18, %v2318_v19  ;;  %v7590_v18 = vcombine.low %v2363_v3, %v2367_v4  ;;  %v2426_v4 = vld [vmem:[%s9323_s7 + $0xc10] sm:$0xff] }
 0x640   : > { %5583 = vmatpush1.bf16.msra.mxu0 %v7524_v16  ;;  %5755 = vmatpush1.bf16.msra.mxu1 %v7526_v39  ;;  %v2374_v16 = vld [vmem:[%s9323_s7 + $0xa70] sm:$0xff]  ;;  %v2371_v39 = vld [vmem:[%s9323_s7 + $0xa58] sm:$0xff] }
 0x641   : > { %5584 = vmatprep.subr.bf16.mxu0 %v7533_v5  ;;  %5756 = vmatprep.subr.bf16.mxu1 %v7535_v17  ;;  %v2375_v5 = vld [vmem:[%s9323_s7 + $0xa78] sm:$0xff]  ;;  %v7588_v17 = vcombine.low %v2362_v1, %v2366_v2  ;;  %v7597_v19 = vcombine.high %v2370_v12, %v2374_v16 }
 0x642   : > { %5614 = vmatprep.mubr.bf16.mxu0 %v9599_v63  ;;  %5786 = vmatprep.mubr.bf16.mxu1 %v9599_v63  ;;  %v7550_v63 = vcombine.low %v2323_v27, %v2327_v35  ;;  %v7599_v60 = vcombine.high %v2371_v39, %v2375_v5  ;;  %v7598_v25 = vcombine.low %v2371_v39, %v2375_v5  ;;  %v2386_v35 = vld [vmem:[%s9323_s7 + $0xad0] sm:$0xff] }
 0x643   : > { %v2434_v5 = vld [vmem:[%s9323_s7 + $0xc50] sm:$0xff] }
 0x644   : > { %5585 = vmatpush1.bf16.msra.mxu0 %v7532_v21  ;;  %5757 = vmatpush1.bf16.msra.mxu1 %v7534_v22  ;;  %v2382_v21 = vld [vmem:[%s9323_s7 + $0xab0] sm:$0xff]  ;;  %v2379_v22 = vld [vmem:[%s9323_s7 + $0xa98] sm:$0xff] }
 0x645   : > { %5586 = vmatprep.subr.bf16.mxu0 %v7541_v23  ;;  %5758 = vmatprep.subr.bf16.mxu1 %v7543_v24  ;;  %v2383_v23 = vld [vmem:[%s9323_s7 + $0xab8] sm:$0xff]  ;;  %v7596_v24 = vcombine.low %v2370_v12, %v2374_v16  ;;  %v7605_v26 = vcombine.high %v2378_v62, %v2382_v21 }
 0x646   : > { %v7607_v27 = vcombine.high %v2379_v22, %v2383_v23  ;;  %v7606_v31 = vcombine.low %v2379_v22, %v2383_v23  ;;  %v2442_v23 = vld [vmem:[%s9323_s7 + $0xc90] sm:$0xff] }
 0x648   : > { %5587 = vmatpush1.bf16.msra.mxu0 %v7540_v11  ;;  %5759 = vmatpush1.bf16.msra.mxu1 %v7542_v7  ;;  %v2390_v11 = vld [vmem:[%s9323_s7 + $0xaf0] sm:$0xff]  ;;  %v2387_v7 = vld [vmem:[%s9323_s7 + $0xad8] sm:$0xff] }
 0x649   : > { %5588 = vmatprep.subr.bf16.mxu0 %v7549_v29  ;;  %5760 = vmatprep.subr.bf16.mxu1 %v7551_v30  ;;  %v2391_v29 = vld [vmem:[%s9323_s7 + $0xaf8] sm:$0xff]  ;;  %v7604_v30 = vcombine.low %v2378_v62, %v2382_v21  ;;  %v7613_v20 = vcombine.high %v2386_v35, %v2390_v11 }
 0x64a   : > { %v7615_v32 = vcombine.high %v2387_v7, %v2391_v29  ;;  %v7614_v38 = vcombine.low %v2387_v7, %v2391_v29  ;;  %v2450_v29 = vld [vmem:[%s9323_s7 + $0xcd0] sm:$0xff] }
 0x64c   : > { %5589 = vmatpush1.bf16.msra.mxu0 %v7548_v33  ;;  %5761 = vmatpush1.bf16.msra.mxu1 %v7550_v63  ;;  %v2398_v33 = vld [vmem:[%s9323_s7 + $0xb30] sm:$0xff]  ;;  %v2395_v63 = vld [vmem:[%s9323_s7 + $0xb18] sm:$0xff] }
 0x64d   : > { %5590 = vmatprep.subr.bf16.mxu0 %v7557_v36  ;;  %5762 = vmatprep.subr.bf16.mxu1 %v7559_v37  ;;  %v2399_v36 = vld [vmem:[%s9323_s7 + $0xb38] sm:$0xff]  ;;  %v7612_v37 = vcombine.low %v2386_v35, %v2390_v11  ;;  %v7621_v40 = vcombine.high %v2394_v14, %v2398_v33 }
 0x64e   : > { %v7623_v41 = vcombine.high %v2395_v63, %v2399_v36  ;;  %v7622_v48 = vcombine.low %v2395_v63, %v2399_v36  ;;  %v2458_v63 = vld [vmem:[%s9323_s7 + $0xd10] sm:$0xff] }
 0x64f   : > { %v2462_v36 = vld [vmem:[%s9323_s7 + $0xd30] sm:$0xff] }
 0x650   : > { %5591 = vmatpush1.bf16.msra.mxu0 %v7556_v43  ;;  %5763 = vmatpush1.bf16.msra.mxu1 %v7558_v44  ;;  %v2406_v43 = vld [vmem:[%s9323_s7 + $0xb70] sm:$0xff]  ;;  %v2403_v44 = vld [vmem:[%s9323_s7 + $0xb58] sm:$0xff] }
 0x651   : > { %5592 = vmatprep.subr.bf16.mxu0 %v7565_v45  ;;  %5764 = vmatprep.subr.bf16.mxu1 %v7567_v47  ;;  %v2407_v45 = vld [vmem:[%s9323_s7 + $0xb78] sm:$0xff]  ;;  %v7620_v47 = vcombine.low %v2394_v14, %v2398_v33  ;;  %v7629_v49 = vcombine.high %v2402_v42, %v2406_v43 }
 0x652   : > { %v7631_v50 = vcombine.high %v2403_v44, %v2407_v45  ;;  %v7630_v13 = vcombine.low %v2403_v44, %v2407_v45  ;;  %v2470_v44 = vld [vmem:[%s9323_s7 + $0xd70] sm:$0xff]  ;;  %v2467_v45 = vld [vmem:[%s9323_s7 + $0xd58] sm:$0xff] }
 0x654   : > { %5593 = vmatpush1.bf16.msra.mxu0 %v7564_v52  ;;  %5765 = vmatpush1.bf16.msra.mxu1 %v7566_v53  ;;  %v2414_v52 = vld [vmem:[%s9323_s7 + $0xbb0] sm:$0xff]  ;;  %v2411_v53 = vld [vmem:[%s9323_s7 + $0xb98] sm:$0xff] }
 0x655   : > { %5594 = vmatprep.subr.bf16.mxu0 %v7573_v54  ;;  %5766 = vmatprep.subr.bf16.mxu1 %v7575_v10  ;;  %v2415_v54 = vld [vmem:[%s9323_s7 + $0xbb8] sm:$0xff]  ;;  %v7628_v10 = vcombine.low %v2402_v42, %v2406_v43  ;;  %v7637_v55 = vcombine.high %v2410_v51, %v2414_v52  ;;  %v2466_v43 = vld [vmem:[%s9323_s7 + $0xd50] sm:$0xff] }
 0x656   : > { %v7639_v56 = vcombine.high %v2411_v53, %v2415_v54  ;;  %v7638_v1 = vcombine.low %v2411_v53, %v2415_v54  ;;  %v2478_v53 = vld [vmem:[%s9323_s7 + $0xdb0] sm:$0xff]  ;;  %v2475_v54 = vld [vmem:[%s9323_s7 + $0xd98] sm:$0xff] }
 0x658   : > { %5595 = vmatpush1.bf16.msra.mxu0 %v7572_v58  ;;  %5767 = vmatpush1.bf16.msra.mxu1 %v7574_v59  ;;  %v2422_v58 = vld [vmem:[%s9323_s7 + $0xbf0] sm:$0xff]  ;;  %v2419_v59 = vld [vmem:[%s9323_s7 + $0xbd8] sm:$0xff] }
 0x659   : > { %5596 = vmatprep.subr.bf16.mxu0 %v7581_v61  ;;  %5768 = vmatprep.subr.bf16.mxu1 %v7583_v0  ;;  %v2423_v61 = vld [vmem:[%s9323_s7 + $0xbf8] sm:$0xff]  ;;  %v7636_v0 = vcombine.low %v2410_v51, %v2414_v52  ;;  %v7645_v2 = vcombine.high %v2418_v57, %v2422_v58  ;;  %v2474_v52 = vld [vmem:[%s9323_s7 + $0xd90] sm:$0xff] }
 0x65a   : > { %v7647_v3 = vcombine.high %v2419_v59, %v2423_v61  ;;  %v7646_v12 = vcombine.low %v2419_v59, %v2423_v61  ;;  %v2024_v61 = vld [vmem:[#allocation2 + $0x40] sm:$0xff] }
 0x65c   : > { %5597 = vmatpush1.bf16.msra.mxu0 %v7580_v34  ;;  %5769 = vmatpush1.bf16.msra.mxu1 %v7582_v6  ;;  %v2430_v34 = vld [vmem:[%s9323_s7 + $0xc30] sm:$0xff]  ;;  %v2427_v6 = vld [vmem:[%s9323_s7 + $0xc18] sm:$0xff] }
 0x65d   : > { %5598 = vmatprep.subr.bf16.mxu0 %v7589_v8  ;;  %5770 = vmatprep.subr.bf16.mxu1 %v7591_v9  ;;  %v2431_v8 = vld [vmem:[%s9323_s7 + $0xc38] sm:$0xff]  ;;  %v7644_v9 = vcombine.low %v2418_v57, %v2422_v58  ;;  %v7653_v16 = vcombine.high %v2426_v4, %v2430_v34  ;;  %v2019_v58 = vld [vmem:[#allocation2 + $0x18] sm:$0xff] }
 0x65e   : > { %v7655_v39 = vcombine.high %v2427_v6, %v2431_v8  ;;  %v7654_v62 = vcombine.low %v2427_v6, %v2431_v8  ;;  %v2017_v57 = vld [vmem:[#allocation2 + $0x8] sm:$0xff] }
 0x660   : > { %5599 = vmatpush1.bf16.msra.mxu0 %v7588_v17  ;;  %5771 = vmatpush1.bf16.msra.mxu1 %v7590_v18  ;;  %v2438_v17 = vld [vmem:[%s9323_s7 + $0xc70] sm:$0xff]  ;;  %v2435_v18 = vld [vmem:[%s9323_s7 + $0xc58] sm:$0xff] }
 0x661   : > { %5600 = vmatprep.subr.bf16.mxu0 %v7597_v19  ;;  %5772 = vmatprep.subr.bf16.mxu1 %v7599_v60  ;;  %v2439_v19 = vld [vmem:[%s9323_s7 + $0xc78] sm:$0xff]  ;;  %v7652_v60 = vcombine.low %v2426_v4, %v2430_v34  ;;  %v7661_v21 = vcombine.high %v2434_v5, %v2438_v17  ;;  %v2482_v4 = vld [vmem:[%s9323_s7 + $0xdd0] sm:$0xff] }
 0x662   : > { %v7663_v22 = vcombine.high %v2435_v18, %v2439_v19  ;;  %v7662_v35 = vcombine.low %v2435_v18, %v2439_v19  ;;  %v2486_v34 = vld [vmem:[%s9323_s7 + $0xdf0] sm:$0xff] }
 0x664   : > { %5601 = vmatpush1.bf16.msra.mxu0 %v7596_v24  ;;  %5773 = vmatpush1.bf16.msra.mxu1 %v7598_v25  ;;  %v2446_v24 = vld [vmem:[%s9323_s7 + $0xcb0] sm:$0xff]  ;;  %v2443_v25 = vld [vmem:[%s9323_s7 + $0xc98] sm:$0xff] }
 0x665   : > { %5602 = vmatprep.subr.bf16.mxu0 %v7605_v26  ;;  %5774 = vmatprep.subr.bf16.mxu1 %v7607_v27  ;;  %v2447_v26 = vld [vmem:[%s9323_s7 + $0xcb8] sm:$0xff]  ;;  %v7660_v27 = vcombine.low %v2434_v5, %v2438_v17  ;;  %v7669_v11 = vcombine.high %v2442_v23, %v2446_v24 }
 0x666   : > { %v7671_v7 = vcombine.high %v2443_v25, %v2447_v26 }
 0x668   : > { %5603 = vmatpush1.bf16.msra.mxu0 %v7604_v30  ;;  %5775 = vmatpush1.bf16.msra.mxu1 %v7606_v31  ;;  %v2454_v30 = vld [vmem:[%s9323_s7 + $0xcf0] sm:$0xff]  ;;  %v2451_v31 = vld [vmem:[%s9323_s7 + $0xcd8] sm:$0xff] }
 0x669   : > { %5604 = vmatprep.subr.bf16.mxu0 %v7613_v20  ;;  %5776 = vmatprep.subr.bf16.mxu1 %v7615_v32  ;;  %v2455_v20 = vld [vmem:[%s9323_s7 + $0xcf8] sm:$0xff]  ;;  %v7670_v32 = vcombine.low %v2443_v25, %v2447_v26  ;;  %v7677_v14 = vcombine.high %v2450_v29, %v2454_v30  ;;  %v7709_v26 = vcombine.high %v2482_v4, %v2486_v34 }
 0x66a   : > { %v7679_v33 = vcombine.high %v2451_v31, %v2455_v20 }
 0x66c   : > { %5605 = vmatpush1.bf16.msra.mxu0 %v7612_v37  ;;  %5777 = vmatpush1.bf16.msra.mxu1 %v7614_v38  ;;  %v2459_v37 = vld [vmem:[%s9323_s7 + $0xd18] sm:$0xff] }
 0x66d   : > { %5606 = vmatprep.subr.bf16.mxu0 %v7621_v40  ;;  %5778 = vmatprep.subr.bf16.mxu1 %v7623_v41  ;;  %v2463_v38 = vld [vmem:[%s9323_s7 + $0xd38] sm:$0xff]  ;;  %v7676_v40 = vcombine.low %v2450_v29, %v2454_v30  ;;  %v7685_v41 = vcombine.high %v2458_v63, %v2462_v36  ;;  %v2490_v29 = vld [vmem:[%s9323_s7 + $0xe10] sm:$0xff] }
 0x66e   : > { %v7687_v42 = vcombine.high %v2459_v37, %v2463_v38  ;;  %v2494_v30 = vld [vmem:[%s9323_s7 + $0xe30] sm:$0xff] }
 0x670   : > { %5607 = vmatpush1.bf16.msra.mxu0 %v7620_v47  ;;  %5779 = vmatpush1.bf16.msra.mxu1 %v7622_v48  ;;  %v2471_v47 = vld [vmem:[%s9323_s7 + $0xd78] sm:$0xff]  ;;  %v7684_v48 = vcombine.low %v2458_v63, %v2462_v36  ;;  %v2498_v36 = vld [vmem:[%s9323_s7 + $0xe50] sm:$0xff] }
 0x671   : > { %5608 = vmatprep.subr.bf16.mxu0 %v7629_v49  ;;  %5780 = vmatprep.subr.bf16.mxu1 %v7631_v50  ;;  %v7686_v49 = vcombine.low %v2459_v37, %v2463_v38  ;;  %v7693_v50 = vcombine.high %v2466_v43, %v2470_v44  ;;  %v7695_v51 = vcombine.high %v2467_v45, %v2471_v47  ;;  %v2502_v37 = vld [vmem:[%s9323_s7 + $0xe70] sm:$0xff]  ;;  %v2499_v38 = vld [vmem:[%s9323_s7 + $0xe58] sm:$0xff] }
 0x672   : > { %v7694_v59 = vcombine.low %v2467_v45, %v2471_v47  ;;  %v2510_v45 = vld [vmem:[%s9323_s7 + $0xeb0] sm:$0xff]  ;;  %v2507_v47 = vld [vmem:[%s9323_s7 + $0xe98] sm:$0xff] }
 0x674   : > { %5609 = vmatpush1.bf16.msra.mxu0 %v7628_v10  ;;  %5781 = vmatpush1.bf16.msra.mxu1 %v7630_v13  ;;  %v2479_v10 = vld [vmem:[%s9323_s7 + $0xdb8] sm:$0xff]  ;;  %v2016_v13 = vld [vmem:[#allocation2] sm:$0xff] }
 0x675   : > { %5610 = vmatprep.subr.bf16.mxu0 %v7637_v55  ;;  %5782 = vmatprep.subr.bf16.mxu1 %v7639_v56  ;;  %v2018_v55 = vld [vmem:[#allocation2 + $0x10] sm:$0xff]  ;;  %v7692_v56 = vcombine.low %v2466_v43, %v2470_v44  ;;  %v2506_v44 = vld [vmem:[%s9323_s7 + $0xe90] sm:$0xff] }
 0x678   : > { %5611 = vmatpush1.bf16.msra.mxu0 %v7636_v0  ;;  %5783 = vmatpush1.bf16.msra.mxu1 %v7638_v1  ;;  %v7701_v0 = vcombine.high %v2474_v52, %v2478_v53 }
 0x679   : > { %5612 = vmatprep.subr.bf16.mxu0 %v7645_v2  ;;  %5784 = vmatprep.subr.bf16.mxu1 %v7647_v3  ;;  %v2026_v2 = vld [vmem:[#allocation2 + $0x50] sm:$0xff]  ;;  %v7703_v3 = vcombine.high %v2475_v54, %v2479_v10 }
 0x67c   : > { %5613 = vmatpush1.bf16.msra.mxu0 %v7644_v9  ;;  %5785 = vmatpush1.bf16.msra.mxu1 %v7646_v12  ;;  %v2025_v12 = vld [vmem:[#allocation2 + $0x48] sm:$0xff] }
 0x67d   : > { %5625 = vmatprep.subr.bf16.mxu0 %v7653_v16  ;;  %5797 = vmatprep.subr.bf16.mxu1 %v7655_v39  ;;  %v2483_v16 = vld [vmem:[%s9323_s7 + $0xdd8] sm:$0xff] }
 0x67e   : > { %v2487_v39 = vld [vmem:[%s9323_s7 + $0xdf8] sm:$0xff] }
 0x67f   : > { %5615 = vmatmul.mubr.bf16.vlgmr.msra.gmra.mrb[4].mxu0 %v9668_v28  ;;  %5787 = vmatmul.mubr.bf16.vlgmr.msra.gmra.mrb[4].mxu1 %v9668_v28  ;;  %v7668_v28 = vcombine.low %v2442_v23, %v2446_v24 }
 0x680   : > { %5626 = vmatpush1.bf16.msra.mxu0 %v7652_v60  ;;  %5798 = vmatpush1.bf16.msra.mxu1 %v7654_v62  ;;  %v2027_v60 = vld [vmem:[#allocation2 + $0x58] sm:$0xff]  ;;  %v7700_v62 = vcombine.low %v2474_v52, %v2478_v53  ;;  %v2514_v53 = vld [vmem:[%s9323_s7 + $0xed0] sm:$0xff] }
 0x681   : > { %5627 = vmatprep.subr.bf16.mxu0 %v7661_v21  ;;  %5799 = vmatprep.subr.bf16.mxu1 %v7663_v22  ;;  %v7702_v21 = vcombine.low %v2475_v54, %v2479_v10  ;;  %v2518_v54 = vld [vmem:[%s9323_s7 + $0xef0] sm:$0xff]  ;;  %v2515_v10 = vld [vmem:[%s9323_s7 + $0xed8] sm:$0xff] }
 0x682   : > { %5657 = vmatprep.mubr.bf16.mxu0 %v9681_v15  ;;  %5829 = vmatprep.mubr.bf16.mxu1 %v9681_v15  ;;  %v7678_v15 = vcombine.low %v2451_v31, %v2455_v20  ;;  %v2491_v20 = vld [vmem:[%s9323_s7 + $0xe18] sm:$0xff] }
 0x684   : > { %5628 = vmatpush1.bf16.msra.mxu0 %v7660_v27  ;;  %5800 = vmatpush1.bf16.msra.mxu1 %v7662_v35 }
 0x685   : > { %5629 = vmatprep.subr.bf16.mxu0 %v7669_v11  ;;  %5801 = vmatprep.subr.bf16.mxu1 %v7671_v7  ;;  %v7711_v7 = vcombine.high %v2483_v16, %v2487_v39 }
 0x688   : > { %5630 = vmatpush1.bf16.msra.mxu0 %v7668_v28  ;;  %5802 = vmatpush1.bf16.msra.mxu1 %v7670_v32  ;;  %v2495_v28 = vld [vmem:[%s9323_s7 + $0xe38] sm:$0xff]  ;;  %v7708_v32 = vcombine.low %v2482_v4, %v2486_v34 }
 0x689   : > { %5631 = vmatprep.subr.bf16.mxu0 %v7677_v14  ;;  %5803 = vmatprep.subr.bf16.mxu1 %v7679_v33  ;;  %v7710_v14 = vcombine.low %v2483_v16, %v2487_v39  ;;  %v7717_v33 = vcombine.high %v2490_v29, %v2494_v30  ;;  %v7719_v63 = vcombine.high %v2491_v20, %v2495_v28 }
 0x68c   : > { %5632 = vmatpush1.bf16.msra.mxu0 %v7676_v40  ;;  %5804 = vmatpush1.bf16.msra.mxu1 %v7678_v15  ;;  %v2503_v40 = vld [vmem:[%s9323_s7 + $0xe78] sm:$0xff]  ;;  %v7716_v15 = vcombine.low %v2490_v29, %v2494_v30 }
 0x68d   : > { %5633 = vmatprep.subr.bf16.mxu0 %v7685_v41  ;;  %5805 = vmatprep.subr.bf16.mxu1 %v7687_v42  ;;  %v7718_v41 = vcombine.low %v2491_v20, %v2495_v28  ;;  %v7725_v42 = vcombine.high %v2498_v36, %v2502_v37  ;;  %v7727_v43 = vcombine.high %v2499_v38, %v2503_v40  ;;  %v2020_v28 = vld [vmem:[#allocation2 + $0x20] sm:$0xff] }
 0x690   : > { %5634 = vmatpush1.bf16.msra.mxu0 %v7684_v48  ;;  %5806 = vmatpush1.bf16.msra.mxu1 %v7686_v49  ;;  %v2511_v48 = vld [vmem:[%s9323_s7 + $0xeb8] sm:$0xff]  ;;  %v7724_v49 = vcombine.low %v2498_v36, %v2502_v37  ;;  %v2028_v36 = vld [vmem:[#allocation2 + $0x60] sm:$0xff] }
 0x691   : > { %5635 = vmatprep.subr.bf16.mxu0 %v7693_v50  ;;  %5807 = vmatprep.subr.bf16.mxu1 %v7695_v51  ;;  %v7726_v50 = vcombine.low %v2499_v38, %v2503_v40  ;;  %v7733_v51 = vcombine.high %v2506_v44, %v2510_v45  ;;  %v7735_v52 = vcombine.high %v2507_v47, %v2511_v48 }
 0x692   : > { %v5315_v1 = vpop.f32.mrb[0].mxu0  ;;  %v5487_v8 = vpop.f32.mrb[0].mxu1 }
 0x693   : > { %v5840_v6 = vadd.f32 %v5315_v1, %v2016_v13  ;;  %v5317_v9 = vpop.f32.mrb[1].mxu0  ;;  %v5842_v5 = vadd.f32 %v5487_v8, %v2018_v55  ;;  %v5489_v18 = vpop.f32.mrb[1].mxu1  ;;  %v2519_v13 = vld [vmem:[%s9323_s7 + $0xef8] sm:$0xff]  ;;  %v7732_v55 = vcombine.low %v2506_v44, %v2510_v45  ;;  %v2534_v8 = vld [vmem:[%s9323_s7 + $0xf70] sm:$0xff] }
 0x694   : > { %v5841_v17 = vadd.f32 %v5317_v9, %v2017_v57  ;;  %v5319_v19 = vpop.f32.mrb[2].mxu0  ;;  %5636 = vmatpush1.bf16.msra.mxu0 %v7692_v56  ;;  %v5843_v22 = vadd.f32 %v5489_v18, %v2019_v58  ;;  %v5491_v24 = vpop.f32.mrb[2].mxu1  ;;  %5808 = vmatpush1.bf16.msra.mxu1 %v7694_v59  ;;  %v7734_v56 = vcombine.low %v2507_v47, %v2511_v48  ;;  %v2522_v59 = vld [vmem:[%s9323_s7 + $0xf10] sm:$0xff]  ;;  %v2527_v1 = vld [vmem:[%s9323_s7 + $0xf38] sm:$0xff]  ;;  %v2031_v47 = vld [vmem:[#allocation2 + $0x78] sm:$0xff] }
 0x695   : > { %5856 = vst [vmem:[#allocation2] sm:$0xff] %v5840_v6  ;;  %v5848_v23 = vadd.f32 %v5319_v19, %v2024_v61  ;;  %v5321_v25 = vpop.f32.mrb[3].mxu0  ;;  %5637 = vmatprep.subr.bf16.mxu0 %v7701_v0  ;;  %5858 = vst [vmem:[#allocation2 + $0x10] sm:$0xff] %v5842_v5  ;;  %v5850_v27 = vadd.f32 %v5491_v24, %v2026_v2  ;;  %v5493_v11 = vpop.f32.mrb[3].mxu1  ;;  %5809 = vmatprep.subr.bf16.mxu1 %v7703_v3  ;;  %v2526_v61 = vld [vmem:[%s9323_s7 + $0xf30] sm:$0xff]  ;;  %v2523_v0 = vld [vmem:[%s9323_s7 + $0xf18] sm:$0xff] }
 0x696   : > { %5857 = vst [vmem:[#allocation2 + $0x8] sm:$0xff] %v5841_v17  ;;  %v5849_v35 = vadd.f32 %v5321_v25, %v2025_v12  ;;  %5859 = vst [vmem:[#allocation2 + $0x18] sm:$0xff] %v5843_v22  ;;  %v5851_v31 = vadd.f32 %v5493_v11, %v2027_v60  ;;  %v7741_v57 = vcombine.high %v2514_v53, %v2518_v54  ;;  %v2530_v6 = vld [vmem:[%s9323_s7 + $0xf50] sm:$0xff]  ;;  %v2531_v9 = vld [vmem:[%s9323_s7 + $0xf58] sm:$0xff] }
 0x697   : > { %5864 = vst [vmem:[#allocation2 + $0x40] sm:$0xff] %v5848_v23  ;;  %5866 = vst [vmem:[#allocation2 + $0x50] sm:$0xff] %v5850_v27  ;;  %v7743_v58 = vcombine.high %v2515_v10, %v2519_v13  ;;  %v7740_v2 = vcombine.low %v2514_v53, %v2518_v54  ;;  %v7742_v3 = vcombine.low %v2515_v10, %v2519_v13  ;;  %v2535_v12 = vld [vmem:[%s9323_s7 + $0xf78] sm:$0xff]  ;;  %v2538_v18 = vld [vmem:[%s9323_s7 + $0xf90] sm:$0xff] }
 0x698   : > { %5865 = vst [vmem:[#allocation2 + $0x48] sm:$0xff] %v5849_v35  ;;  %5638 = vmatpush1.bf16.msra.mxu0 %v7700_v62  ;;  %5867 = vst [vmem:[#allocation2 + $0x58] sm:$0xff] %v5851_v31  ;;  %5810 = vmatpush1.bf16.msra.mxu1 %v7702_v21  ;;  %v7749_v4 = vcombine.high %v2522_v59, %v2526_v61  ;;  %v7751_v34 = vcombine.high %v2523_v0, %v2527_v1  ;;  %v2542_v19 = vld [vmem:[%s9323_s7 + $0xfb0] sm:$0xff]  ;;  %v2539_v60 = vld [vmem:[%s9323_s7 + $0xf98] sm:$0xff] }
 0x699   : > { %5639 = vmatprep.subr.bf16.mxu0 %v7709_v26  ;;  %5811 = vmatprep.subr.bf16.mxu1 %v7711_v7  ;;  %v7748_v16 = vcombine.low %v2522_v59, %v2526_v61  ;;  %v7750_v39 = vcombine.low %v2523_v0, %v2527_v1  ;;  %v7757_v5 = vcombine.high %v2530_v6, %v2534_v8  ;;  %v2543_v62 = vld [vmem:[%s9323_s7 + $0xfb8] sm:$0xff]  ;;  %v2546_v25 = vld [vmem:[%s9323_s7 + $0xfd0] sm:$0xff]  ;;  %v8232_v59 = vld [vmem:[#allocation24 + $0x8] sm:$0xff] (!%p7776_p3)  }
 0x69a   : > { %v7759_v17 = vcombine.high %v2531_v9, %v2535_v12  ;;  %v7756_v21 = vcombine.low %v2530_v6, %v2534_v8  ;;  %v7758_v22 = vcombine.low %v2531_v9, %v2535_v12  ;;  %v7765_v23 = vcombine.high %v2538_v18, %v2542_v19  ;;  %v2550_v26 = vld [vmem:[%s9323_s7 + $0xff0] sm:$0xff]  ;;  %v2547_v27 = vld [vmem:[%s9323_s7 + $0xfd8] sm:$0xff]  ;;  %v8233_v61 = vld [vmem:[#allocation24 + $0x88] sm:$0xff] (!%p7776_p3)  }
 0x69b   : > { %v7767_v24 = vcombine.high %v2539_v60, %v2543_v62  ;;  %v2551_v35 = vld [vmem:[%s9323_s7 + $0xff8] sm:$0xff]  ;;  %v7764_v11 = vcombine.low %v2538_v18, %v2542_v19  ;;  %v7766_v7 = vcombine.low %v2539_v60, %v2543_v62  ;;  %v7773_v29 = vcombine.high %v2546_v25, %v2550_v26  ;;  %v8234_v0 = vld [vmem:[#allocation24 + $0x50] sm:$0xff] (!%p7776_p3)   ;;  %v8240_v6 = vld [vmem:[#allocation24 + $0x18] sm:$0xff] (!%p7776_p3)  }
 0x69c   : > { %5640 = vmatpush1.bf16.msra.mxu0 %v7708_v32  ;;  %5812 = vmatpush1.bf16.msra.mxu1 %v7710_v14  ;;  %v7775_v30 = vcombine.high %v2547_v27, %v2551_v35  ;;  %v7772_v31 = vcombine.low %v2546_v25, %v2550_v26  ;;  %v7774_v20 = vcombine.low %v2547_v27, %v2551_v35  ;;  %v2022_v32 = vld [vmem:[#allocation2 + $0x30] sm:$0xff]  ;;  %v2021_v14 = vld [vmem:[#allocation2 + $0x28] sm:$0xff]  ;;  %v8235_v1 = vld [vmem:[#allocation24 + $0xd0] sm:$0xff] (!%p7776_p3)  }
 0x69d   : > { %5641 = vmatprep.subr.bf16.mxu0 %v7717_v33  ;;  %5813 = vmatprep.subr.bf16.mxu1 %v7719_v63  ;;  %v2023_v63 = vld [vmem:[#allocation2 + $0x38] sm:$0xff]  ;;  %v8226_v10 = vld [vmem:[#allocation24 + $0x40] sm:$0xff] (!%p7776_p3)   ;;  %v8241_v8 = vld [vmem:[#allocation24 + $0x98] sm:$0xff] (!%p7776_p3)  }
 0x69e   : > { %v8227_v13 = vld [vmem:[#allocation24 + $0xc0] sm:$0xff] (!%p7776_p3)   ;;  %v8248_v18 = vld [vmem:[#allocation24 + $0x28] sm:$0xff] (!%p7776_p3)   ;;  %v8250_v60 = vld [vmem:[#allocation24 + $0x70] sm:$0xff] (!%p7776_p3)  }
 0x69f   : > { %v8242_v9 = vld [vmem:[#allocation24 + $0x60] sm:$0xff] (!%p7776_p3)   ;;  %v8249_v19 = vld [vmem:[#allocation24 + $0xa8] sm:$0xff] (!%p7776_p3)   ;;  %v8251_v62 = vld [vmem:[#allocation24 + $0xf0] sm:$0xff] (!%p7776_p3)  }
 0x6a0   : > { %5642 = vmatpush1.bf16.msra.mxu0 %v7716_v15  ;;  %5814 = vmatpush1.bf16.msra.mxu1 %v7718_v41  ;;  %v2030_v15 = vld [vmem:[#allocation2 + $0x70] sm:$0xff]  ;;  %v2029_v41 = vld [vmem:[#allocation2 + $0x68] sm:$0xff]  ;;  %v8256_v25 = vld [vmem:[#allocation24 + $0x38] sm:$0xff] (!%p7776_p3)  }
 0x6a1   : > { %5643 = vmatprep.subr.bf16.mxu0 %v7725_v42  ;;  %5815 = vmatprep.subr.bf16.mxu1 %v7727_v43  ;;  %v8243_v12 = vld [vmem:[#allocation24 + $0xe0] sm:$0xff] (!%p7776_p3)   ;;  %v8257_v26 = vld [vmem:[#allocation24 + $0xb8] sm:$0xff] (!%p7776_p3)  }
 0x6a2   : > { %v5877_v27 = vld [vmem:[#allocation2 + $0x8] sm:$0xff] (!%p7776_p3) }
 0x6a3   : > { %v5885_v35 = vld [vmem:[#allocation2 + $0x48] sm:$0xff] (!%p7776_p3) }
 0x6a4   : > { %5644 = vmatpush1.bf16.msra.mxu0 %v7724_v49  ;;  %5816 = vmatpush1.bf16.msra.mxu1 %v7726_v50 }
 0x6a5   : > { %5645 = vmatprep.subr.bf16.mxu0 %v7733_v51  ;;  %5817 = vmatprep.subr.bf16.mxu1 %v7735_v52 }
 0x6a8   : > { %5646 = vmatpush1.bf16.msra.mxu0 %v7732_v55  ;;  %5818 = vmatpush1.bf16.msra.mxu1 %v7734_v56  ;;  %v8228_v55 = vld [vmem:[#allocation24] sm:$0xff] (!%p7776_p3)  }
 0x6a9   : > { %5647 = vmatprep.subr.bf16.mxu0 %v7741_v57  ;;  %5819 = vmatprep.subr.bf16.mxu1 %v7743_v58  ;;  %v8229_v56 = vld [vmem:[#allocation24 + $0x80] sm:$0xff] (!%p7776_p3)   ;;  %v8230_v57 = vld [vmem:[#allocation24 + $0x48] sm:$0xff] (!%p7776_p3)  }
 0x6aa   : > { %v8231_v58 = vld [vmem:[#allocation24 + $0xc8] sm:$0xff] (!%p7776_p3)  }
 0x6ac   : > { %5648 = vmatpush1.bf16.msra.mxu0 %v7740_v2  ;;  %5820 = vmatpush1.bf16.msra.mxu1 %v7742_v3  ;;  %v8236_v2 = vld [vmem:[#allocation24 + $0x10] sm:$0xff] (!%p7776_p3)  }
 0x6ad   : > { %5649 = vmatprep.subr.bf16.mxu0 %v7749_v4  ;;  %5821 = vmatprep.subr.bf16.mxu1 %v7751_v34  ;;  %v8237_v3 = vld [vmem:[#allocation24 + $0x90] sm:$0xff] (!%p7776_p3)   ;;  %v8238_v4 = vld [vmem:[#allocation24 + $0x58] sm:$0xff] (!%p7776_p3)  }
 0x6ae   : > { %v8239_v34 = vld [vmem:[#allocation24 + $0xd8] sm:$0xff] (!%p7776_p3)  }
 0x6b0   : > { %5650 = vmatpush1.bf16.msra.mxu0 %v7748_v16  ;;  %5822 = vmatpush1.bf16.msra.mxu1 %v7750_v39  ;;  %v8244_v16 = vld [vmem:[#allocation24 + $0x20] sm:$0xff] (!%p7776_p3)  }
 0x6b1   : > { %5651 = vmatprep.subr.bf16.mxu0 %v7757_v5  ;;  %5823 = vmatprep.subr.bf16.mxu1 %v7759_v17  ;;  %v8245_v39 = vld [vmem:[#allocation24 + $0xa0] sm:$0xff] (!%p7776_p3)   ;;  %v8246_v5 = vld [vmem:[#allocation24 + $0x68] sm:$0xff] (!%p7776_p3)  }
 0x6b2   : > { %v8247_v17 = vld [vmem:[#allocation24 + $0xe8] sm:$0xff] (!%p7776_p3)  }
 0x6b4   : > { %5652 = vmatpush1.bf16.msra.mxu0 %v7756_v21  ;;  %5824 = vmatpush1.bf16.msra.mxu1 %v7758_v22  ;;  %v8252_v21 = vld [vmem:[#allocation24 + $0x30] sm:$0xff] (!%p7776_p3)  }
 0x6b5   : > { %5653 = vmatprep.subr.bf16.mxu0 %v7765_v23  ;;  %5825 = vmatprep.subr.bf16.mxu1 %v7767_v24  ;;  %v8253_v22 = vld [vmem:[#allocation24 + $0xb0] sm:$0xff] (!%p7776_p3)   ;;  %v8254_v23 = vld [vmem:[#allocation24 + $0x78] sm:$0xff] (!%p7776_p3)  }
 0x6b6   : > { %v8255_v24 = vld [vmem:[#allocation24 + $0xf8] sm:$0xff] (!%p7776_p3)  }
 0x6b8   : > { %5654 = vmatpush1.bf16.msra.mxu0 %v7764_v11  ;;  %5826 = vmatpush1.bf16.msra.mxu1 %v7766_v7  ;;  %v5901_v11 = vadd.f32 (!%p7776_p3), %v5885_v35, %v5877_v27  ;;  %v5879_v7 = vld [vmem:[#allocation2 + $0x18] sm:$0xff] (!%p7776_p3) }
 0x6b9   : > { %5655 = vmatprep.subr.bf16.mxu0 %v7773_v29  ;;  %5827 = vmatprep.subr.bf16.mxu1 %v7775_v30  ;;  %v5887_v29 = vld [vmem:[#allocation2 + $0x58] sm:$0xff] (!%p7776_p3) }
 0x6ba   : > { %v5915_v30 = vadd.f32 (!%p7776_p3), %v5887_v29, %v5879_v7 }
 0x6bc   : > { %5656 = vmatpush1.bf16.msra.mxu0 %v7772_v31  ;;  %5828 = vmatpush1.bf16.msra.mxu1 %v7774_v20  ;;  %v8258_v31 = vld [vmem:[#allocation24 + $0x140] sm:$0xff] (!%p7776_p3)   ;;  %v5902_v20 = vrot.slane (!%p7776_p3), %v5901_v11, 4 }
 0x6bd   : > { %7855 = vmatprep.subr.bf16.mxu0 (!%p7776_p3), %v8226_v10  ;;  %7877 = vmatprep.subr.bf16.mxu1 (!%p7776_p3), %v8227_v13 }
 0x6bf   : > { %5658 = vmatmul.mubr.bf16.vlgmr.msra.gmra.mrb[4].mxu0 %v9749_v46  ;;  %5830 = vmatmul.mubr.bf16.vlgmr.msra.gmra.mrb[4].mxu1 %v9749_v46 }
 0x6c0   : > { %7856 = vmatpush3.bf16.msra.mxu0 (!%p7776_p3), %v8228_v55  ;;  %7878 = vmatpush3.bf16.msra.mxu1 (!%p7776_p3), %v8229_v56 }
 0x6c1   : > { %7857 = vmatprep.subr.bf16.mxu0 (!%p7776_p3), %v8230_v57  ;;  %7879 = vmatprep.subr.bf16.mxu1 (!%p7776_p3), %v8231_v58 }
 0x6c4   : > { %7858 = vmatpush3.bf16.msra.mxu0 (!%p7776_p3), %v8232_v59  ;;  %7880 = vmatpush3.bf16.msra.mxu1 (!%p7776_p3), %v8233_v61 }
 0x6c5   : > { %7859 = vmatprep.subr.bf16.mxu0 (!%p7776_p3), %v8234_v0  ;;  %7881 = vmatprep.subr.bf16.mxu1 (!%p7776_p3), %v8235_v1 }
 0x6c8   : > { %7860 = vmatpush3.bf16.msra.mxu0 (!%p7776_p3), %v8236_v2  ;;  %7882 = vmatpush3.bf16.msra.mxu1 (!%p7776_p3), %v8237_v3 }
 0x6c9   : > { %7861 = vmatprep.subr.bf16.mxu0 (!%p7776_p3), %v8238_v4  ;;  %7883 = vmatprep.subr.bf16.mxu1 (!%p7776_p3), %v8239_v34 }
 0x6cc   : > { %7862 = vmatpush3.bf16.msra.mxu0 (!%p7776_p3), %v8240_v6  ;;  %7884 = vmatpush3.bf16.msra.mxu1 (!%p7776_p3), %v8241_v8 }
 0x6cd   : > { %7863 = vmatprep.subr.bf16.mxu0 (!%p7776_p3), %v8242_v9  ;;  %7885 = vmatprep.subr.bf16.mxu1 (!%p7776_p3), %v8243_v12 }
 0x6d0   : > { %7864 = vmatpush3.bf16.msra.mxu0 (!%p7776_p3), %v8244_v16  ;;  %7886 = vmatpush3.bf16.msra.mxu1 (!%p7776_p3), %v8245_v39 }
 0x6d1   : > { %7865 = vmatprep.subr.bf16.mxu0 (!%p7776_p3), %v8246_v5  ;;  %7887 = vmatprep.subr.bf16.mxu1 (!%p7776_p3), %v8247_v17 }
 0x6d4   : > { %7866 = vmatpush3.bf16.msra.mxu0 (!%p7776_p3), %v8248_v18  ;;  %7888 = vmatpush3.bf16.msra.mxu1 (!%p7776_p3), %v8249_v19 }
 0x6d5   : > { %7867 = vmatprep.subr.bf16.mxu0 (!%p7776_p3), %v8250_v60  ;;  %7889 = vmatprep.subr.bf16.mxu1 (!%p7776_p3), %v8251_v62 }
 0x6d8   : > { %7868 = vmatpush3.bf16.msra.mxu0 (!%p7776_p3), %v8252_v21  ;;  %7890 = vmatpush3.bf16.msra.mxu1 (!%p7776_p3), %v8253_v22 }
 0x6d9   : > { %7869 = vmatprep.subr.bf16.mxu0 (!%p7776_p3), %v8254_v23  ;;  %7891 = vmatprep.subr.bf16.mxu1 (!%p7776_p3), %v8255_v24 }
 0x6dc   : > { %7870 = vmatpush3.bf16.msra.mxu0 (!%p7776_p3), %v8256_v25  ;;  %7892 = vmatpush3.bf16.msra.mxu1 (!%p7776_p3), %v8257_v26 }
 0x6dd   : > { %7899 = vmatprep.subr.bf16.mxu0 (!%p7776_p3), %v8258_v31 }
 0x792   : > { %v5659_v33 = vpop.f32.mrb[4].mxu0  ;;  %v5831_v38 = vpop.f32.mrb[4].mxu1  ;;  %5875 = sbr.rel (%p7776_p3) target bundleno = 2264 (0x8d8), region = 179 }
 0x793   : > { %v5844_v37 = vadd.f32 %v5659_v33, %v2020_v28  ;;  %v5661_v40 = vpop.f32.mrb[5].mxu0  ;;  %v5846_v42 = vadd.f32 %v5831_v38, %v2022_v32  ;;  %v5833_v44 = vpop.f32.mrb[5].mxu1  ;;  %v8259_v28 = vld [vmem:[#allocation24 + $0x1c0] sm:$0xff] (!%p7776_p3)   ;;  %v5916_v32 = vrot.slane (!%p7776_p3), %v5915_v30, 4  ;;  %v5884_v33 = vld [vmem:[#allocation2 + $0x40] sm:$0xff] (!%p7776_p3)  ;;  %v5886_v38 = vld [vmem:[#allocation2 + $0x50] sm:$0xff] (!%p7776_p3) }
 0x794   : > { %v5845_v43 = vadd.f32 %v5661_v40, %v2021_v14  ;;  %v5663_v45 = vpop.f32.mrb[6].mxu0  ;;  %v5847_v48 = vadd.f32 %v5833_v44, %v2023_v63  ;;  %v5835_v46 = vpop.f32.mrb[6].mxu1  ;;  %v5876_v14 = vld [vmem:[#allocation2] sm:$0xff] (!%p7776_p3)  ;;  %v5878_v63 = vld [vmem:[#allocation2 + $0x10] sm:$0xff] (!%p7776_p3)  ;;  %7921 = vmatprep.subr.bf16.mxu1 (!%p7776_p3), %v8259_v28 }
 0x795   : > { %5860 = vst [vmem:[#allocation2 + $0x20] sm:$0xff] %v5844_v37  ;;  %v5852_v49 = vadd.f32 %v5663_v45, %v2028_v36  ;;  %v5665_v50 = vpop.f32.mrb[7].mxu0  ;;  %5862 = vst [vmem:[#allocation2 + $0x30] sm:$0xff] %v5846_v42  ;;  %v5854_v51 = vadd.f32 %v5835_v46, %v2030_v15  ;;  %v5837_v53 = vpop.f32.mrb[7].mxu1  ;;  %v5903_v36 = vadd.f32 (!%p7776_p3), %v5902_v20, %v5901_v11 }
 0x796   : > { %5861 = vst [vmem:[#allocation2 + $0x28] sm:$0xff] %v5845_v43  ;;  %v5853_v52 = vadd.f32 %v5665_v50, %v2029_v41  ;;  %5863 = vst [vmem:[#allocation2 + $0x38] sm:$0xff] %v5847_v48  ;;  %v5855_v54 = vadd.f32 %v5837_v53, %v2031_v47  ;;  %v5894_v37 = vadd.f32 (!%p7776_p3), %v5884_v33, %v5876_v14 }
 0x797   : > { %5868 = vst [vmem:[#allocation2 + $0x60] sm:$0xff] %v5852_v49  ;;  %5870 = vst [vmem:[#allocation2 + $0x70] sm:$0xff] %v5854_v51  ;;  %v5917_v40 = vadd.f32 (!%p7776_p3), %v5916_v32, %v5915_v30  ;;  %v5908_v15 = vadd.f32 (!%p7776_p3), %v5886_v38, %v5878_v63  ;;  %v5904_v41 = vrot.slane (!%p7776_p3), %v5903_v36, 2 }
 0x798   : > { %5869 = vst [vmem:[#allocation2 + $0x68] sm:$0xff] %v5853_v52  ;;  %5871 = vst [vmem:[#allocation2 + $0x78] sm:$0xff] %v5855_v54  ;;  %v5895_v42 = vrot.slane (!%p7776_p3), %v5894_v37, 4 }
 0x799   : > { %v5918_v43 = vrot.slane %v5917_v40, 2  ;;  %v5909_v44 = vrot.slane %v5908_v15, 4  ;;  %v5905_v45 = vadd.f32 %v5904_v41, %v5903_v36 }
 0x79a   : > { %v5896_v47 = vadd.f32 %v5895_v42, %v5894_v37 }
 0x79b   : > { %v5919_v48 = vadd.f32 %v5918_v43, %v5917_v40  ;;  %v5910_v49 = vadd.f32 %v5909_v44, %v5908_v15  ;;  %v5906_v46 = vrot.slane %v5905_v45, 1 }
 0x79c   : > { %v5897_v50 = vrot.slane %v5896_v47, 2 }
 0x79d   : > { %v5920_v51 = vrot.slane %v5919_v48, 1  ;;  %v5911_v52 = vrot.slane %v5910_v49, 2  ;;  %v5907_v53 = vadd.f32 %v5906_v46, %v5905_v45  ;;  %v10054_v46 = vld [vmem:[#allocation2 + $0x28] sm:$0xff] }
 0x79e   : > { %v5898_v54 = vadd.f32 %v5897_v50, %v5896_v47 }
 0x79f   : > { %v5921_v10 = vadd.f32 %v5920_v51, %v5919_v48  ;;  %v5912_v13 = vadd.f32 %v5911_v52, %v5910_v49  ;;  %v5952_v55 = vmul.f32 0.0625, %v5907_v53  ;;  %v10056_v50 = vld [vmem:[#allocation2 + $0x68] sm:$0xff] }
 0x7a0   : > { %v5899_v56 = vrot.slane %v5898_v54, 1  ;;  %v5929_v53 = vadd.f32 %v10056_v50, %v10054_v46 }
 0x7a1   : > { %v5954_v57 = vmul.f32 0.0625, %v5921_v10  ;;  %v5913_v58 = vrot.slane %v5912_v13, 1  ;;  %v10020_v59 = vsub.f32 %v5877_v27, %v5952_v55  ;;  %v10022_v61 = vsub.f32 %v5885_v35, %v5952_v55  ;;  %v10062_v10 = vld [vmem:[#allocation2 + $0x78] sm:$0xff] }
 0x7a2   : > { %v5900_v0 = vadd.f32 %v5899_v56, %v5898_v54  ;;  %v10060_v54 = vld [vmem:[#allocation2 + $0x38] sm:$0xff] }
 0x7a3   : > { %v10024_v1 = vsub.f32 %v5879_v7, %v5954_v57  ;;  %v10026_v2 = vsub.f32 %v5887_v29, %v5954_v57  ;;  %v5914_v3 = vadd.f32 %v5913_v58, %v5912_v13  ;;  %v5976_v4 = vmul.f32 %v10020_v59, %v10020_v59  ;;  %v10064_v13 = vld [vmem:[#allocation2 + $0x20] sm:$0xff]  ;;  %v10070_v58 = vld [vmem:[#allocation2 + $0x30] sm:$0xff] }
 0x7a4   : > { %v5984_v34 = vmul.f32 %v10022_v61, %v10022_v61  ;;  %v5951_v6 = vmul.f32 0.0625, %v5900_v0  ;;  %v5943_v56 = vadd.f32 %v10062_v10, %v10060_v54  ;;  %v10068_v57 = vld [vmem:[#allocation2 + $0x60] sm:$0xff]  ;;  %v10072_v0 = vld [vmem:[#allocation2 + $0x70] sm:$0xff] }
 0x7a5   : > { %v5978_v8 = vmul.f32 %v10024_v1, %v10024_v1  ;;  %v5986_v9 = vmul.f32 %v10026_v2, %v10026_v2  ;;  %v5953_v12 = vmul.f32 0.0625, %v5914_v3 }
 0x7a6   : > { %v5998_v16 = vadd.f32 %v5984_v34, %v5976_v4  ;;  %v10036_v39 = vsub.f32 %v5876_v14, %v5951_v6  ;;  %v10038_v5 = vsub.f32 %v5884_v33, %v5951_v6  ;;  %v5930_v4 = vrot.slane %v5929_v53, 4 }
 0x7a7   : > { %v6012_v17 = vadd.f32 %v5986_v9, %v5978_v8  ;;  %v10040_v18 = vsub.f32 %v5878_v63, %v5953_v12  ;;  %v10042_v19 = vsub.f32 %v5886_v38, %v5953_v12  ;;  %v6088_v63 = vlaneseq }
 0x7a8   : > { %v5999_v60 = vrot.slane %v5998_v16, 4  ;;  %v5975_v62 = vmul.f32 %v10036_v39, %v10036_v39  ;;  %v5983_v21 = vmul.f32 %v10038_v5, %v10038_v5  ;;  %v5922_v34 = vadd.f32 %v10068_v57, %v10064_v13 }
 0x7a9   : > { %v6013_v22 = vrot.slane %v6012_v17, 4  ;;  %v5977_v23 = vmul.f32 %v10040_v18, %v10040_v18  ;;  %v5985_v24 = vmul.f32 %v10042_v19, %v10042_v19  ;;  %v10052_v44 = vshrl.u32 %v6088_v63, 7 }
 0x7aa   : > { %v6000_v25 = vadd.f32 %v5999_v60, %v5998_v16  ;;  %v5991_v26 = vadd.f32 %v5983_v21, %v5975_v62  ;;  %v5944_v9 = vrot.slane %v5943_v56, 4  ;;  %v5936_v12 = vadd.f32 %v10072_v0, %v10070_v58  ;;  %v10080_v21 = vld [vmem:[#allocation21] sm:$0xff] }
 0x7ab   : > { %v6014_v27 = vadd.f32 %v6013_v22, %v6012_v17  ;;  %v6005_v35 = vadd.f32 %v5985_v24, %v5977_v23  ;;  %v6094_v6 = vsub.s32 1, %v10052_v44  ;;  %v6102_v16 = vsub.s32 3, %v10052_v44 }
 0x7ac   : > { %v6001_v11 = vrot.slane %v6000_v25, 2  ;;  %v5992_v7 = vrot.slane %v5991_v26, 4  ;;  %v5931_v60 = vadd.f32 %v5930_v4, %v5929_v53  ;;  %v5923_v62 = vrot.slane %v5922_v34, 4 }
 0x7ad   : > { %v6015_v29 = vrot.slane %v6014_v27, 2  ;;  %v6006_v30 = vrot.slane %v6005_v35, 4  ;;  %v6090_v22 = vsub.s32 0, %v10052_v44  ;;  %v5945_v23 = vadd.f32 %v5944_v9, %v5943_v56 }
 0x7ae   : > { %v6002_v31 = vadd.f32 %v6001_v11, %v6000_v25  ;;  %v5993_v20 = vadd.f32 %v5992_v7, %v5991_v26  ;;  %v5937_v24 = vrot.slane %v5936_v12, 4  ;;  %v10083_v25 = vld [vmem:[#allocation22] sm:$0xff]  ;;  %v5932_v26 = vrot.slane %v5931_v60, 2 }
 0x7af   : > { %v6016_v28 = vadd.f32 %v6015_v29, %v6014_v27  ;;  %v6007_v32 = vadd.f32 %v6006_v30, %v6005_v35  ;;  %v5924_v27 = vadd.f32 %v5923_v62, %v5922_v34  ;;  %v6098_v35 = vsub.s32 2, %v10052_v44 }
 0x7b0   : > { %v6003_v14 = vrot.slane %v6002_v31, 1  ;;  %v5994_v33 = vrot.slane %v5993_v20, 2  ;;  %v5946_v11 = vrot.slane %v5945_v23, 2  ;;  %v5938_v7 = vadd.f32 %v5937_v24, %v5936_v12 }
 0x7b1   : > { %v6017_v36 = vrot.slane %v6016_v28, 1  ;;  %v6008_v37 = vrot.slane %v6007_v32, 2  ;;  %v6095_v29 = vrot.slane %v10080_v21, %v6094_v6  ;;  %v6103_v30 = vrot.slane %v10080_v21, %v6102_v16 }
 0x7b2   : > { %v6004_v38 = vadd.f32 %v6003_v14, %v6002_v31  ;;  %v5995_v40 = vadd.f32 %v5994_v33, %v5993_v20  ;;  %v5933_v31 = vadd.f32 %v5932_v26, %v5931_v60  ;;  %v5925_v20 = vrot.slane %v5924_v27, 2 }
 0x7b3   : > { %v6018_v15 = vadd.f32 %v6017_v36, %v6016_v28  ;;  %v6009_v41 = vadd.f32 %v6008_v37, %v6007_v32  ;;  %v6152_v28 = vrot.slane %v10083_v25, %v6094_v6  ;;  %v6091_v32 = vrot.slane %v10080_v21, %v6090_v22 }
 0x7b4   : > { %v6048_v42 = vmul.f32 0.0625, %v6004_v38  ;;  %v5996_v43 = vrot.slane %v5995_v40, 1  ;;  %v5947_v14 = vadd.f32 %v5946_v11, %v5945_v23  ;;  %v5939_v33 = vrot.slane %v5938_v7, 2 }
 0x7b5   : > { %v6050_v45 = vmul.f32 0.0625, %v6018_v15  ;;  %v6010_v47 = vrot.slane %v6009_v41, 1  ;;  %v6160_v63 = vrot.slane %v10083_v25, %v6102_v16  ;;  %v6148_v36 = vrot.slane %v10083_v25, %v6090_v22 }
 0x7b6   : > { %v6056_v48 = vadd.f32 1e-05, %v6048_v42  ;;  %v5997_v49 = vadd.f32 %v5996_v43, %v5995_v40  ;;  %v5934_v37 = vrot.slane %v5933_v31, 1  ;;  %v5926_v38 = vadd.f32 %v5925_v20, %v5924_v27 }
 0x7b7   : > { %v6058_v51 = vadd.f32 1e-05, %v6050_v45  ;;  %v6011_v52 = vadd.f32 %v6010_v47, %v6009_v41  ;;  %v6099_v15 = vrot.slane %v10080_v21, %v6098_v35  ;;  %v6156_v41 = vrot.slane %v10083_v25, %v6098_v35 }
 0x7b8   : > { %8290 = vrsqrt.f32 %v6056_v48  ;;  %v6047_v55 = vmul.f32 0.0625, %v5997_v49  ;;  %v5948_v42 = vrot.slane %v5947_v14, 1  ;;  %v5940_v43 = vadd.f32 %v5939_v33, %v5938_v7 }
 0x7b9   : > { %8292 = vrsqrt.f32 %v6058_v51  ;;  %v6049_v3 = vmul.f32 0.0625, %v6011_v52  ;;  %v5935_v49 = vadd.f32 %v5934_v37, %v5933_v31  ;;  %v5927_v51 = vrot.slane %v5926_v38, 1 }
 0x7ba   : > { %v6055_v8 = vadd.f32 1e-05, %v6047_v55  ;;  %v5949_v55 = vadd.f32 %v5948_v42, %v5947_v14  ;;  %v5941_v56 = vrot.slane %v5940_v43, 1  ;;  %v8261_v42 = vld [vmem:[#allocation24 + $0x180] sm:$0xff]  }
 0x7bb   : > { %v6057_v17 = vadd.f32 1e-05, %v6049_v3  ;;  %v5956_v34 = vmul.f32 0.0625, %v5935_v49  ;;  %v5928_v6 = vadd.f32 %v5927_v51, %v5926_v38  ;;  %v8263_v49 = vld [vmem:[#allocation24 + $0x1c8] sm:$0xff]  }
 0x7bc   : > { %8294 = vrsqrt.f32 %v6055_v8  ;;  %v5958_v16 = vmul.f32 0.0625, %v5949_v55 }
 0x7bd   : > { %8296 = vrsqrt.f32 %v6057_v17  ;;  %v5942_v17 = vadd.f32 %v5941_v56, %v5940_v43  ;;  %v8262_v43 = vld [vmem:[#allocation24 + $0x148] sm:$0xff]  }
 0x7be   : > { %v10111_v38 = vsub.f32 %v10060_v54, %v5958_v16 }
 0x7c2   : > { %v8291_v40 = vpop.eup %8290 }
 0x7c3   : > { %v8293_v45 = vpop.eup %8292  ;;  %v6072_v47 = vmul.f32 %v8291_v40, %v10020_v59  ;;  %v6080_v48 = vmul.f32 %v8291_v40, %v10022_v61 }
 0x7c4   : > { %v6074_v52 = vmul.f32 %v8293_v45, %v10024_v1  ;;  %v6082_v53 = vmul.f32 %v8293_v45, %v10026_v2  ;;  %v5982_v45 = vmul.f32 %v10111_v38, %v10111_v38 }
 0x7c5   : > { %v6129_v3 = vmul.f32 %v6095_v29, %v6072_v47  ;;  %v6137_v4 = vmul.f32 %v6095_v29, %v6080_v48  ;;  %v5955_v47 = vmul.f32 0.0625, %v5928_v6  ;;  %v5957_v48 = vmul.f32 0.0625, %v5942_v17  ;;  %v8265_v6 = vld [vmem:[#allocation24 + $0x188] sm:$0xff]  }
 0x7c6   : > { %v8295_v8 = vpop.eup %8294  ;;  %v6131_v9 = vmul.f32 %v6103_v30, %v6074_v52  ;;  %v6139_v12 = vmul.f32 %v6103_v30, %v6082_v53 }
 0x7c7   : > { %v8297_v59 = vpop.eup %8296  ;;  %v6186_v60 = vadd.f32 %v6152_v28, %v6129_v3  ;;  %v6194_v61 = vadd.f32 %v6152_v28, %v6137_v4  ;;  %v6071_v62 = vmul.f32 %v8295_v8, %v10036_v39  ;;  %v6079_v1 = vmul.f32 %v8295_v8, %v10038_v5  ;;  %v8264_v3 = vld [vmem:[#allocation24 + $0x108] sm:$0xff]   ;;  %v8266_v8 = vld [vmem:[#allocation24 + $0x150] sm:$0xff]  }
 0x7c8   : > { %v6188_v22 = vadd.f32 %v6160_v63, %v6131_v9  ;;  %v6196_v2 = vadd.f32 %v6160_v63, %v6139_v12  ;;  %v6073_v23 = vmul.f32 %v8297_v59, %v10040_v18  ;;  %v6081_v24 = vmul.f32 %v8297_v59, %v10042_v19  ;;  %v8268_v59 = vld [vmem:[#allocation24 + $0x110] sm:$0xff]  }
 0x7c9   : > { %v6202_v26 = vmax.f32 %v6186_v60, 0.0  ;;  %v6210_v27 = vmax.f32 %v6194_v61, 0.0  ;;  %v6128_v35 = vmul.f32 %v6091_v32, %v6071_v62  ;;  %v6136_v11 = vmul.f32 %v6091_v32, %v6079_v1  ;;  %v8269_v1 = vld [vmem:[#allocation24 + $0x190] sm:$0xff]  }
 0x7ca   : > { %v6204_v7 = vmax.f32 %v6188_v22, 0.0  ;;  %v6212_v29 = vmax.f32 %v6196_v2, 0.0  ;;  %v6130_v30 = vmul.f32 %v6099_v15, %v6073_v23  ;;  %v6138_v31 = vmul.f32 %v6099_v15, %v6081_v24  ;;  %v8270_v22 = vld [vmem:[#allocation24 + $0x158] sm:$0xff]  }
 0x7cb   : > { %v6218_v20 = vpack.c.bf16 %v6210_v27, %v6202_v26  ;;  %v6185_v28 = vadd.f32 %v6148_v36, %v6128_v35  ;;  %v6193_v14 = vadd.f32 %v6148_v36, %v6136_v11  ;;  %v10103_v39 = vsub.f32 %v10054_v46, %v5956_v34  ;;  %v8260_v46 = vld [vmem:[#allocation24 + $0x100] sm:$0xff]   ;;  %v8271_v23 = vld [vmem:[#allocation24 + $0x1d8] sm:$0xff]  }
 0x7cc   : > { %v6220_v5 = vpack.c.bf16 %v6212_v29, %v6204_v7  ;;  %v6187_v33 = vadd.f32 %v6156_v41, %v6130_v30  ;;  %v6195_v63 = vadd.f32 %v6156_v41, %v6138_v31  ;;  %v10106_v18 = vsub.f32 %v10056_v50, %v5956_v34  ;;  %v8272_v11 = vld [vmem:[#allocation24 + $0x118] sm:$0xff]  }
 0x7cd   : > { %6776 = vmatprep.mubr.bf16.mxu0 %v6218_v20  ;;  %v6201_v19 = vmax.f32 %v6185_v28, 0.0  ;;  %v6209_v37 = vmax.f32 %v6193_v14, 0.0  ;;  %v5980_v32 = vmul.f32 %v10103_v39, %v10103_v39  ;;  %v10116_v41 = vsub.f32 %v10062_v10, %v5958_v16  ;;  %v8273_v31 = vld [vmem:[#allocation24 + $0x198] sm:$0xff]   ;;  %v8274_v20 = vld [vmem:[#allocation24 + $0x160] sm:$0xff]  }
 0x7ce   : > { %6817 = vmatprep.mubr.bf16.mxu1 %v6220_v5  ;;  %v6203_v36 = vmax.f32 %v6187_v33, 0.0  ;;  %v6211_v40 = vmax.f32 %v6195_v63, 0.0  ;;  %v5988_v15 = vmul.f32 %v10106_v18, %v10106_v18  ;;  %v10123_v53 = vsub.f32 %v10064_v13, %v5955_v47  ;;  %v8275_v14 = vld [vmem:[#allocation24 + $0x1e0] sm:$0xff]  }
 0x7cf   : > { %v6217_v50 = vpack.c.bf16 %v6209_v37, %v6201_v19  ;;  %v5990_v52 = vmul.f32 %v10116_v41, %v10116_v41  ;;  %v10126_v10 = vsub.f32 %v10068_v57, %v5955_v47  ;;  %v10129_v55 = vsub.f32 %v10070_v58, %v5957_v48  ;;  %v8276_v37 = vld [vmem:[#allocation24 + $0x120] sm:$0xff]  }
 0x7d0   : > { %v6219_v54 = vpack.c.bf16 %v6211_v40, %v6203_v36  ;;  %v6026_v51 = vadd.f32 %v5988_v15, %v5980_v32  ;;  %v10132_v56 = vsub.f32 %v10072_v0, %v5957_v48  ;;  %v5979_v13 = vmul.f32 %v10123_v53, %v10123_v53  ;;  %v8267_v0 = vld [vmem:[#allocation24 + $0x1d0] sm:$0xff]   ;;  %v8278_v15 = vld [vmem:[#allocation24 + $0x168] sm:$0xff]  }
 0x7d1   : > { %6777 = vmatmul.mubr.bf16.vlgmr.msra.gmra.mrb[0].mxu0 %v6217_v50  ;;  %v6040_v34 = vadd.f32 %v5990_v52, %v5982_v45  ;;  %v5987_v57 = vmul.f32 %v10126_v10, %v10126_v10  ;;  %v5981_v58 = vmul.f32 %v10129_v55, %v10129_v55  ;;  %v8281_v52 = vld [vmem:[#allocation24 + $0x1a8] sm:$0xff]  }
 0x7d2   : > { %6818 = vmatmul.mubr.bf16.vlgmr.msra.gmra.mrb[0].mxu1 %v6219_v54  ;;  %7900 = vmatpush3.bf16.msra.mxu0 %v8260_v46  ;;  %v6027_v4 = vrot.slane %v6026_v51, 4  ;;  %v5989_v16 = vmul.f32 %v10132_v56, %v10132_v56  ;;  %v8277_v46 = vld [vmem:[#allocation24 + $0x1a0] sm:$0xff]   ;;  %v8280_v54 = vld [vmem:[#allocation24 + $0x128] sm:$0xff]  }
 0x7d3   : > { %7922 = vmatpush3.bf16.msra.mxu1 %v8261_v42  ;;  %7901 = vmatprep.subr.bf16.mxu0 %v8262_v43  ;;  %v6041_v12 = vrot.slane %v6040_v34, 4  ;;  %v6019_v17 = vadd.f32 %v5987_v57, %v5979_v13  ;;  %v8279_v42 = vld [vmem:[#allocation24 + $0x1e8] sm:$0xff]   ;;  %v8284_v13 = vld [vmem:[#allocation24 + $0x130] sm:$0xff]  }
 0x7d4   : > { %7923 = vmatprep.subr.bf16.mxu1 %v8263_v49  ;;  %v6028_v9 = vadd.f32 %v6027_v4, %v6026_v51  ;;  %v6033_v62 = vadd.f32 %v5989_v16, %v5981_v58  ;;  %v8285_v58 = vld [vmem:[#allocation24 + $0x1b0] sm:$0xff]   ;;  %v6118_v16 = vsub.s32 7, %v10052_v44 }
 0x7d5   : > { %v6042_v61 = vadd.f32 %v6041_v12, %v6040_v34  ;;  %v6020_v2 = vrot.slane %v6019_v17, 4  ;;  %v8283_v34 = vld [vmem:[#allocation24 + $0x1f0] sm:$0xff]   ;;  %v8287_v12 = vld [vmem:[#allocation24 + $0x1f8] sm:$0xff]  }
 0x7d6   : > { %7902 = vmatpush3.bf16.msra.mxu0 %v8264_v3  ;;  %v6029_v60 = vrot.slane %v6028_v9, 2  ;;  %v6034_v27 = vrot.slane %v6033_v62, 4  ;;  %v8282_v3 = vld [vmem:[#allocation24 + $0x170] sm:$0xff]  }
 0x7d7   : > { %7924 = vmatpush3.bf16.msra.mxu1 %v8265_v6  ;;  %7903 = vmatprep.subr.bf16.mxu0 %v8266_v8  ;;  %v6043_v26 = vrot.slane %v6042_v61, 2  ;;  %v6021_v35 = vadd.f32 %v6020_v2, %v6019_v17  ;;  %v8288_v17 = vld [vmem:[#allocation24 + $0x138] sm:$0xff]  }
 0x7d8   : > { %7925 = vmatprep.subr.bf16.mxu1 %v8267_v0  ;;  %v6030_v24 = vadd.f32 %v6029_v60, %v6028_v9  ;;  %v6035_v30 = vadd.f32 %v6034_v27, %v6033_v62  ;;  %v8286_v0 = vld [vmem:[#allocation24 + $0x178] sm:$0xff]   ;;  %v6110_v9 = vsub.s32 5, %v10052_v44  ;;  %v6106_v62 = vsub.s32 4, %v10052_v44 }
 0x7d9   : > { %v6044_v29 = vadd.f32 %v6043_v26, %v6042_v61  ;;  %v6022_v28 = vrot.slane %v6021_v35, 2  ;;  %v6176_v26 = vrot.slane %v10083_v25, %v6118_v16  ;;  %v6114_v27 = vsub.s32 6, %v10052_v44 }
 0x7da   : > { %7904 = vmatpush3.bf16.msra.mxu0 %v8268_v59  ;;  %v6031_v7 = vrot.slane %v6030_v24, 1  ;;  %v6036_v63 = vrot.slane %v6035_v30, 2  ;;  %v8289_v59 = vld [vmem:[#allocation24 + $0x1b8] sm:$0xff]   ;;  %v6111_v60 = vrot.slane %v10080_v21, %v6110_v9  ;;  %v6168_v2 = vrot.slane %v10083_v25, %v6110_v9 }
 0x7db   : > { %7926 = vmatpush3.bf16.msra.mxu1 %v8269_v1  ;;  %7905 = vmatprep.subr.bf16.mxu0 %v8270_v22  ;;  %v6045_v33 = vrot.slane %v6044_v29, 1  ;;  %v6023_v19 = vadd.f32 %v6022_v28, %v6021_v35 }
 0x7dc   : > { %7927 = vmatprep.subr.bf16.mxu1 %v8271_v23  ;;  %v6032_v5 = vadd.f32 %v6031_v7, %v6030_v24  ;;  %v6037_v40 = vadd.f32 %v6036_v63, %v6035_v30  ;;  %v6119_v23 = vrot.slane %v10080_v21, %v6118_v16  ;;  %v6115_v63 = vrot.slane %v10080_v21, %v6114_v27 }
 0x7dd   : > { %v6046_v36 = vadd.f32 %v6045_v33, %v6044_v29  ;;  %v6024_v50 = vrot.slane %v6023_v19, 1 }
 0x7de   : > { %7906 = vmatpush3.bf16.msra.mxu0 %v8272_v11  ;;  %v6052_v32 = vmul.f32 0.0625, %v6032_v5  ;;  %v6038_v47 = vrot.slane %v6037_v40, 1 }
 0x7df   : > { %7928 = vmatpush3.bf16.msra.mxu1 %v8273_v31  ;;  %7907 = vmatprep.subr.bf16.mxu0 %v8274_v20  ;;  %v6054_v45 = vmul.f32 0.0625, %v6046_v36  ;;  %v6025_v48 = vadd.f32 %v6024_v50, %v6023_v19 }
 0x7e0   : > { %7929 = vmatprep.subr.bf16.mxu1 %v8275_v14  ;;  %v6060_v43 = vadd.f32 1e-05, %v6052_v32  ;;  %v6039_v51 = vadd.f32 %v6038_v47, %v6037_v40 }
 0x7e1   : > { %v6062_v49 = vadd.f32 1e-05, %v6054_v45  ;;  %v6051_v4 = vmul.f32 0.0625, %v6025_v48 }
 0x7e2   : > { %7908 = vmatpush3.bf16.msra.mxu0 %v8276_v37  ;;  %8298 = vrsqrt.f32 %v6060_v43  ;;  %v6053_v6 = vmul.f32 0.0625, %v6039_v51 }
 0x7e3   : > { %7930 = vmatpush3.bf16.msra.mxu1 %v8277_v46  ;;  %7909 = vmatprep.subr.bf16.mxu0 %v8278_v15  ;;  %8300 = vrsqrt.f32 %v6062_v49  ;;  %v6059_v8 = vadd.f32 1e-05, %v6051_v4 }
 0x7e4   : > { %7931 = vmatprep.subr.bf16.mxu1 %v8279_v42  ;;  %v6061_v57 = vadd.f32 1e-05, %v6053_v6 }
 0x7e5   : > { %8302 = vrsqrt.f32 %v6059_v8 }
 0x7e6   : > { %7910 = vmatpush3.bf16.msra.mxu0 %v8280_v54  ;;  %8304 = vrsqrt.f32 %v6061_v57 }
 0x7e7   : > { %7932 = vmatpush3.bf16.msra.mxu1 %v8281_v52  ;;  %7911 = vmatprep.subr.bf16.mxu0 %v8282_v3 }
 0x7e8   : > { %7933 = vmatprep.subr.bf16.mxu1 %v8283_v34  ;;  %v7777_v34 = vld [vmem:[#allocation25] ss:$0 sm:$0xff] }
 0x7ea   : > { %7912 = vmatpush3.bf16.msra.mxu0 %v8284_v13 }
 0x7eb   : > { %7934 = vmatpush3.bf16.msra.mxu1 %v8285_v58  ;;  %7913 = vmatprep.subr.bf16.mxu0 %v8286_v0 }
 0x7ec   : > { %v8299_v61 = vpop.eup %8298  ;;  %7935 = vmatprep.subr.bf16.mxu1 %v8287_v12 }
 0x7ed   : > { %v6076_v1 = vmul.f32 %v8299_v61, %v10103_v39  ;;  %v6084_v22 = vmul.f32 %v8299_v61, %v10106_v18  ;;  %v8301_v24 = vpop.eup %8300  ;;  %v6107_v39 = vrot.slane %v10080_v21, %v6106_v62  ;;  %v6164_v18 = vrot.slane %v10083_v25, %v6106_v62 }
 0x7ee   : > { %7914 = vmatpush3.bf16.msra.mxu0 %v8288_v17  ;;  %v6078_v7 = vmul.f32 %v8301_v24, %v10111_v38  ;;  %v6086_v29 = vmul.f32 %v8301_v24, %v10116_v41  ;;  %v6172_v38 = vrot.slane %v10083_v25, %v6114_v27 }
 0x7ef   : > { %7936 = vmatpush3.bf16.msra.mxu1 %v8289_v59  ;;  %v6133_v35 = vmul.f32 %v6111_v60, %v6076_v1  ;;  %v6141_v11 = vmul.f32 %v6111_v60, %v6084_v22  ;;  %v8303_v30 = vpop.eup %8302 }
 0x7f0   : > { %v6135_v28 = vmul.f32 %v6119_v23, %v6078_v7  ;;  %v6143_v14 = vmul.f32 %v6119_v23, %v6086_v29  ;;  %v8305_v5 = vpop.eup %8304  ;;  %v6075_v33 = vmul.f32 %v8303_v30, %v10123_v53  ;;  %v6083_v44 = vmul.f32 %v8303_v30, %v10126_v10 }
 0x7f1   : > { %v6190_v31 = vadd.f32 %v6168_v2, %v6133_v35  ;;  %v6198_v20 = vadd.f32 %v6168_v2, %v6141_v11  ;;  %v6077_v46 = vmul.f32 %v8305_v5, %v10129_v55  ;;  %v6085_v15 = vmul.f32 %v8305_v5, %v10132_v56 }
 0x7f2   : > { %v6192_v37 = vadd.f32 %v6176_v26, %v6135_v28  ;;  %v6200_v32 = vadd.f32 %v6176_v26, %v6143_v14  ;;  %v6132_v36 = vmul.f32 %v6107_v39, %v6075_v33  ;;  %v6140_v40 = vmul.f32 %v6107_v39, %v6083_v44 }
 0x7f3   : > { %v6206_v19 = vmax.f32 %v6190_v31, 0.0  ;;  %v6214_v41 = vmax.f32 %v6198_v20, 0.0  ;;  %v6134_v10 = vmul.f32 %v6115_v63, %v6077_v46  ;;  %v6142_v47 = vmul.f32 %v6115_v63, %v6085_v15 }
 0x7f4   : > { %v6208_v42 = vmax.f32 %v6192_v37, 0.0  ;;  %v6216_v43 = vmax.f32 %v6200_v32, 0.0  ;;  %v6189_v53 = vadd.f32 %v6164_v18, %v6132_v36  ;;  %v6197_v45 = vadd.f32 %v6164_v18, %v6140_v40 }
 0x7f5   : > { %v6222_v50 = vpack.c.bf16 %v6214_v41, %v6206_v19  ;;  %v6191_v54 = vadd.f32 %v6172_v38, %v6134_v10  ;;  %v6199_v49 = vadd.f32 %v6172_v38, %v6142_v47 }
 0x7f6   : > { %v6224_v21 = vpack.c.bf16 %v6216_v43, %v6208_v42  ;;  %v6205_v25 = vmax.f32 %v6189_v53, 0.0  ;;  %v6213_v48 = vmax.f32 %v6197_v45, 0.0 }
 0x7f7   : > { %6858 = vmatprep.mubr.bf16.mxu0 %v6222_v50  ;;  %v6207_v52 = vmax.f32 %v6191_v54, 0.0  ;;  %v6215_v3 = vmax.f32 %v6199_v49, 0.0 }
 0x7f8   : > { %6899 = vmatprep.mubr.bf16.mxu1 %v6224_v21  ;;  %v6221_v51 = vpack.c.bf16 %v6213_v48, %v6205_v25 }
 0x7f9   : > { %v6223_v55 = vpack.c.bf16 %v6215_v3, %v6207_v52 }
 0x7fa   : > { %6859 = vmatmul.mubr.bf16.vlgmr.msra.gmra.mrb[4].mxu0 %v6221_v51 }
 0x7fb   : > { %6900 = vmatmul.mubr.bf16.vlgmr.msra.gmra.mrb[4].mxu1 %v6223_v55 }
 0x8a4   : > { %v7871_v56 = vpop.f32.mrb[0].mxu0 }
 0x8a5   : > { %v7893_v4 = vpop.f32.mrb[0].mxu1  ;;  %v7872_v6 = vpop.f32.mrb[1].mxu0 }
 0x8a6   : > { %v7873_v8 = vadd.f32 %v7872_v6, %v7871_v56  ;;  %v7894_v13 = vpop.f32.mrb[1].mxu1  ;;  %v7874_v57 = vpop.f32.mrb[2].mxu0 }
 0x8a7   : > { %v7895_v58 = vadd.f32 %v7894_v13, %v7893_v4  ;;  %v7896_v0 = vpop.f32.mrb[2].mxu1  ;;  %v7875_v9 = vpop.f32.mrb[3].mxu0 }
 0x8a8   : > { %v6779_v12 = vadd.f32 %v7873_v8, %v7777_v34  ;;  %v7876_v16 = vadd.f32 %v7875_v9, %v7874_v57  ;;  %v7897_v17 = vpop.f32.mrb[3].mxu1 }
 0x8a9   : > { %v7898_v59 = vadd.f32 %v7897_v17, %v7896_v0 }
 0x8aa   : > { %v6820_v60 = vadd.f32 %v7895_v58, %v6779_v12  ;;  %v6782_v61 = vadd.f32 %v7876_v16, %v7777_v34 }
 0x8ac   : > { %v6823_v62 = vadd.f32 %v7898_v59, %v6782_v61 }
 0x8cd   : > { %v7915_v1 = vpop.f32.mrb[4].mxu0 }
 0x8ce   : > { %v7916_v22 = vpop.f32.mrb[5].mxu0  ;;  %v7937_v2 = vpop.f32.mrb[4].mxu1 }
 0x8cf   : > { %v7917_v23 = vadd.f32 %v7916_v22, %v7915_v1  ;;  %v7918_v24 = vpop.f32.mrb[6].mxu0  ;;  %v7938_v26 = vpop.f32.mrb[5].mxu1 }
 0x8d0   : > { %v7919_v27 = vpop.f32.mrb[7].mxu0  ;;  %v7939_v11 = vadd.f32 %v7938_v26, %v7937_v2  ;;  %v7940_v7 = vpop.f32.mrb[6].mxu1 }
 0x8d1   : > { %v6861_v35 = vadd.f32 %v7917_v23, %v6820_v60  ;;  %v7920_v29 = vadd.f32 %v7919_v27, %v7918_v24  ;;  %v7941_v39 = vpop.f32.mrb[7].mxu1 }
 0x8d2   : > { %v7942_v31 = vadd.f32 %v7941_v39, %v7940_v7 }
 0x8d3   : > { %v6902_v18 = vadd.f32 %v7939_v11, %v6861_v35  ;;  %v6864_v30 = vadd.f32 %v7920_v29, %v6823_v62 }
 0x8d5   : > { %6908 = vst [vmem:[#allocation27] sm:$0xff] %v6902_v18  ;;  %v6905_v20 = vadd.f32 %v7942_v31, %v6864_v30 }
 0x8d7   : > { %6909 = vst [vmem:[#allocation27 + $0x8] sm:$0xff] %v6905_v20 }
 0x8d8 PF: > { %s10284_s26 = sld [smem:[#allocation39_spill]]  ;;  %s8818_s2 = smov [#allocation27]  }
 0x8d9   : > { %s6916_s7 = sshll.u32 %s8818_s2, 4  ;;  %s6917_s7 = int_to_ptr.vmem [resolvable:$true] %s6916_s7 }
 0x8da   : > { %s8698_s20 = scalar_lea.vmem %s6917_s7, 256  ;;  %p8705_p1 = scmp.lt.s32.totalorder %s6917_s7, %s6917_s7 }
 0x8db   : > { %p8699_p7 = scmp.ne.s32.totalorder %s6917_s7, %s8698_s20  ;;  %p8706_p12 = scmp.lt.s32.totalorder %s8698_s20, %s8698_s20 }
 0x8dd   : > { %p8707_p5 = por %p8706_p12, %p8705_p1 }
 0x8de   : > { %p8157_p6 = scmp.eq.s32.totalorder %s10284_s26, 1 }
 0x8e0   : > { %p8700_p11 = pnand %p8699_p7, %p8157_p6 }
 0x8e2   : > { %p8701_p13 = pneg %p8700_p11 }
 0x8e4   : > { %p8708_p8 = pnand %p8707_p5, %p8701_p13 }
 0x8e6   : > { %8711 = shalt.err (!%p8708_p8)
}
 0x8e7   : > { %s10285_s24 = sld [smem:[#allocation50_spill]] }
 0x8ed   : > { %s8712_s25 = scalar_lea.hbm %s10285_s24, 256 }
 0x8ee   : > { %p8713_p4 = scmp.ne.s32.totalorder %s10285_s24, %s8712_s25  ;;  %p8718_p2 = scmp.lt.u32.totalorder %s8712_s25, %s10285_s24 }
 0x8f0   : > { %p8714_p9 = pnand %p8713_p4, %p8157_p6 }
 0x8f2   : > { %p8715_p10 = pneg %p8714_p9 }
 0x8f4   : > { %p8720_p0 = pnand %p8718_p2, %p8715_p10 }
 0x8f6   : > { %8723 = shalt.err (!%p8720_p0)
}
 0x8f7   : > { %s8819_s30 = smov 128   ;;  %s8820_s22 = smov 8  }
 0x8f8   : > { %8088 = dma.vmem_to_hbm [thread:$0]  (%p8157_p6), %s6917_s7, 256, %s10285_s24, [#allocation6], %s8819_s30, %s8819_s30, %s8820_s22  }
 0x8f9   : > { %8777 = dma.done.wait (%p8157_p6), [#allocation6], 256  }
 0x8fa   : > { %8779 = vsyncadd (%p8157_p6), [#allocation6], 4294967040 }
 0x8fb PF: > { %s10286_s30 = sld [smem:[#allocation40_spill]]  ;;  %s10287_s27 = sld [smem:[#allocation38_spill]] }
 0x8fc   : > { %s10288_s2 = sld [smem:[#allocation41_spill]]  ;;  %s10289_s28 = smov %s8790_s29 }
 0x901   : > { %p36_p3 = scmp.ge.s32.totalorder %s10286_s30, 4  }
 0x902   : > { %s10290_s29 = smov %s10288_s2 }
 0x903   :  { %38 = sbr.rel (!%p36_p3) target bundleno = 19 (0x13), region = 221 }
 0x90a   :  { %6932 = vsyncpa [#allocation5], 1 }
 0x90b   :  { %6934 = vsyncpa [#allocation5 + $0x1], 1 }
 0x90c   :  { %6935 = vsyncpa [#allocation8], 1 }
 0x90d   :  { %6936 = vsyncpa [#allocation11], 1 }
 0x90e   :  { %6937 = vsyncpa [#allocation14], 1 }
 0x90f   :  { %6938 = vsyncpa [#allocation17], 1 }
 0x910   :  { %6940 = vsyncpa [#allocation17 + $0x1], 1 }
 0x911   :  { %6941 = vsyncpa [#allocation20], 1 }
 0x912   :  { %6942 = vsyncpa [#allocation23], 1 }
 0x913   :  { %6943 = vsyncpa [#allocation26], 1 }
 0x914   :  { %6944 = vsyncpa [#allocation6], 1 }
 0x915   :  { %6946 = vsyncpa [#allocation6 + $0x1], 1 }

</bundles_post_ra>
